<compile_context>
chip_gen: v5e
topology: v5e:2x2
jax: 0.10.0
libtpu: 0.0.40
codegen_flags: <defaults>
</compile_context>

<pallas_src>
import functools

import jax
import jax.numpy as jnp
from jax.experimental import pallas as pl
from jax.experimental.pallas import tpu as pltpu


# ----------------------------------------------------------------------------
# Pallas kernel: entire sequence in a single invocation.
# ----------------------------------------------------------------------------
def _lstm_seq_kernel(
    # inputs
    u_pre_ref,   # (S, B, 4H+SD)  precomputed  u_t @ Wu^T + b  (A columns == 0)
    tau_ref,     # (S, B, 1)
    z0_ref,      # (B, Z)         initial z  = [x, h]
    cz0_ref,     # (B, Z)         initial c_z = [c_x, c]
    wz_ref,      # (Z, 4H+SD)     fused recurrent weight [[Wx^T | A^T], [Wh^T | 0]]
    wp_ref,      # (H, 2*SD)      fused [Wa^T | Wh2x^T]
    bp_ref,      # (1, 2*SD)      fused [ba | bh2x]
    # outputs
    out_x_ref,   # (S, B, SD)
    out_h_ref,   # (S, B, H)
    coef_ref,    # (S, B, SD)
    cfin_ref,    # (B, H)         final c
    # scratch
    z_sc,        # (B, Z)  recurrent [x, h]
    c_sc,        # (B, H)  recurrent c
):
    S = u_pre_ref.shape[0]
    B, Z = z_sc.shape
    H = c_sc.shape[1]
    SD = Z - H
    NG = 4 * H

    # ---- initialise recurrent state
    z_sc[...] = z0_ref[...]
    c_sc[...] = cz0_ref[:, SD:]

    # ---- hoist weights / constants out of the time loop (few vregs total)
    Wz = wz_ref[...]
    Wp = wp_ref[...]
    bp = bp_ref[...]
    lane = jax.lax.broadcasted_iota(jnp.int32, (B, NG + SD), 1)
    tanh_lane = jnp.logical_and(lane >= 2 * H, lane < 3 * H)   # g-gate lanes

    def step(t, carry):
        z = z_sc[...]                       # (B, Z) = [x, h]
        x = z[:, :SD]
        c = c_sc[...]

        # fused gates + dynamics: ONE MXU push
        res = u_pre_ref[t] + jnp.dot(z, Wz, preferred_element_type=jnp.float32)

        # full-width activations (EUP) blended via static lane mask
        acts = jnp.where(tanh_lane, jnp.tanh(res), jax.nn.sigmoid(res))
        i_g = acts[:, 0 * H:1 * H]
        f_g = acts[:, 1 * H:2 * H]
        g_g = acts[:, 2 * H:3 * H]
        o_g = acts[:, 3 * H:4 * H]
        xA = res[:, NG:NG + SD]             # x @ A^T (its bias/input columns are 0)

        c_new = f_g * c + i_g * g_g
        h_new = o_g * jnp.tanh(c_new)

        # forward-Euler discretisation
        x_mid = x + tau_ref[t] * xA

        # fused alpha-gate + W__h_to_x: ONE MXU push
        post = jnp.dot(h_new, Wp, preferred_element_type=jnp.float32) + bp
        alpha = jax.nn.sigmoid(post[:, :SD])
        hx = post[:, SD:]
        x_next = (1.0 - alpha) * x_mid + alpha * hx

        # per-timestep outputs (blocks stay resident; one HBM writeback at end)
        out_x_ref[t] = x_next
        out_h_ref[t] = h_new
        coef_ref[t] = alpha

        # carry state
        z_sc[:, :SD] = x_next
        z_sc[:, SD:] = h_new
        c_sc[...] = c_new
        return carry

    jax.lax.fori_loop(0, S, step, 0, unroll=True)
    cfin_ref[...] = c_sc[...]


# ----------------------------------------------------------------------------
# Wrapper
# ----------------------------------------------------------------------------
def _lstm_forward_impl(rnn_input, tau, z0, cz0, params, *, hidden_size, state_dim):
    """rnn_input: (B, S, IN), tau: (B, S, 1), z0/cz0: (B, Z) with Z = SD + H."""
    B, S, IN = rnn_input.shape
    H = hidden_size
    SD = state_dim
    Z = SD + H
    NG = 4 * H
    NGF = NG + SD
    f32 = jnp.float32

    WxT, WuT, WhT, b = params["WxT"], params["WuT"], params["WhT"], params["b"]
    AT, WaT, ba = params["AT"], params["WaT"], params["ba"]
    Wh2xT, bh2x = params["Wh2xT"], params["bh2x"]

    # fused recurrent weight: operand is z = [x, h]; columns = [4H gates | SD A]
    Wz = jnp.zeros((Z, NGF), f32)
    Wz = Wz.at[:SD, :NG].set(WxT)
    Wz = Wz.at[SD:, :NG].set(WhT)
    Wz = Wz.at[:SD, NG:].set(AT)

    # fused post weight: [alpha gate | W__h_to_x]
    Wp = jnp.concatenate([WaT, Wh2xT], axis=1)          # (H, 2*SD)
    bp = jnp.concatenate([ba, bh2x], axis=1)            # (1, 2*SD)

    # precompute the input projection for every timestep (one batched matmul),
    # fold the gate bias in; the extra SD (dynamics) columns are zero.
    u_tm = jnp.transpose(rnn_input, (1, 0, 2))          # (S, B, IN)
    tau_tm = jnp.transpose(tau, (1, 0, 2))              # (S, B, 1)
    WuT_ext = jnp.concatenate([WuT, jnp.zeros((IN, SD), f32)], axis=1)   # (IN, NGF)
    b_ext = jnp.concatenate([b, jnp.zeros((1, SD), f32)], axis=1)        # (1, NGF)
    u_pre = jnp.einsum("sbi,ig->sbg", u_tm, WuT_ext) + b_ext             # (S, B, NGF)

    full2 = lambda i: (0, 0)
    full3 = lambda i: (0, 0, 0)

    grid_spec = pltpu.PrefetchScalarGridSpec(
        num_scalar_prefetch=0,
        grid=(1,),
        in_specs=[
            pl.BlockSpec((S, B, NGF), full3),           # u_pre
            pl.BlockSpec((S, B, 1), full3),             # tau
            pl.BlockSpec((B, Z), full2),                # z0
            pl.BlockSpec((B, Z), full2),                # cz0
            pl.BlockSpec((Z, NGF), full2),              # fused recurrent weight
            pl.BlockSpec((H, 2 * SD), full2),           # fused post weight
            pl.BlockSpec((1, 2 * SD), full2),           # fused post bias
        ],
        out_specs=[
            pl.BlockSpec((S, B, SD), full3),            # x per step
            pl.BlockSpec((S, B, H), full3),             # h per step
            pl.BlockSpec((S, B, SD), full3),            # alpha per step
            pl.BlockSpec((B, H), full2),                # final c
        ],
        scratch_shapes=[
            pltpu.VMEM((B, Z), f32),                    # z = [x, h]
            pltpu.VMEM((B, H), f32),                    # c
        ],
    )

    out_x, out_h, coef_tm, c_fin = pl.pallas_call(
        _lstm_seq_kernel,
        grid_spec=grid_spec,
        out_shape=(
            jax.ShapeDtypeStruct((S, B, SD), f32),
            jax.ShapeDtypeStruct((S, B, H), f32),
            jax.ShapeDtypeStruct((S, B, SD), f32),
            jax.ShapeDtypeStruct((B, H), f32),
        ),
        compiler_params=pltpu.CompilerParams(
            dimension_semantics=("arbitrary",),         # sequential recurrence
        ),
    )(u_pre, tau_tm, z0, cz0, Wz, Wp, bp)

    out_tm = jnp.concatenate([out_x, out_h], axis=-1)       # (S, B, Z)
    outputs = jnp.transpose(out_tm, (1, 0, 2))              # (B, S, Z) batch_first
    coefficients = jnp.transpose(coef_tm, (1, 0, 2))        # (B, S, SD)
    z_f = out_tm[-1]                                        # (B, Z)
    cz_f = jnp.concatenate([cz0[:, :SD], c_fin], axis=1)    # c_x never updated
    # reference returns (num_layers, B, Z) hidden state; num_layers == 1
    return outputs, (z_f[None], cz_f[None]), coefficients


lstm_forward_pallas = jax.jit(
    _lstm_forward_impl, static_argnames=("hidden_size", "state_dim")
)


# ----------------------------------------------------------------------------
# Pure-JAX reference (for correctness check) — unfused math, same semantics.
# ----------------------------------------------------------------------------
def lstm_forward_reference(rnn_input, tau, z0, cz0, params, *, hidden_size, state_dim):
    B, S, _ = rnn_input.shape
    SD = state_dim
    x = z0[:, :SD]
    h = z0[:, SD:]
    cx = cz0[:, :SD]
    c = cz0[:, SD:]
    WxT, WuT, WhT, b = params["WxT"], params["WuT"], params["WhT"], params["b"]
    AT, WaT, ba = params["AT"], params["WaT"], params["ba"]
    Wh2xT, bh2x = params["Wh2xT"], params["bh2x"]
    outs, coefs = [], []
    for t in range(S):
        u_t = rnn_input[:, t, :]
        tau_t = tau[:, t, :]
        gates = x @ WxT + u_t @ WuT + h @ WhT + b
        i_g, f_g, g_g, o_g = jnp.split(gates, 4, axis=1)
        i_g = jax.nn.sigmoid(i_g)
        f_g = jax.nn.sigmoid(f_g)
        o_g = jax.nn.sigmoid(o_g)
        g_g = jnp.tanh(g_g)
        c = f_g * c + i_g * g_g
        h = o_g * jnp.tanh(c)
        x_mid = x + tau_t * (x @ AT)
        alpha = jax.nn.sigmoid(h @ WaT + ba)
        hx = h @ Wh2xT + bh2x
        x = (1.0 - alpha) * x_mid + alpha * hx
        outs.append(jnp.concatenate([x, h], axis=1))
        coefs.append(alpha)
    outputs = jnp.stack(outs, axis=1)
    coefficients = jnp.stack(coefs, axis=1)
    z_f = jnp.concatenate([x, h], axis=1)
    cz_f = jnp.concatenate([cx, c], axis=1)
    return outputs, (z_f[None], cz_f[None]), coefficients


# ----------------------------------------------------------------------------
# Main
# ----------------------------------------------------------------------------
if __name__ == "__main__":
    # keep XLA-side matmuls in full f32 so the reference matches the kernel
    jax.config.update("jax_default_matmul_precision", "highest")

    # Small shapes consistent with the module
    B, S = 2, 8                  # batch, seq
    IN = 3                       # input_size
    SD = 2                       # state_dim (VanDerPol-style 2-state system)
    H = 32                       # hidden_size
    Z = SD + H                   # z_size
    dtype = jnp.float32

    key = jax.random.PRNGKey(0)
    ks = jax.random.split(key, 12)

    def linear_init(kw, kb, out_f, in_f):
        # matches torch.nn.Linear default: U(-1/sqrt(in_f), 1/sqrt(in_f))
        bound = 1.0 / jnp.sqrt(jnp.float32(in_f))
        w = jax.random.uniform(kw, (out_f, in_f), dtype, -bound, bound)
        b = jax.random.uniform(kb, (out_f,), dtype, -bound, bound)
        return w, b

    # LSTMCell.WU : Linear(IN + SD + H -> 4H), input order = [x_in, rnn_in, h]
    WU_w, WU_b = linear_init(ks[0], ks[1], 4 * H, IN + SD + H)
    Wx = WU_w[:, :SD]            # (4H, SD)
    Wu = WU_w[:, SD:SD + IN]     # (4H, IN)
    Wh = WU_w[:, SD + IN:]       # (4H, H)
    # alpha_gate : Linear(H -> SD),  W__h_to_x : Linear(H -> SD)
    Wa, ba = linear_init(ks[2], ks[3], SD, H)
    Wh2x, bh2x = linear_init(ks[4], ks[5], SD, H)

    # dynamics matrix A (VanDerPol-style, defined in-script)
    control_delta = 0.2
    mu = 1.0
    A = control_delta * jnp.array([[0.0, 1.0], [-1.0, mu]], dtype=dtype)

    params = {
        "WxT": jnp.asarray(Wx.T),            # (SD, 4H)
        "WuT": jnp.asarray(Wu.T),            # (IN, 4H)
        "WhT": jnp.asarray(Wh.T),            # (H, 4H)
        "b": WU_b[None, :],                  # (1, 4H)
        "AT": jnp.asarray(A.T),              # (SD, SD)
        "WaT": jnp.asarray(Wa.T),            # (H, SD)
        "ba": ba[None, :],                   # (1, SD)
        "Wh2xT": jnp.asarray(Wh2x.T),        # (H, SD)
        "bh2x": bh2x[None, :],               # (1, SD)
    }

    # inputs: padded rnn input (B, S, IN), tau (B, S, 1), hidden_state (z, c_z)
    rnn_input = jax.random.normal(ks[6], (B, S, IN), dtype)
    tau = 0.05 + 0.05 * jax.random.uniform(ks[7], (B, S, 1), dtype)
    z0 = 0.1 * jax.random.normal(ks[8], (B, Z), dtype)
    cz0 = 0.1 * jax.random.normal(ks[9], (B, Z), dtype)

    out, (z_f, cz_f), coeff = lstm_forward_pallas(
        rnn_input, tau, z0, cz0, params, hidden_size=H, state_dim=SD
    )
    jax.block_until_ready((out, z_f, cz_f, coeff))

    # correctness check against a pure-JAX reference of the same semantics
    ro, (rz, rcz), rc = lstm_forward_reference(
        rnn_input, tau, z0, cz0, params, hidden_size=H, state_dim=SD
    )
    assert jnp.allclose(out, ro, atol=1e-4, rtol=1e-4)
    assert jnp.allclose(coeff, rc, atol=1e-4, rtol=1e-4)
    assert jnp.allclose(z_f, rz, atol=1e-4, rtol=1e-4)
    assert jnp.allclose(cz_f, rcz, atol=1e-4, rtol=1e-4)

    print("KERNEL_OK")
</pallas_src>

<mosaic_0001>
module attributes {stable_mosaic.version = 11 : i64} {
  func.func @_lstm_seq_kernel(%arg0: i32, %arg1: memref<8x2x130xf32, #tpu.memory_space<vmem>>, %arg2: memref<8x2x1xf32, #tpu.memory_space<vmem>>, %arg3: memref<2x34xf32, #tpu.memory_space<vmem>>, %arg4: memref<2x34xf32, #tpu.memory_space<vmem>>, %arg5: memref<34x130xf32, #tpu.memory_space<vmem>>, %arg6: memref<32x4xf32, #tpu.memory_space<vmem>>, %arg7: memref<1x4xf32, #tpu.memory_space<vmem>>, %arg8: memref<8x2x2xf32, #tpu.memory_space<vmem>>, %arg9: memref<8x2x32xf32, #tpu.memory_space<vmem>>, %arg10: memref<8x2x2xf32, #tpu.memory_space<vmem>>, %arg11: memref<2x32xf32, #tpu.memory_space<vmem>>, %arg12: memref<2x34xf32, #tpu.memory_space<vmem>>, %arg13: memref<2x32xf32, #tpu.memory_space<vmem>>) attributes {dimension_semantics = [#tpu.dimension_semantics<arbitrary>], iteration_bounds = array<i64: 1>, scalar_prefetch = 0 : i64, scratch_operands = 2 : i64, tpu.core_type = #tpu.core_type<tc>, window_params = [{pipeline_mode = #tpu.pipeline_mode<synchronous>, transform_indices = @transform_0, window_bounds = array<i64: 8, 2, 130>}, {pipeline_mode = #tpu.pipeline_mode<synchronous>, transform_indices = @transform_1, window_bounds = array<i64: 8, 2, 1>}, {pipeline_mode = #tpu.pipeline_mode<synchronous>, transform_indices = @transform_2, window_bounds = array<i64: 2, 34>}, {pipeline_mode = #tpu.pipeline_mode<synchronous>, transform_indices = @transform_3, window_bounds = array<i64: 2, 34>}, {pipeline_mode = #tpu.pipeline_mode<synchronous>, transform_indices = @transform_4, window_bounds = array<i64: 34, 130>}, {pipeline_mode = #tpu.pipeline_mode<synchronous>, transform_indices = @transform_5, window_bounds = array<i64: 32, 4>}, {pipeline_mode = #tpu.pipeline_mode<synchronous>, transform_indices = @transform_6, window_bounds = array<i64: 1, 4>}, {pipeline_mode = #tpu.pipeline_mode<synchronous>, transform_indices = @transform_7, window_bounds = array<i64: 8, 2, 2>}, {pipeline_mode = #tpu.pipeline_mode<synchronous>, transform_indices = @transform_8, window_bounds = array<i64: 8, 2, 32>}, {pipeline_mode = #tpu.pipeline_mode<synchronous>, transform_indices = @transform_9, window_bounds = array<i64: 8, 2, 2>}, {pipeline_mode = #tpu.pipeline_mode<synchronous>, transform_indices = @transform_10, window_bounds = array<i64: 2, 32>}]} {
    %c0 = arith.constant 0 : index
    %c0_0 = arith.constant 0 : index
    %0 = vector.load %arg3[%c0, %c0_0] : memref<2x34xf32, #tpu.memory_space<vmem>>, vector<2x34xf32>
    %c0_1 = arith.constant 0 : index
    %c0_2 = arith.constant 0 : index
    %1 = vector.load %arg12[%c0_1, %c0_2] : memref<2x34xf32, #tpu.memory_space<vmem>>, vector<2x34xf32>
    tpu.vector_store %arg12[%c0_1, %c0_2], %0 {strides = array<i32>} : memref<2x34xf32, #tpu.memory_space<vmem>>, vector<2x34xf32>,
    %c0_3 = arith.constant 0 : index
    %c2 = arith.constant 2 : index
    %2 = vector.load %arg4[%c0_3, %c2] : memref<2x34xf32, #tpu.memory_space<vmem>>, vector<2x32xf32>
    %c0_4 = arith.constant 0 : index
    %c0_5 = arith.constant 0 : index
    %3 = vector.load %arg13[%c0_4, %c0_5] : memref<2x32xf32, #tpu.memory_space<vmem>>, vector<2x32xf32>
    tpu.vector_store %arg13[%c0_4, %c0_5], %2 {strides = array<i32>} : memref<2x32xf32, #tpu.memory_space<vmem>>, vector<2x32xf32>,
    %c0_6 = arith.constant 0 : index
    %c0_7 = arith.constant 0 : index
    %4 = vector.load %arg5[%c0_6, %c0_7] : memref<34x130xf32, #tpu.memory_space<vmem>>, vector<34x130xf32>
    %c0_8 = arith.constant 0 : index
    %c0_9 = arith.constant 0 : index
    %5 = vector.load %arg6[%c0_8, %c0_9] : memref<32x4xf32, #tpu.memory_space<vmem>>, vector<32x4xf32>
    %c0_10 = arith.constant 0 : index
    %c0_11 = arith.constant 0 : index
    %6 = vector.load %arg7[%c0_10, %c0_11] : memref<1x4xf32, #tpu.memory_space<vmem>>, vector<1x4xf32>
    %7 = tpu.iota {dimensions = array<i32: 1>} : vector<2x130xi32>
    %c64_i32 = arith.constant 64 : i32
    %8 = vector.broadcast %c64_i32 : i32 to vector<2x130xi32>
    %9 = arith.cmpi sge, %7, %8 : vector<2x130xi32>
    %c96_i32 = arith.constant 96 : i32
    %10 = vector.broadcast %c96_i32 : i32 to vector<2x130xi32>
    %11 = arith.cmpi slt, %7, %10 : vector<2x130xi32>
    %12 = arith.andi %9, %11 : vector<2x130xi1>
    %c0_i32 = arith.constant 0 : i32
    %c0_12 = arith.constant 0 : index
    %c0_13 = arith.constant 0 : index
    %13 = vector.load %arg12[%c0_12, %c0_13] : memref<2x34xf32, #tpu.memory_space<vmem>>, vector<2x34xf32>
    %14 = vector.extract_strided_slice %13 {offsets = [0, 0], sizes = [2, 2], strides = [1, 1]} : vector<2x34xf32> to vector<2x2xf32>
    %c0_14 = arith.constant 0 : index
    %c0_15 = arith.constant 0 : index
    %15 = vector.load %arg13[%c0_14, %c0_15] : memref<2x32xf32, #tpu.memory_space<vmem>>, vector<2x32xf32>
    %16 = arith.index_cast %c0_i32 : i32 to index
    %c0_16 = arith.constant 0 : index
    %c0_17 = arith.constant 0 : index
    %17 = vector.load %arg1[%16, %c0_16, %c0_17] : memref<8x2x130xf32, #tpu.memory_space<vmem>>, vector<1x2x130xf32>
    %18 = vector.shape_cast %17 : vector<1x2x130xf32> to vector<2x130xf32>
    %cst = arith.constant dense<0.000000e+00> : vector<2x130xf32>
    %19 = tpu.matmul %13, %4, %cst {dimension_numbers = #tpu.dot_dimension_numbers<[1], [0], [0], [1], [0, 0, 1, 1], [], []>, precision = #tpu.contract_precision<fp32>} : vector<2x34xf32>, vector<34x130xf32>, vector<2x130xf32> -> vector<2x130xf32>
    %20 = arith.addf %18, %19 : vector<2x130xf32>
    %21 = math.tanh %20 : vector<2x130xf32>
    %22 = arith.negf %20 : vector<2x130xf32>
    %23 = math.exp %22 : vector<2x130xf32>
    %cst_18 = arith.constant 1.000000e+00 : f32
    %24 = vector.broadcast %cst_18 : f32 to vector<2x130xf32>
    %25 = arith.addf %24, %23 : vector<2x130xf32>
    %26 = arith.divf %24, %25 : vector<2x130xf32>
    %27 = arith.select %12, %21, %26 : vector<2x130xi1>, vector<2x130xf32>
    %28 = vector.extract_strided_slice %27 {offsets = [0, 0], sizes = [2, 32], strides = [1, 1]} : vector<2x130xf32> to vector<2x32xf32>
    %29 = vector.extract_strided_slice %27 {offsets = [0, 32], sizes = [2, 32], strides = [1, 1]} : vector<2x130xf32> to vector<2x32xf32>
    %30 = vector.extract_strided_slice %27 {offsets = [0, 64], sizes = [2, 32], strides = [1, 1]} : vector<2x130xf32> to vector<2x32xf32>
    %31 = vector.extract_strided_slice %27 {offsets = [0, 96], sizes = [2, 32], strides = [1, 1]} : vector<2x130xf32> to vector<2x32xf32>
    %32 = vector.extract_strided_slice %20 {offsets = [0, 128], sizes = [2, 2], strides = [1, 1]} : vector<2x130xf32> to vector<2x2xf32>
    %33 = arith.mulf %29, %15 : vector<2x32xf32>
    %34 = arith.mulf %28, %30 : vector<2x32xf32>
    %35 = arith.addf %33, %34 : vector<2x32xf32>
    %36 = math.tanh %35 : vector<2x32xf32>
    %37 = arith.mulf %31, %36 : vector<2x32xf32>
    %38 = arith.index_cast %c0_i32 : i32 to index
    %c0_19 = arith.constant 0 : index
    %c0_20 = arith.constant 0 : index
    %39 = vector.load %arg2[%38, %c0_19, %c0_20] : memref<8x2x1xf32, #tpu.memory_space<vmem>>, vector<1x2x1xf32>
    %40 = vector.shape_cast %39 : vector<1x2x1xf32> to vector<2x1xf32>
    %41 = vector.broadcast %40 : vector<2x1xf32> to vector<2x2xf32>
    %42 = arith.mulf %41, %32 : vector<2x2xf32>
    %43 = arith.addf %14, %42 : vector<2x2xf32>
    %cst_21 = arith.constant dense<0.000000e+00> : vector<2x4xf32>
    %44 = tpu.matmul %37, %5, %cst_21 {dimension_numbers = #tpu.dot_dimension_numbers<[1], [0], [0], [1], [0, 0, 1, 1], [], []>, precision = #tpu.contract_precision<fp32>} : vector<2x32xf32>, vector<32x4xf32>, vector<2x4xf32> -> vector<2x4xf32>
    %45 = vector.broadcast %6 : vector<1x4xf32> to vector<2x4xf32>
    %46 = arith.addf %44, %45 : vector<2x4xf32>
    %47 = vector.extract_strided_slice %46 {offsets = [0, 0], sizes = [2, 2], strides = [1, 1]} : vector<2x4xf32> to vector<2x2xf32>
    %48 = arith.negf %47 : vector<2x2xf32>
    %49 = math.exp %48 : vector<2x2xf32>
    %cst_22 = arith.constant 1.000000e+00 : f32
    %50 = vector.broadcast %cst_22 : f32 to vector<2x2xf32>
    %51 = arith.addf %50, %49 : vector<2x2xf32>
    %52 = arith.divf %50, %51 : vector<2x2xf32>
    %53 = vector.extract_strided_slice %46 {offsets = [0, 2], sizes = [2, 2], strides = [1, 1]} : vector<2x4xf32> to vector<2x2xf32>
    %cst_23 = arith.constant 1.000000e+00 : f32
    %54 = vector.broadcast %cst_23 : f32 to vector<2x2xf32>
    %55 = arith.subf %54, %52 : vector<2x2xf32>
    %56 = arith.mulf %55, %43 : vector<2x2xf32>
    %57 = arith.mulf %52, %53 : vector<2x2xf32>
    %58 = arith.addf %56, %57 : vector<2x2xf32>
    %59 = arith.index_cast %c0_i32 : i32 to index
    %c0_24 = arith.constant 0 : index
    %c0_25 = arith.constant 0 : index
    %60 = vector.load %arg8[%59, %c0_24, %c0_25] : memref<8x2x2xf32, #tpu.memory_space<vmem>>, vector<1x2x2xf32>
    %61 = vector.shape_cast %60 : vector<1x2x2xf32> to vector<2x2xf32>
    %62 = vector.shape_cast %58 : vector<2x2xf32> to vector<1x2x2xf32>
    tpu.vector_store %arg8[%59, %c0_24, %c0_25], %62 {strides = array<i32>} : memref<8x2x2xf32, #tpu.memory_space<vmem>>, vector<1x2x2xf32>,
    %63 = arith.index_cast %c0_i32 : i32 to index
    %c0_26 = arith.constant 0 : index
    %c0_27 = arith.constant 0 : index
    %64 = vector.load %arg9[%63, %c0_26, %c0_27] : memref<8x2x32xf32, #tpu.memory_space<vmem>>, vector<1x2x32xf32>
    %65 = vector.shape_cast %64 : vector<1x2x32xf32> to vector<2x32xf32>
    %66 = vector.shape_cast %37 : vector<2x32xf32> to vector<1x2x32xf32>
    tpu.vector_store %arg9[%63, %c0_26, %c0_27], %66 {strides = array<i32>} : memref<8x2x32xf32, #tpu.memory_space<vmem>>, vector<1x2x32xf32>,
    %67 = arith.index_cast %c0_i32 : i32 to index
    %c0_28 = arith.constant 0 : index
    %c0_29 = arith.constant 0 : index
    %68 = vector.load %arg10[%67, %c0_28, %c0_29] : memref<8x2x2xf32, #tpu.memory_space<vmem>>, vector<1x2x2xf32>
    %69 = vector.shape_cast %68 : vector<1x2x2xf32> to vector<2x2xf32>
    %70 = vector.shape_cast %52 : vector<2x2xf32> to vector<1x2x2xf32>
    tpu.vector_store %arg10[%67, %c0_28, %c0_29], %70 {strides = array<i32>} : memref<8x2x2xf32, #tpu.memory_space<vmem>>, vector<1x2x2xf32>,
    %c0_30 = arith.constant 0 : index
    %c0_31 = arith.constant 0 : index
    %71 = vector.load %arg12[%c0_30, %c0_31] : memref<2x34xf32, #tpu.memory_space<vmem>>, vector<2x2xf32>
    tpu.vector_store %arg12[%c0_30, %c0_31], %58 {strides = array<i32>} : memref<2x34xf32, #tpu.memory_space<vmem>>, vector<2x2xf32>,
    %c0_32 = arith.constant 0 : index
    %c2_33 = arith.constant 2 : index
    %72 = vector.load %arg12[%c0_32, %c2_33] : memref<2x34xf32, #tpu.memory_space<vmem>>, vector<2x32xf32>
    tpu.vector_store %arg12[%c0_32, %c2_33], %37 {strides = array<i32>} : memref<2x34xf32, #tpu.memory_space<vmem>>, vector<2x32xf32>,
    %c0_34 = arith.constant 0 : index
    %c0_35 = arith.constant 0 : index
    %73 = vector.load %arg13[%c0_34, %c0_35] : memref<2x32xf32, #tpu.memory_space<vmem>>, vector<2x32xf32>
    tpu.vector_store %arg13[%c0_34, %c0_35], %35 {strides = array<i32>} : memref<2x32xf32, #tpu.memory_space<vmem>>, vector<2x32xf32>,
    %c1_i32 = arith.constant 1 : i32
    %c0_36 = arith.constant 0 : index
    %c0_37 = arith.constant 0 : index
    %74 = vector.load %arg12[%c0_36, %c0_37] : memref<2x34xf32, #tpu.memory_space<vmem>>, vector<2x34xf32>
    %75 = vector.extract_strided_slice %74 {offsets = [0, 0], sizes = [2, 2], strides = [1, 1]} : vector<2x34xf32> to vector<2x2xf32>
    %c0_38 = arith.constant 0 : index
    %c0_39 = arith.constant 0 : index
    %76 = vector.load %arg13[%c0_38, %c0_39] : memref<2x32xf32, #tpu.memory_space<vmem>>, vector<2x32xf32>
    %77 = arith.index_cast %c1_i32 : i32 to index
    %c0_40 = arith.constant 0 : index
    %c0_41 = arith.constant 0 : index
    %78 = vector.load %arg1[%77, %c0_40, %c0_41] : memref<8x2x130xf32, #tpu.memory_space<vmem>>, vector<1x2x130xf32>
    %79 = vector.shape_cast %78 : vector<1x2x130xf32> to vector<2x130xf32>
    %cst_42 = arith.constant dense<0.000000e+00> : vector<2x130xf32>
    %80 = tpu.matmul %74, %4, %cst_42 {dimension_numbers = #tpu.dot_dimension_numbers<[1], [0], [0], [1], [0, 0, 1, 1], [], []>, precision = #tpu.contract_precision<fp32>} : vector<2x34xf32>, vector<34x130xf32>, vector<2x130xf32> -> vector<2x130xf32>
    %81 = arith.addf %79, %80 : vector<2x130xf32>
    %82 = math.tanh %81 : vector<2x130xf32>
    %83 = arith.negf %81 : vector<2x130xf32>
    %84 = math.exp %83 : vector<2x130xf32>
    %cst_43 = arith.constant 1.000000e+00 : f32
    %85 = vector.broadcast %cst_43 : f32 to vector<2x130xf32>
    %86 = arith.addf %85, %84 : vector<2x130xf32>
    %87 = arith.divf %85, %86 : vector<2x130xf32>
    %88 = arith.select %12, %82, %87 : vector<2x130xi1>, vector<2x130xf32>
    %89 = vector.extract_strided_slice %88 {offsets = [0, 0], sizes = [2, 32], strides = [1, 1]} : vector<2x130xf32> to vector<2x32xf32>
    %90 = vector.extract_strided_slice %88 {offsets = [0, 32], sizes = [2, 32], strides = [1, 1]} : vector<2x130xf32> to vector<2x32xf32>
    %91 = vector.extract_strided_slice %88 {offsets = [0, 64], sizes = [2, 32], strides = [1, 1]} : vector<2x130xf32> to vector<2x32xf32>
    %92 = vector.extract_strided_slice %88 {offsets = [0, 96], sizes = [2, 32], strides = [1, 1]} : vector<2x130xf32> to vector<2x32xf32>
    %93 = vector.extract_strided_slice %81 {offsets = [0, 128], sizes = [2, 2], strides = [1, 1]} : vector<2x130xf32> to vector<2x2xf32>
    %94 = arith.mulf %90, %76 : vector<2x32xf32>
    %95 = arith.mulf %89, %91 : vector<2x32xf32>
    %96 = arith.addf %94, %95 : vector<2x32xf32>
    %97 = math.tanh %96 : vector<2x32xf32>
    %98 = arith.mulf %92, %97 : vector<2x32xf32>
    %99 = arith.index_cast %c1_i32 : i32 to index
    %c0_44 = arith.constant 0 : index
    %c0_45 = arith.constant 0 : index
    %100 = vector.load %arg2[%99, %c0_44, %c0_45] : memref<8x2x1xf32, #tpu.memory_space<vmem>>, vector<1x2x1xf32>
    %101 = vector.shape_cast %100 : vector<1x2x1xf32> to vector<2x1xf32>
    %102 = vector.broadcast %101 : vector<2x1xf32> to vector<2x2xf32>
    %103 = arith.mulf %102, %93 : vector<2x2xf32>
    %104 = arith.addf %75, %103 : vector<2x2xf32>
    %cst_46 = arith.constant dense<0.000000e+00> : vector<2x4xf32>
    %105 = tpu.matmul %98, %5, %cst_46 {dimension_numbers = #tpu.dot_dimension_numbers<[1], [0], [0], [1], [0, 0, 1, 1], [], []>, precision = #tpu.contract_precision<fp32>} : vector<2x32xf32>, vector<32x4xf32>, vector<2x4xf32> -> vector<2x4xf32>
    %106 = vector.broadcast %6 : vector<1x4xf32> to vector<2x4xf32>
    %107 = arith.addf %105, %106 : vector<2x4xf32>
    %108 = vector.extract_strided_slice %107 {offsets = [0, 0], sizes = [2, 2], strides = [1, 1]} : vector<2x4xf32> to vector<2x2xf32>
    %109 = arith.negf %108 : vector<2x2xf32>
    %110 = math.exp %109 : vector<2x2xf32>
    %cst_47 = arith.constant 1.000000e+00 : f32
    %111 = vector.broadcast %cst_47 : f32 to vector<2x2xf32>
    %112 = arith.addf %111, %110 : vector<2x2xf32>
    %113 = arith.divf %111, %112 : vector<2x2xf32>
    %114 = vector.extract_strided_slice %107 {offsets = [0, 2], sizes = [2, 2], strides = [1, 1]} : vector<2x4xf32> to vector<2x2xf32>
    %cst_48 = arith.constant 1.000000e+00 : f32
    %115 = vector.broadcast %cst_48 : f32 to vector<2x2xf32>
    %116 = arith.subf %115, %113 : vector<2x2xf32>
    %117 = arith.mulf %116, %104 : vector<2x2xf32>
    %118 = arith.mulf %113, %114 : vector<2x2xf32>
    %119 = arith.addf %117, %118 : vector<2x2xf32>
    %120 = arith.index_cast %c1_i32 : i32 to index
    %c0_49 = arith.constant 0 : index
    %c0_50 = arith.constant 0 : index
    %121 = vector.load %arg8[%120, %c0_49, %c0_50] : memref<8x2x2xf32, #tpu.memory_space<vmem>>, vector<1x2x2xf32>
    %122 = vector.shape_cast %121 : vector<1x2x2xf32> to vector<2x2xf32>
    %123 = vector.shape_cast %119 : vector<2x2xf32> to vector<1x2x2xf32>
    tpu.vector_store %arg8[%120, %c0_49, %c0_50], %123 {strides = array<i32>} : memref<8x2x2xf32, #tpu.memory_space<vmem>>, vector<1x2x2xf32>,
    %124 = arith.index_cast %c1_i32 : i32 to index
    %c0_51 = arith.constant 0 : index
    %c0_52 = arith.constant 0 : index
    %125 = vector.load %arg9[%124, %c0_51, %c0_52] : memref<8x2x32xf32, #tpu.memory_space<vmem>>, vector<1x2x32xf32>
    %126 = vector.shape_cast %125 : vector<1x2x32xf32> to vector<2x32xf32>
    %127 = vector.shape_cast %98 : vector<2x32xf32> to vector<1x2x32xf32>
    tpu.vector_store %arg9[%124, %c0_51, %c0_52], %127 {strides = array<i32>} : memref<8x2x32xf32, #tpu.memory_space<vmem>>, vector<1x2x32xf32>,
    %128 = arith.index_cast %c1_i32 : i32 to index
    %c0_53 = arith.constant 0 : index
    %c0_54 = arith.constant 0 : index
    %129 = vector.load %arg10[%128, %c0_53, %c0_54] : memref<8x2x2xf32, #tpu.memory_space<vmem>>, vector<1x2x2xf32>
    %130 = vector.shape_cast %129 : vector<1x2x2xf32> to vector<2x2xf32>
    %131 = vector.shape_cast %113 : vector<2x2xf32> to vector<1x2x2xf32>
    tpu.vector_store %arg10[%128, %c0_53, %c0_54], %131 {strides = array<i32>} : memref<8x2x2xf32, #tpu.memory_space<vmem>>, vector<1x2x2xf32>,
    %c0_55 = arith.constant 0 : index
    %c0_56 = arith.constant 0 : index
    %132 = vector.load %arg12[%c0_55, %c0_56] : memref<2x34xf32, #tpu.memory_space<vmem>>, vector<2x2xf32>
    tpu.vector_store %arg12[%c0_55, %c0_56], %119 {strides = array<i32>} : memref<2x34xf32, #tpu.memory_space<vmem>>, vector<2x2xf32>,
    %c0_57 = arith.constant 0 : index
    %c2_58 = arith.constant 2 : index
    %133 = vector.load %arg12[%c0_57, %c2_58] : memref<2x34xf32, #tpu.memory_space<vmem>>, vector<2x32xf32>
    tpu.vector_store %arg12[%c0_57, %c2_58], %98 {strides = array<i32>} : memref<2x34xf32, #tpu.memory_space<vmem>>, vector<2x32xf32>,
    %c0_59 = arith.constant 0 : index
    %c0_60 = arith.constant 0 : index
    %134 = vector.load %arg13[%c0_59, %c0_60] : memref<2x32xf32, #tpu.memory_space<vmem>>, vector<2x32xf32>
    tpu.vector_store %arg13[%c0_59, %c0_60], %96 {strides = array<i32>} : memref<2x32xf32, #tpu.memory_space<vmem>>, vector<2x32xf32>,
    %c2_i32 = arith.constant 2 : i32
    %c0_61 = arith.constant 0 : index
    %c0_62 = arith.constant 0 : index
    %135 = vector.load %arg12[%c0_61, %c0_62] : memref<2x34xf32, #tpu.memory_space<vmem>>, vector<2x34xf32>
    %136 = vector.extract_strided_slice %135 {offsets = [0, 0], sizes = [2, 2], strides = [1, 1]} : vector<2x34xf32> to vector<2x2xf32>
    %c0_63 = arith.constant 0 : index
    %c0_64 = arith.constant 0 : index
    %137 = vector.load %arg13[%c0_63, %c0_64] : memref<2x32xf32, #tpu.memory_space<vmem>>, vector<2x32xf32>
    %138 = arith.index_cast %c2_i32 : i32 to index
    %c0_65 = arith.constant 0 : index
    %c0_66 = arith.constant 0 : index
    %139 = vector.load %arg1[%138, %c0_65, %c0_66] : memref<8x2x130xf32, #tpu.memory_space<vmem>>, vector<1x2x130xf32>
    %140 = vector.shape_cast %139 : vector<1x2x130xf32> to vector<2x130xf32>
    %cst_67 = arith.constant dense<0.000000e+00> : vector<2x130xf32>
    %141 = tpu.matmul %135, %4, %cst_67 {dimension_numbers = #tpu.dot_dimension_numbers<[1], [0], [0], [1], [0, 0, 1, 1], [], []>, precision = #tpu.contract_precision<fp32>} : vector<2x34xf32>, vector<34x130xf32>, vector<2x130xf32> -> vector<2x130xf32>
    %142 = arith.addf %140, %141 : vector<2x130xf32>
    %143 = math.tanh %142 : vector<2x130xf32>
    %144 = arith.negf %142 : vector<2x130xf32>
    %145 = math.exp %144 : vector<2x130xf32>
    %cst_68 = arith.constant 1.000000e+00 : f32
    %146 = vector.broadcast %cst_68 : f32 to vector<2x130xf32>
    %147 = arith.addf %146, %145 : vector<2x130xf32>
    %148 = arith.divf %146, %147 : vector<2x130xf32>
    %149 = arith.select %12, %143, %148 : vector<2x130xi1>, vector<2x130xf32>
    %150 = vector.extract_strided_slice %149 {offsets = [0, 0], sizes = [2, 32], strides = [1, 1]} : vector<2x130xf32> to vector<2x32xf32>
    %151 = vector.extract_strided_slice %149 {offsets = [0, 32], sizes = [2, 32], strides = [1, 1]} : vector<2x130xf32> to vector<2x32xf32>
    %152 = vector.extract_strided_slice %149 {offsets = [0, 64], sizes = [2, 32], strides = [1, 1]} : vector<2x130xf32> to vector<2x32xf32>
    %153 = vector.extract_strided_slice %149 {offsets = [0, 96], sizes = [2, 32], strides = [1, 1]} : vector<2x130xf32> to vector<2x32xf32>
    %154 = vector.extract_strided_slice %142 {offsets = [0, 128], sizes = [2, 2], strides = [1, 1]} : vector<2x130xf32> to vector<2x2xf32>
    %155 = arith.mulf %151, %137 : vector<2x32xf32>
    %156 = arith.mulf %150, %152 : vector<2x32xf32>
    %157 = arith.addf %155, %156 : vector<2x32xf32>
    %158 = math.tanh %157 : vector<2x32xf32>
    %159 = arith.mulf %153, %158 : vector<2x32xf32>
    %160 = arith.index_cast %c2_i32 : i32 to index
    %c0_69 = arith.constant 0 : index
    %c0_70 = arith.constant 0 : index
    %161 = vector.load %arg2[%160, %c0_69, %c0_70] : memref<8x2x1xf32, #tpu.memory_space<vmem>>, vector<1x2x1xf32>
    %162 = vector.shape_cast %161 : vector<1x2x1xf32> to vector<2x1xf32>
    %163 = vector.broadcast %162 : vector<2x1xf32> to vector<2x2xf32>
    %164 = arith.mulf %163, %154 : vector<2x2xf32>
    %165 = arith.addf %136, %164 : vector<2x2xf32>
    %cst_71 = arith.constant dense<0.000000e+00> : vector<2x4xf32>
    %166 = tpu.matmul %159, %5, %cst_71 {dimension_numbers = #tpu.dot_dimension_numbers<[1], [0], [0], [1], [0, 0, 1, 1], [], []>, precision = #tpu.contract_precision<fp32>} : vector<2x32xf32>, vector<32x4xf32>, vector<2x4xf32> -> vector<2x4xf32>
    %167 = vector.broadcast %6 : vector<1x4xf32> to vector<2x4xf32>
    %168 = arith.addf %166, %167 : vector<2x4xf32>
    %169 = vector.extract_strided_slice %168 {offsets = [0, 0], sizes = [2, 2], strides = [1, 1]} : vector<2x4xf32> to vector<2x2xf32>
    %170 = arith.negf %169 : vector<2x2xf32>
    %171 = math.exp %170 : vector<2x2xf32>
    %cst_72 = arith.constant 1.000000e+00 : f32
    %172 = vector.broadcast %cst_72 : f32 to vector<2x2xf32>
    %173 = arith.addf %172, %171 : vector<2x2xf32>
    %174 = arith.divf %172, %173 : vector<2x2xf32>
    %175 = vector.extract_strided_slice %168 {offsets = [0, 2], sizes = [2, 2], strides = [1, 1]} : vector<2x4xf32> to vector<2x2xf32>
    %cst_73 = arith.constant 1.000000e+00 : f32
    %176 = vector.broadcast %cst_73 : f32 to vector<2x2xf32>
    %177 = arith.subf %176, %174 : vector<2x2xf32>
    %178 = arith.mulf %177, %165 : vector<2x2xf32>
    %179 = arith.mulf %174, %175 : vector<2x2xf32>
    %180 = arith.addf %178, %179 : vector<2x2xf32>
    %181 = arith.index_cast %c2_i32 : i32 to index
    %c0_74 = arith.constant 0 : index
    %c0_75 = arith.constant 0 : index
    %182 = vector.load %arg8[%181, %c0_74, %c0_75] : memref<8x2x2xf32, #tpu.memory_space<vmem>>, vector<1x2x2xf32>
    %183 = vector.shape_cast %182 : vector<1x2x2xf32> to vector<2x2xf32>
    %184 = vector.shape_cast %180 : vector<2x2xf32> to vector<1x2x2xf32>
    tpu.vector_store %arg8[%181, %c0_74, %c0_75], %184 {strides = array<i32>} : memref<8x2x2xf32, #tpu.memory_space<vmem>>, vector<1x2x2xf32>,
    %185 = arith.index_cast %c2_i32 : i32 to index
    %c0_76 = arith.constant 0 : index
    %c0_77 = arith.constant 0 : index
    %186 = vector.load %arg9[%185, %c0_76, %c0_77] : memref<8x2x32xf32, #tpu.memory_space<vmem>>, vector<1x2x32xf32>
    %187 = vector.shape_cast %186 : vector<1x2x32xf32> to vector<2x32xf32>
    %188 = vector.shape_cast %159 : vector<2x32xf32> to vector<1x2x32xf32>
    tpu.vector_store %arg9[%185, %c0_76, %c0_77], %188 {strides = array<i32>} : memref<8x2x32xf32, #tpu.memory_space<vmem>>, vector<1x2x32xf32>,
    %189 = arith.index_cast %c2_i32 : i32 to index
    %c0_78 = arith.constant 0 : index
    %c0_79 = arith.constant 0 : index
    %190 = vector.load %arg10[%189, %c0_78, %c0_79] : memref<8x2x2xf32, #tpu.memory_space<vmem>>, vector<1x2x2xf32>
    %191 = vector.shape_cast %190 : vector<1x2x2xf32> to vector<2x2xf32>
    %192 = vector.shape_cast %174 : vector<2x2xf32> to vector<1x2x2xf32>
    tpu.vector_store %arg10[%189, %c0_78, %c0_79], %192 {strides = array<i32>} : memref<8x2x2xf32, #tpu.memory_space<vmem>>, vector<1x2x2xf32>,
    %c0_80 = arith.constant 0 : index
    %c0_81 = arith.constant 0 : index
    %193 = vector.load %arg12[%c0_80, %c0_81] : memref<2x34xf32, #tpu.memory_space<vmem>>, vector<2x2xf32>
    tpu.vector_store %arg12[%c0_80, %c0_81], %180 {strides = array<i32>} : memref<2x34xf32, #tpu.memory_space<vmem>>, vector<2x2xf32>,
    %c0_82 = arith.constant 0 : index
    %c2_83 = arith.constant 2 : index
    %194 = vector.load %arg12[%c0_82, %c2_83] : memref<2x34xf32, #tpu.memory_space<vmem>>, vector<2x32xf32>
    tpu.vector_store %arg12[%c0_82, %c2_83], %159 {strides = array<i32>} : memref<2x34xf32, #tpu.memory_space<vmem>>, vector<2x32xf32>,
    %c0_84 = arith.constant 0 : index
    %c0_85 = arith.constant 0 : index
    %195 = vector.load %arg13[%c0_84, %c0_85] : memref<2x32xf32, #tpu.memory_space<vmem>>, vector<2x32xf32>
    tpu.vector_store %arg13[%c0_84, %c0_85], %157 {strides = array<i32>} : memref<2x32xf32, #tpu.memory_space<vmem>>, vector<2x32xf32>,
    %c3_i32 = arith.constant 3 : i32
    %c0_86 = arith.constant 0 : index
    %c0_87 = arith.constant 0 : index
    %196 = vector.load %arg12[%c0_86, %c0_87] : memref<2x34xf32, #tpu.memory_space<vmem>>, vector<2x34xf32>
    %197 = vector.extract_strided_slice %196 {offsets = [0, 0], sizes = [2, 2], strides = [1, 1]} : vector<2x34xf32> to vector<2x2xf32>
    %c0_88 = arith.constant 0 : index
    %c0_89 = arith.constant 0 : index
    %198 = vector.load %arg13[%c0_88, %c0_89] : memref<2x32xf32, #tpu.memory_space<vmem>>, vector<2x32xf32>
    %199 = arith.index_cast %c3_i32 : i32 to index
    %c0_90 = arith.constant 0 : index
    %c0_91 = arith.constant 0 : index
    %200 = vector.load %arg1[%199, %c0_90, %c0_91] : memref<8x2x130xf32, #tpu.memory_space<vmem>>, vector<1x2x130xf32>
    %201 = vector.shape_cast %200 : vector<1x2x130xf32> to vector<2x130xf32>
    %cst_92 = arith.constant dense<0.000000e+00> : vector<2x130xf32>
    %202 = tpu.matmul %196, %4, %cst_92 {dimension_numbers = #tpu.dot_dimension_numbers<[1], [0], [0], [1], [0, 0, 1, 1], [], []>, precision = #tpu.contract_precision<fp32>} : vector<2x34xf32>, vector<34x130xf32>, vector<2x130xf32> -> vector<2x130xf32>
    %203 = arith.addf %201, %202 : vector<2x130xf32>
    %204 = math.tanh %203 : vector<2x130xf32>
    %205 = arith.negf %203 : vector<2x130xf32>
    %206 = math.exp %205 : vector<2x130xf32>
    %cst_93 = arith.constant 1.000000e+00 : f32
    %207 = vector.broadcast %cst_93 : f32 to vector<2x130xf32>
    %208 = arith.addf %207, %206 : vector<2x130xf32>
    %209 = arith.divf %207, %208 : vector<2x130xf32>
    %210 = arith.select %12, %204, %209 : vector<2x130xi1>, vector<2x130xf32>
    %211 = vector.extract_strided_slice %210 {offsets = [0, 0], sizes = [2, 32], strides = [1, 1]} : vector<2x130xf32> to vector<2x32xf32>
    %212 = vector.extract_strided_slice %210 {offsets = [0, 32], sizes = [2, 32], strides = [1, 1]} : vector<2x130xf32> to vector<2x32xf32>
    %213 = vector.extract_strided_slice %210 {offsets = [0, 64], sizes = [2, 32], strides = [1, 1]} : vector<2x130xf32> to vector<2x32xf32>
    %214 = vector.extract_strided_slice %210 {offsets = [0, 96], sizes = [2, 32], strides = [1, 1]} : vector<2x130xf32> to vector<2x32xf32>
    %215 = vector.extract_strided_slice %203 {offsets = [0, 128], sizes = [2, 2], strides = [1, 1]} : vector<2x130xf32> to vector<2x2xf32>
    %216 = arith.mulf %212, %198 : vector<2x32xf32>
    %217 = arith.mulf %211, %213 : vector<2x32xf32>
    %218 = arith.addf %216, %217 : vector<2x32xf32>
    %219 = math.tanh %218 : vector<2x32xf32>
    %220 = arith.mulf %214, %219 : vector<2x32xf32>
    %221 = arith.index_cast %c3_i32 : i32 to index
    %c0_94 = arith.constant 0 : index
    %c0_95 = arith.constant 0 : index
    %222 = vector.load %arg2[%221, %c0_94, %c0_95] : memref<8x2x1xf32, #tpu.memory_space<vmem>>, vector<1x2x1xf32>
    %223 = vector.shape_cast %222 : vector<1x2x1xf32> to vector<2x1xf32>
    %224 = vector.broadcast %223 : vector<2x1xf32> to vector<2x2xf32>
    %225 = arith.mulf %224, %215 : vector<2x2xf32>
    %226 = arith.addf %197, %225 : vector<2x2xf32>
    %cst_96 = arith.constant dense<0.000000e+00> : vector<2x4xf32>
    %227 = tpu.matmul %220, %5, %cst_96 {dimension_numbers = #tpu.dot_dimension_numbers<[1], [0], [0], [1], [0, 0, 1, 1], [], []>, precision = #tpu.contract_precision<fp32>} : vector<2x32xf32>, vector<32x4xf32>, vector<2x4xf32> -> vector<2x4xf32>
    %228 = vector.broadcast %6 : vector<1x4xf32> to vector<2x4xf32>
    %229 = arith.addf %227, %228 : vector<2x4xf32>
    %230 = vector.extract_strided_slice %229 {offsets = [0, 0], sizes = [2, 2], strides = [1, 1]} : vector<2x4xf32> to vector<2x2xf32>
    %231 = arith.negf %230 : vector<2x2xf32>
    %232 = math.exp %231 : vector<2x2xf32>
    %cst_97 = arith.constant 1.000000e+00 : f32
    %233 = vector.broadcast %cst_97 : f32 to vector<2x2xf32>
    %234 = arith.addf %233, %232 : vector<2x2xf32>
    %235 = arith.divf %233, %234 : vector<2x2xf32>
    %236 = vector.extract_strided_slice %229 {offsets = [0, 2], sizes = [2, 2], strides = [1, 1]} : vector<2x4xf32> to vector<2x2xf32>
    %cst_98 = arith.constant 1.000000e+00 : f32
    %237 = vector.broadcast %cst_98 : f32 to vector<2x2xf32>
    %238 = arith.subf %237, %235 : vector<2x2xf32>
    %239 = arith.mulf %238, %226 : vector<2x2xf32>
    %240 = arith.mulf %235, %236 : vector<2x2xf32>
    %241 = arith.addf %239, %240 : vector<2x2xf32>
    %242 = arith.index_cast %c3_i32 : i32 to index
    %c0_99 = arith.constant 0 : index
    %c0_100 = arith.constant 0 : index
    %243 = vector.load %arg8[%242, %c0_99, %c0_100] : memref<8x2x2xf32, #tpu.memory_space<vmem>>, vector<1x2x2xf32>
    %244 = vector.shape_cast %243 : vector<1x2x2xf32> to vector<2x2xf32>
    %245 = vector.shape_cast %241 : vector<2x2xf32> to vector<1x2x2xf32>
    tpu.vector_store %arg8[%242, %c0_99, %c0_100], %245 {strides = array<i32>} : memref<8x2x2xf32, #tpu.memory_space<vmem>>, vector<1x2x2xf32>,
    %246 = arith.index_cast %c3_i32 : i32 to index
    %c0_101 = arith.constant 0 : index
    %c0_102 = arith.constant 0 : index
    %247 = vector.load %arg9[%246, %c0_101, %c0_102] : memref<8x2x32xf32, #tpu.memory_space<vmem>>, vector<1x2x32xf32>
    %248 = vector.shape_cast %247 : vector<1x2x32xf32> to vector<2x32xf32>
    %249 = vector.shape_cast %220 : vector<2x32xf32> to vector<1x2x32xf32>
    tpu.vector_store %arg9[%246, %c0_101, %c0_102], %249 {strides = array<i32>} : memref<8x2x32xf32, #tpu.memory_space<vmem>>, vector<1x2x32xf32>,
    %250 = arith.index_cast %c3_i32 : i32 to index
    %c0_103 = arith.constant 0 : index
    %c0_104 = arith.constant 0 : index
    %251 = vector.load %arg10[%250, %c0_103, %c0_104] : memref<8x2x2xf32, #tpu.memory_space<vmem>>, vector<1x2x2xf32>
    %252 = vector.shape_cast %251 : vector<1x2x2xf32> to vector<2x2xf32>
    %253 = vector.shape_cast %235 : vector<2x2xf32> to vector<1x2x2xf32>
    tpu.vector_store %arg10[%250, %c0_103, %c0_104], %253 {strides = array<i32>} : memref<8x2x2xf32, #tpu.memory_space<vmem>>, vector<1x2x2xf32>,
    %c0_105 = arith.constant 0 : index
    %c0_106 = arith.constant 0 : index
    %254 = vector.load %arg12[%c0_105, %c0_106] : memref<2x34xf32, #tpu.memory_space<vmem>>, vector<2x2xf32>
    tpu.vector_store %arg12[%c0_105, %c0_106], %241 {strides = array<i32>} : memref<2x34xf32, #tpu.memory_space<vmem>>, vector<2x2xf32>,
    %c0_107 = arith.constant 0 : index
    %c2_108 = arith.constant 2 : index
    %255 = vector.load %arg12[%c0_107, %c2_108] : memref<2x34xf32, #tpu.memory_space<vmem>>, vector<2x32xf32>
    tpu.vector_store %arg12[%c0_107, %c2_108], %220 {strides = array<i32>} : memref<2x34xf32, #tpu.memory_space<vmem>>, vector<2x32xf32>,
    %c0_109 = arith.constant 0 : index
    %c0_110 = arith.constant 0 : index
    %256 = vector.load %arg13[%c0_109, %c0_110] : memref<2x32xf32, #tpu.memory_space<vmem>>, vector<2x32xf32>
    tpu.vector_store %arg13[%c0_109, %c0_110], %218 {strides = array<i32>} : memref<2x32xf32, #tpu.memory_space<vmem>>, vector<2x32xf32>,
    %c4_i32 = arith.constant 4 : i32
    %c0_111 = arith.constant 0 : index
    %c0_112 = arith.constant 0 : index
    %257 = vector.load %arg12[%c0_111, %c0_112] : memref<2x34xf32, #tpu.memory_space<vmem>>, vector<2x34xf32>
    %258 = vector.extract_strided_slice %257 {offsets = [0, 0], sizes = [2, 2], strides = [1, 1]} : vector<2x34xf32> to vector<2x2xf32>
    %c0_113 = arith.constant 0 : index
    %c0_114 = arith.constant 0 : index
    %259 = vector.load %arg13[%c0_113, %c0_114] : memref<2x32xf32, #tpu.memory_space<vmem>>, vector<2x32xf32>
    %260 = arith.index_cast %c4_i32 : i32 to index
    %c0_115 = arith.constant 0 : index
    %c0_116 = arith.constant 0 : index
    %261 = vector.load %arg1[%260, %c0_115, %c0_116] : memref<8x2x130xf32, #tpu.memory_space<vmem>>, vector<1x2x130xf32>
    %262 = vector.shape_cast %261 : vector<1x2x130xf32> to vector<2x130xf32>
    %cst_117 = arith.constant dense<0.000000e+00> : vector<2x130xf32>
    %263 = tpu.matmul %257, %4, %cst_117 {dimension_numbers = #tpu.dot_dimension_numbers<[1], [0], [0], [1], [0, 0, 1, 1], [], []>, precision = #tpu.contract_precision<fp32>} : vector<2x34xf32>, vector<34x130xf32>, vector<2x130xf32> -> vector<2x130xf32>
    %264 = arith.addf %262, %263 : vector<2x130xf32>
    %265 = math.tanh %264 : vector<2x130xf32>
    %266 = arith.negf %264 : vector<2x130xf32>
    %267 = math.exp %266 : vector<2x130xf32>
    %cst_118 = arith.constant 1.000000e+00 : f32
    %268 = vector.broadcast %cst_118 : f32 to vector<2x130xf32>
    %269 = arith.addf %268, %267 : vector<2x130xf32>
    %270 = arith.divf %268, %269 : vector<2x130xf32>
    %271 = arith.select %12, %265, %270 : vector<2x130xi1>, vector<2x130xf32>
    %272 = vector.extract_strided_slice %271 {offsets = [0, 0], sizes = [2, 32], strides = [1, 1]} : vector<2x130xf32> to vector<2x32xf32>
    %273 = vector.extract_strided_slice %271 {offsets = [0, 32], sizes = [2, 32], strides = [1, 1]} : vector<2x130xf32> to vector<2x32xf32>
    %274 = vector.extract_strided_slice %271 {offsets = [0, 64], sizes = [2, 32], strides = [1, 1]} : vector<2x130xf32> to vector<2x32xf32>
    %275 = vector.extract_strided_slice %271 {offsets = [0, 96], sizes = [2, 32], strides = [1, 1]} : vector<2x130xf32> to vector<2x32xf32>
    %276 = vector.extract_strided_slice %264 {offsets = [0, 128], sizes = [2, 2], strides = [1, 1]} : vector<2x130xf32> to vector<2x2xf32>
    %277 = arith.mulf %273, %259 : vector<2x32xf32>
    %278 = arith.mulf %272, %274 : vector<2x32xf32>
    %279 = arith.addf %277, %278 : vector<2x32xf32>
    %280 = math.tanh %279 : vector<2x32xf32>
    %281 = arith.mulf %275, %280 : vector<2x32xf32>
    %282 = arith.index_cast %c4_i32 : i32 to index
    %c0_119 = arith.constant 0 : index
    %c0_120 = arith.constant 0 : index
    %283 = vector.load %arg2[%282, %c0_119, %c0_120] : memref<8x2x1xf32, #tpu.memory_space<vmem>>, vector<1x2x1xf32>
    %284 = vector.shape_cast %283 : vector<1x2x1xf32> to vector<2x1xf32>
    %285 = vector.broadcast %284 : vector<2x1xf32> to vector<2x2xf32>
    %286 = arith.mulf %285, %276 : vector<2x2xf32>
    %287 = arith.addf %258, %286 : vector<2x2xf32>
    %cst_121 = arith.constant dense<0.000000e+00> : vector<2x4xf32>
    %288 = tpu.matmul %281, %5, %cst_121 {dimension_numbers = #tpu.dot_dimension_numbers<[1], [0], [0], [1], [0, 0, 1, 1], [], []>, precision = #tpu.contract_precision<fp32>} : vector<2x32xf32>, vector<32x4xf32>, vector<2x4xf32> -> vector<2x4xf32>
    %289 = vector.broadcast %6 : vector<1x4xf32> to vector<2x4xf32>
    %290 = arith.addf %288, %289 : vector<2x4xf32>
    %291 = vector.extract_strided_slice %290 {offsets = [0, 0], sizes = [2, 2], strides = [1, 1]} : vector<2x4xf32> to vector<2x2xf32>
    %292 = arith.negf %291 : vector<2x2xf32>
    %293 = math.exp %292 : vector<2x2xf32>
    %cst_122 = arith.constant 1.000000e+00 : f32
    %294 = vector.broadcast %cst_122 : f32 to vector<2x2xf32>
    %295 = arith.addf %294, %293 : vector<2x2xf32>
    %296 = arith.divf %294, %295 : vector<2x2xf32>
    %297 = vector.extract_strided_slice %290 {offsets = [0, 2], sizes = [2, 2], strides = [1, 1]} : vector<2x4xf32> to vector<2x2xf32>
    %cst_123 = arith.constant 1.000000e+00 : f32
    %298 = vector.broadcast %cst_123 : f32 to vector<2x2xf32>
    %299 = arith.subf %298, %296 : vector<2x2xf32>
    %300 = arith.mulf %299, %287 : vector<2x2xf32>
    %301 = arith.mulf %296, %297 : vector<2x2xf32>
    %302 = arith.addf %300, %301 : vector<2x2xf32>
    %303 = arith.index_cast %c4_i32 : i32 to index
    %c0_124 = arith.constant 0 : index
    %c0_125 = arith.constant 0 : index
    %304 = vector.load %arg8[%303, %c0_124, %c0_125] : memref<8x2x2xf32, #tpu.memory_space<vmem>>, vector<1x2x2xf32>
    %305 = vector.shape_cast %304 : vector<1x2x2xf32> to vector<2x2xf32>
    %306 = vector.shape_cast %302 : vector<2x2xf32> to vector<1x2x2xf32>
    tpu.vector_store %arg8[%303, %c0_124, %c0_125], %306 {strides = array<i32>} : memref<8x2x2xf32, #tpu.memory_space<vmem>>, vector<1x2x2xf32>,
    %307 = arith.index_cast %c4_i32 : i32 to index
    %c0_126 = arith.constant 0 : index
    %c0_127 = arith.constant 0 : index
    %308 = vector.load %arg9[%307, %c0_126, %c0_127] : memref<8x2x32xf32, #tpu.memory_space<vmem>>, vector<1x2x32xf32>
    %309 = vector.shape_cast %308 : vector<1x2x32xf32> to vector<2x32xf32>
    %310 = vector.shape_cast %281 : vector<2x32xf32> to vector<1x2x32xf32>
    tpu.vector_store %arg9[%307, %c0_126, %c0_127], %310 {strides = array<i32>} : memref<8x2x32xf32, #tpu.memory_space<vmem>>, vector<1x2x32xf32>,
    %311 = arith.index_cast %c4_i32 : i32 to index
    %c0_128 = arith.constant 0 : index
    %c0_129 = arith.constant 0 : index
    %312 = vector.load %arg10[%311, %c0_128, %c0_129] : memref<8x2x2xf32, #tpu.memory_space<vmem>>, vector<1x2x2xf32>
    %313 = vector.shape_cast %312 : vector<1x2x2xf32> to vector<2x2xf32>
    %314 = vector.shape_cast %296 : vector<2x2xf32> to vector<1x2x2xf32>
    tpu.vector_store %arg10[%311, %c0_128, %c0_129], %314 {strides = array<i32>} : memref<8x2x2xf32, #tpu.memory_space<vmem>>, vector<1x2x2xf32>,
    %c0_130 = arith.constant 0 : index
    %c0_131 = arith.constant 0 : index
    %315 = vector.load %arg12[%c0_130, %c0_131] : memref<2x34xf32, #tpu.memory_space<vmem>>, vector<2x2xf32>
    tpu.vector_store %arg12[%c0_130, %c0_131], %302 {strides = array<i32>} : memref<2x34xf32, #tpu.memory_space<vmem>>, vector<2x2xf32>,
    %c0_132 = arith.constant 0 : index
    %c2_133 = arith.constant 2 : index
    %316 = vector.load %arg12[%c0_132, %c2_133] : memref<2x34xf32, #tpu.memory_space<vmem>>, vector<2x32xf32>
    tpu.vector_store %arg12[%c0_132, %c2_133], %281 {strides = array<i32>} : memref<2x34xf32, #tpu.memory_space<vmem>>, vector<2x32xf32>,
    %c0_134 = arith.constant 0 : index
    %c0_135 = arith.constant 0 : index
    %317 = vector.load %arg13[%c0_134, %c0_135] : memref<2x32xf32, #tpu.memory_space<vmem>>, vector<2x32xf32>
    tpu.vector_store %arg13[%c0_134, %c0_135], %279 {strides = array<i32>} : memref<2x32xf32, #tpu.memory_space<vmem>>, vector<2x32xf32>,
    %c5_i32 = arith.constant 5 : i32
    %c0_136 = arith.constant 0 : index
    %c0_137 = arith.constant 0 : index
    %318 = vector.load %arg12[%c0_136, %c0_137] : memref<2x34xf32, #tpu.memory_space<vmem>>, vector<2x34xf32>
    %319 = vector.extract_strided_slice %318 {offsets = [0, 0], sizes = [2, 2], strides = [1, 1]} : vector<2x34xf32> to vector<2x2xf32>
    %c0_138 = arith.constant 0 : index
    %c0_139 = arith.constant 0 : index
    %320 = vector.load %arg13[%c0_138, %c0_139] : memref<2x32xf32, #tpu.memory_space<vmem>>, vector<2x32xf32>
    %321 = arith.index_cast %c5_i32 : i32 to index
    %c0_140 = arith.constant 0 : index
    %c0_141 = arith.constant 0 : index
    %322 = vector.load %arg1[%321, %c0_140, %c0_141] : memref<8x2x130xf32, #tpu.memory_space<vmem>>, vector<1x2x130xf32>
    %323 = vector.shape_cast %322 : vector<1x2x130xf32> to vector<2x130xf32>
    %cst_142 = arith.constant dense<0.000000e+00> : vector<2x130xf32>
    %324 = tpu.matmul %318, %4, %cst_142 {dimension_numbers = #tpu.dot_dimension_numbers<[1], [0], [0], [1], [0, 0, 1, 1], [], []>, precision = #tpu.contract_precision<fp32>} : vector<2x34xf32>, vector<34x130xf32>, vector<2x130xf32> -> vector<2x130xf32>
    %325 = arith.addf %323, %324 : vector<2x130xf32>
    %326 = math.tanh %325 : vector<2x130xf32>
    %327 = arith.negf %325 : vector<2x130xf32>
    %328 = math.exp %327 : vector<2x130xf32>
    %cst_143 = arith.constant 1.000000e+00 : f32
    %329 = vector.broadcast %cst_143 : f32 to vector<2x130xf32>
    %330 = arith.addf %329, %328 : vector<2x130xf32>
    %331 = arith.divf %329, %330 : vector<2x130xf32>
    %332 = arith.select %12, %326, %331 : vector<2x130xi1>, vector<2x130xf32>
    %333 = vector.extract_strided_slice %332 {offsets = [0, 0], sizes = [2, 32], strides = [1, 1]} : vector<2x130xf32> to vector<2x32xf32>
    %334 = vector.extract_strided_slice %332 {offsets = [0, 32], sizes = [2, 32], strides = [1, 1]} : vector<2x130xf32> to vector<2x32xf32>
    %335 = vector.extract_strided_slice %332 {offsets = [0, 64], sizes = [2, 32], strides = [1, 1]} : vector<2x130xf32> to vector<2x32xf32>
    %336 = vector.extract_strided_slice %332 {offsets = [0, 96], sizes = [2, 32], strides = [1, 1]} : vector<2x130xf32> to vector<2x32xf32>
    %337 = vector.extract_strided_slice %325 {offsets = [0, 128], sizes = [2, 2], strides = [1, 1]} : vector<2x130xf32> to vector<2x2xf32>
    %338 = arith.mulf %334, %320 : vector<2x32xf32>
    %339 = arith.mulf %333, %335 : vector<2x32xf32>
    %340 = arith.addf %338, %339 : vector<2x32xf32>
    %341 = math.tanh %340 : vector<2x32xf32>
    %342 = arith.mulf %336, %341 : vector<2x32xf32>
    %343 = arith.index_cast %c5_i32 : i32 to index
    %c0_144 = arith.constant 0 : index
    %c0_145 = arith.constant 0 : index
    %344 = vector.load %arg2[%343, %c0_144, %c0_145] : memref<8x2x1xf32, #tpu.memory_space<vmem>>, vector<1x2x1xf32>
    %345 = vector.shape_cast %344 : vector<1x2x1xf32> to vector<2x1xf32>
    %346 = vector.broadcast %345 : vector<2x1xf32> to vector<2x2xf32>
    %347 = arith.mulf %346, %337 : vector<2x2xf32>
    %348 = arith.addf %319, %347 : vector<2x2xf32>
    %cst_146 = arith.constant dense<0.000000e+00> : vector<2x4xf32>
    %349 = tpu.matmul %342, %5, %cst_146 {dimension_numbers = #tpu.dot_dimension_numbers<[1], [0], [0], [1], [0, 0, 1, 1], [], []>, precision = #tpu.contract_precision<fp32>} : vector<2x32xf32>, vector<32x4xf32>, vector<2x4xf32> -> vector<2x4xf32>
    %350 = vector.broadcast %6 : vector<1x4xf32> to vector<2x4xf32>
    %351 = arith.addf %349, %350 : vector<2x4xf32>
    %352 = vector.extract_strided_slice %351 {offsets = [0, 0], sizes = [2, 2], strides = [1, 1]} : vector<2x4xf32> to vector<2x2xf32>
    %353 = arith.negf %352 : vector<2x2xf32>
    %354 = math.exp %353 : vector<2x2xf32>
    %cst_147 = arith.constant 1.000000e+00 : f32
    %355 = vector.broadcast %cst_147 : f32 to vector<2x2xf32>
    %356 = arith.addf %355, %354 : vector<2x2xf32>
    %357 = arith.divf %355, %356 : vector<2x2xf32>
    %358 = vector.extract_strided_slice %351 {offsets = [0, 2], sizes = [2, 2], strides = [1, 1]} : vector<2x4xf32> to vector<2x2xf32>
    %cst_148 = arith.constant 1.000000e+00 : f32
    %359 = vector.broadcast %cst_148 : f32 to vector<2x2xf32>
    %360 = arith.subf %359, %357 : vector<2x2xf32>
    %361 = arith.mulf %360, %348 : vector<2x2xf32>
    %362 = arith.mulf %357, %358 : vector<2x2xf32>
    %363 = arith.addf %361, %362 : vector<2x2xf32>
    %364 = arith.index_cast %c5_i32 : i32 to index
    %c0_149 = arith.constant 0 : index
    %c0_150 = arith.constant 0 : index
    %365 = vector.load %arg8[%364, %c0_149, %c0_150] : memref<8x2x2xf32, #tpu.memory_space<vmem>>, vector<1x2x2xf32>
    %366 = vector.shape_cast %365 : vector<1x2x2xf32> to vector<2x2xf32>
    %367 = vector.shape_cast %363 : vector<2x2xf32> to vector<1x2x2xf32>
    tpu.vector_store %arg8[%364, %c0_149, %c0_150], %367 {strides = array<i32>} : memref<8x2x2xf32, #tpu.memory_space<vmem>>, vector<1x2x2xf32>,
    %368 = arith.index_cast %c5_i32 : i32 to index
    %c0_151 = arith.constant 0 : index
    %c0_152 = arith.constant 0 : index
    %369 = vector.load %arg9[%368, %c0_151, %c0_152] : memref<8x2x32xf32, #tpu.memory_space<vmem>>, vector<1x2x32xf32>
    %370 = vector.shape_cast %369 : vector<1x2x32xf32> to vector<2x32xf32>
    %371 = vector.shape_cast %342 : vector<2x32xf32> to vector<1x2x32xf32>
    tpu.vector_store %arg9[%368, %c0_151, %c0_152], %371 {strides = array<i32>} : memref<8x2x32xf32, #tpu.memory_space<vmem>>, vector<1x2x32xf32>,
    %372 = arith.index_cast %c5_i32 : i32 to index
    %c0_153 = arith.constant 0 : index
    %c0_154 = arith.constant 0 : index
    %373 = vector.load %arg10[%372, %c0_153, %c0_154] : memref<8x2x2xf32, #tpu.memory_space<vmem>>, vector<1x2x2xf32>
    %374 = vector.shape_cast %373 : vector<1x2x2xf32> to vector<2x2xf32>
    %375 = vector.shape_cast %357 : vector<2x2xf32> to vector<1x2x2xf32>
    tpu.vector_store %arg10[%372, %c0_153, %c0_154], %375 {strides = array<i32>} : memref<8x2x2xf32, #tpu.memory_space<vmem>>, vector<1x2x2xf32>,
    %c0_155 = arith.constant 0 : index
    %c0_156 = arith.constant 0 : index
    %376 = vector.load %arg12[%c0_155, %c0_156] : memref<2x34xf32, #tpu.memory_space<vmem>>, vector<2x2xf32>
    tpu.vector_store %arg12[%c0_155, %c0_156], %363 {strides = array<i32>} : memref<2x34xf32, #tpu.memory_space<vmem>>, vector<2x2xf32>,
    %c0_157 = arith.constant 0 : index
    %c2_158 = arith.constant 2 : index
    %377 = vector.load %arg12[%c0_157, %c2_158] : memref<2x34xf32, #tpu.memory_space<vmem>>, vector<2x32xf32>
    tpu.vector_store %arg12[%c0_157, %c2_158], %342 {strides = array<i32>} : memref<2x34xf32, #tpu.memory_space<vmem>>, vector<2x32xf32>,
    %c0_159 = arith.constant 0 : index
    %c0_160 = arith.constant 0 : index
    %378 = vector.load %arg13[%c0_159, %c0_160] : memref<2x32xf32, #tpu.memory_space<vmem>>, vector<2x32xf32>
    tpu.vector_store %arg13[%c0_159, %c0_160], %340 {strides = array<i32>} : memref<2x32xf32, #tpu.memory_space<vmem>>, vector<2x32xf32>,
    %c6_i32 = arith.constant 6 : i32
    %c0_161 = arith.constant 0 : index
    %c0_162 = arith.constant 0 : index
    %379 = vector.load %arg12[%c0_161, %c0_162] : memref<2x34xf32, #tpu.memory_space<vmem>>, vector<2x34xf32>
    %380 = vector.extract_strided_slice %379 {offsets = [0, 0], sizes = [2, 2], strides = [1, 1]} : vector<2x34xf32> to vector<2x2xf32>
    %c0_163 = arith.constant 0 : index
    %c0_164 = arith.constant 0 : index
    %381 = vector.load %arg13[%c0_163, %c0_164] : memref<2x32xf32, #tpu.memory_space<vmem>>, vector<2x32xf32>
    %382 = arith.index_cast %c6_i32 : i32 to index
    %c0_165 = arith.constant 0 : index
    %c0_166 = arith.constant 0 : index
    %383 = vector.load %arg1[%382, %c0_165, %c0_166] : memref<8x2x130xf32, #tpu.memory_space<vmem>>, vector<1x2x130xf32>
    %384 = vector.shape_cast %383 : vector<1x2x130xf32> to vector<2x130xf32>
    %cst_167 = arith.constant dense<0.000000e+00> : vector<2x130xf32>
    %385 = tpu.matmul %379, %4, %cst_167 {dimension_numbers = #tpu.dot_dimension_numbers<[1], [0], [0], [1], [0, 0, 1, 1], [], []>, precision = #tpu.contract_precision<fp32>} : vector<2x34xf32>, vector<34x130xf32>, vector<2x130xf32> -> vector<2x130xf32>
    %386 = arith.addf %384, %385 : vector<2x130xf32>
    %387 = math.tanh %386 : vector<2x130xf32>
    %388 = arith.negf %386 : vector<2x130xf32>
    %389 = math.exp %388 : vector<2x130xf32>
    %cst_168 = arith.constant 1.000000e+00 : f32
    %390 = vector.broadcast %cst_168 : f32 to vector<2x130xf32>
    %391 = arith.addf %390, %389 : vector<2x130xf32>
    %392 = arith.divf %390, %391 : vector<2x130xf32>
    %393 = arith.select %12, %387, %392 : vector<2x130xi1>, vector<2x130xf32>
    %394 = vector.extract_strided_slice %393 {offsets = [0, 0], sizes = [2, 32], strides = [1, 1]} : vector<2x130xf32> to vector<2x32xf32>
    %395 = vector.extract_strided_slice %393 {offsets = [0, 32], sizes = [2, 32], strides = [1, 1]} : vector<2x130xf32> to vector<2x32xf32>
    %396 = vector.extract_strided_slice %393 {offsets = [0, 64], sizes = [2, 32], strides = [1, 1]} : vector<2x130xf32> to vector<2x32xf32>
    %397 = vector.extract_strided_slice %393 {offsets = [0, 96], sizes = [2, 32], strides = [1, 1]} : vector<2x130xf32> to vector<2x32xf32>
    %398 = vector.extract_strided_slice %386 {offsets = [0, 128], sizes = [2, 2], strides = [1, 1]} : vector<2x130xf32> to vector<2x2xf32>
    %399 = arith.mulf %395, %381 : vector<2x32xf32>
    %400 = arith.mulf %394, %396 : vector<2x32xf32>
    %401 = arith.addf %399, %400 : vector<2x32xf32>
    %402 = math.tanh %401 : vector<2x32xf32>
    %403 = arith.mulf %397, %402 : vector<2x32xf32>
    %404 = arith.index_cast %c6_i32 : i32 to index
    %c0_169 = arith.constant 0 : index
    %c0_170 = arith.constant 0 : index
    %405 = vector.load %arg2[%404, %c0_169, %c0_170] : memref<8x2x1xf32, #tpu.memory_space<vmem>>, vector<1x2x1xf32>
    %406 = vector.shape_cast %405 : vector<1x2x1xf32> to vector<2x1xf32>
    %407 = vector.broadcast %406 : vector<2x1xf32> to vector<2x2xf32>
    %408 = arith.mulf %407, %398 : vector<2x2xf32>
    %409 = arith.addf %380, %408 : vector<2x2xf32>
    %cst_171 = arith.constant dense<0.000000e+00> : vector<2x4xf32>
    %410 = tpu.matmul %403, %5, %cst_171 {dimension_numbers = #tpu.dot_dimension_numbers<[1], [0], [0], [1], [0, 0, 1, 1], [], []>, precision = #tpu.contract_precision<fp32>} : vector<2x32xf32>, vector<32x4xf32>, vector<2x4xf32> -> vector<2x4xf32>
    %411 = vector.broadcast %6 : vector<1x4xf32> to vector<2x4xf32>
    %412 = arith.addf %410, %411 : vector<2x4xf32>
    %413 = vector.extract_strided_slice %412 {offsets = [0, 0], sizes = [2, 2], strides = [1, 1]} : vector<2x4xf32> to vector<2x2xf32>
    %414 = arith.negf %413 : vector<2x2xf32>
    %415 = math.exp %414 : vector<2x2xf32>
    %cst_172 = arith.constant 1.000000e+00 : f32
    %416 = vector.broadcast %cst_172 : f32 to vector<2x2xf32>
    %417 = arith.addf %416, %415 : vector<2x2xf32>
    %418 = arith.divf %416, %417 : vector<2x2xf32>
    %419 = vector.extract_strided_slice %412 {offsets = [0, 2], sizes = [2, 2], strides = [1, 1]} : vector<2x4xf32> to vector<2x2xf32>
    %cst_173 = arith.constant 1.000000e+00 : f32
    %420 = vector.broadcast %cst_173 : f32 to vector<2x2xf32>
    %421 = arith.subf %420, %418 : vector<2x2xf32>
    %422 = arith.mulf %421, %409 : vector<2x2xf32>
    %423 = arith.mulf %418, %419 : vector<2x2xf32>
    %424 = arith.addf %422, %423 : vector<2x2xf32>
    %425 = arith.index_cast %c6_i32 : i32 to index
    %c0_174 = arith.constant 0 : index
    %c0_175 = arith.constant 0 : index
    %426 = vector.load %arg8[%425, %c0_174, %c0_175] : memref<8x2x2xf32, #tpu.memory_space<vmem>>, vector<1x2x2xf32>
    %427 = vector.shape_cast %426 : vector<1x2x2xf32> to vector<2x2xf32>
    %428 = vector.shape_cast %424 : vector<2x2xf32> to vector<1x2x2xf32>
    tpu.vector_store %arg8[%425, %c0_174, %c0_175], %428 {strides = array<i32>} : memref<8x2x2xf32, #tpu.memory_space<vmem>>, vector<1x2x2xf32>,
    %429 = arith.index_cast %c6_i32 : i32 to index
    %c0_176 = arith.constant 0 : index
    %c0_177 = arith.constant 0 : index
    %430 = vector.load %arg9[%429, %c0_176, %c0_177] : memref<8x2x32xf32, #tpu.memory_space<vmem>>, vector<1x2x32xf32>
    %431 = vector.shape_cast %430 : vector<1x2x32xf32> to vector<2x32xf32>
    %432 = vector.shape_cast %403 : vector<2x32xf32> to vector<1x2x32xf32>
    tpu.vector_store %arg9[%429, %c0_176, %c0_177], %432 {strides = array<i32>} : memref<8x2x32xf32, #tpu.memory_space<vmem>>, vector<1x2x32xf32>,
    %433 = arith.index_cast %c6_i32 : i32 to index
    %c0_178 = arith.constant 0 : index
    %c0_179 = arith.constant 0 : index
    %434 = vector.load %arg10[%433, %c0_178, %c0_179] : memref<8x2x2xf32, #tpu.memory_space<vmem>>, vector<1x2x2xf32>
    %435 = vector.shape_cast %434 : vector<1x2x2xf32> to vector<2x2xf32>
    %436 = vector.shape_cast %418 : vector<2x2xf32> to vector<1x2x2xf32>
    tpu.vector_store %arg10[%433, %c0_178, %c0_179], %436 {strides = array<i32>} : memref<8x2x2xf32, #tpu.memory_space<vmem>>, vector<1x2x2xf32>,
    %c0_180 = arith.constant 0 : index
    %c0_181 = arith.constant 0 : index
    %437 = vector.load %arg12[%c0_180, %c0_181] : memref<2x34xf32, #tpu.memory_space<vmem>>, vector<2x2xf32>
    tpu.vector_store %arg12[%c0_180, %c0_181], %424 {strides = array<i32>} : memref<2x34xf32, #tpu.memory_space<vmem>>, vector<2x2xf32>,
    %c0_182 = arith.constant 0 : index
    %c2_183 = arith.constant 2 : index
    %438 = vector.load %arg12[%c0_182, %c2_183] : memref<2x34xf32, #tpu.memory_space<vmem>>, vector<2x32xf32>
    tpu.vector_store %arg12[%c0_182, %c2_183], %403 {strides = array<i32>} : memref<2x34xf32, #tpu.memory_space<vmem>>, vector<2x32xf32>,
    %c0_184 = arith.constant 0 : index
    %c0_185 = arith.constant 0 : index
    %439 = vector.load %arg13[%c0_184, %c0_185] : memref<2x32xf32, #tpu.memory_space<vmem>>, vector<2x32xf32>
    tpu.vector_store %arg13[%c0_184, %c0_185], %401 {strides = array<i32>} : memref<2x32xf32, #tpu.memory_space<vmem>>, vector<2x32xf32>,
    %c7_i32 = arith.constant 7 : i32
    %c0_186 = arith.constant 0 : index
    %c0_187 = arith.constant 0 : index
    %440 = vector.load %arg12[%c0_186, %c0_187] : memref<2x34xf32, #tpu.memory_space<vmem>>, vector<2x34xf32>
    %441 = vector.extract_strided_slice %440 {offsets = [0, 0], sizes = [2, 2], strides = [1, 1]} : vector<2x34xf32> to vector<2x2xf32>
    %c0_188 = arith.constant 0 : index
    %c0_189 = arith.constant 0 : index
    %442 = vector.load %arg13[%c0_188, %c0_189] : memref<2x32xf32, #tpu.memory_space<vmem>>, vector<2x32xf32>
    %443 = arith.index_cast %c7_i32 : i32 to index
    %c0_190 = arith.constant 0 : index
    %c0_191 = arith.constant 0 : index
    %444 = vector.load %arg1[%443, %c0_190, %c0_191] : memref<8x2x130xf32, #tpu.memory_space<vmem>>, vector<1x2x130xf32>
    %445 = vector.shape_cast %444 : vector<1x2x130xf32> to vector<2x130xf32>
    %cst_192 = arith.constant dense<0.000000e+00> : vector<2x130xf32>
    %446 = tpu.matmul %440, %4, %cst_192 {dimension_numbers = #tpu.dot_dimension_numbers<[1], [0], [0], [1], [0, 0, 1, 1], [], []>, precision = #tpu.contract_precision<fp32>} : vector<2x34xf32>, vector<34x130xf32>, vector<2x130xf32> -> vector<2x130xf32>
    %447 = arith.addf %445, %446 : vector<2x130xf32>
    %448 = math.tanh %447 : vector<2x130xf32>
    %449 = arith.negf %447 : vector<2x130xf32>
    %450 = math.exp %449 : vector<2x130xf32>
    %cst_193 = arith.constant 1.000000e+00 : f32
    %451 = vector.broadcast %cst_193 : f32 to vector<2x130xf32>
    %452 = arith.addf %451, %450 : vector<2x130xf32>
    %453 = arith.divf %451, %452 : vector<2x130xf32>
    %454 = arith.select %12, %448, %453 : vector<2x130xi1>, vector<2x130xf32>
    %455 = vector.extract_strided_slice %454 {offsets = [0, 0], sizes = [2, 32], strides = [1, 1]} : vector<2x130xf32> to vector<2x32xf32>
    %456 = vector.extract_strided_slice %454 {offsets = [0, 32], sizes = [2, 32], strides = [1, 1]} : vector<2x130xf32> to vector<2x32xf32>
    %457 = vector.extract_strided_slice %454 {offsets = [0, 64], sizes = [2, 32], strides = [1, 1]} : vector<2x130xf32> to vector<2x32xf32>
    %458 = vector.extract_strided_slice %454 {offsets = [0, 96], sizes = [2, 32], strides = [1, 1]} : vector<2x130xf32> to vector<2x32xf32>
    %459 = vector.extract_strided_slice %447 {offsets = [0, 128], sizes = [2, 2], strides = [1, 1]} : vector<2x130xf32> to vector<2x2xf32>
    %460 = arith.mulf %456, %442 : vector<2x32xf32>
    %461 = arith.mulf %455, %457 : vector<2x32xf32>
    %462 = arith.addf %460, %461 : vector<2x32xf32>
    %463 = math.tanh %462 : vector<2x32xf32>
    %464 = arith.mulf %458, %463 : vector<2x32xf32>
    %465 = arith.index_cast %c7_i32 : i32 to index
    %c0_194 = arith.constant 0 : index
    %c0_195 = arith.constant 0 : index
    %466 = vector.load %arg2[%465, %c0_194, %c0_195] : memref<8x2x1xf32, #tpu.memory_space<vmem>>, vector<1x2x1xf32>
    %467 = vector.shape_cast %466 : vector<1x2x1xf32> to vector<2x1xf32>
    %468 = vector.broadcast %467 : vector<2x1xf32> to vector<2x2xf32>
    %469 = arith.mulf %468, %459 : vector<2x2xf32>
    %470 = arith.addf %441, %469 : vector<2x2xf32>
    %cst_196 = arith.constant dense<0.000000e+00> : vector<2x4xf32>
    %471 = tpu.matmul %464, %5, %cst_196 {dimension_numbers = #tpu.dot_dimension_numbers<[1], [0], [0], [1], [0, 0, 1, 1], [], []>, precision = #tpu.contract_precision<fp32>} : vector<2x32xf32>, vector<32x4xf32>, vector<2x4xf32> -> vector<2x4xf32>
    %472 = vector.broadcast %6 : vector<1x4xf32> to vector<2x4xf32>
    %473 = arith.addf %471, %472 : vector<2x4xf32>
    %474 = vector.extract_strided_slice %473 {offsets = [0, 0], sizes = [2, 2], strides = [1, 1]} : vector<2x4xf32> to vector<2x2xf32>
    %475 = arith.negf %474 : vector<2x2xf32>
    %476 = math.exp %475 : vector<2x2xf32>
    %cst_197 = arith.constant 1.000000e+00 : f32
    %477 = vector.broadcast %cst_197 : f32 to vector<2x2xf32>
    %478 = arith.addf %477, %476 : vector<2x2xf32>
    %479 = arith.divf %477, %478 : vector<2x2xf32>
    %480 = vector.extract_strided_slice %473 {offsets = [0, 2], sizes = [2, 2], strides = [1, 1]} : vector<2x4xf32> to vector<2x2xf32>
    %cst_198 = arith.constant 1.000000e+00 : f32
    %481 = vector.broadcast %cst_198 : f32 to vector<2x2xf32>
    %482 = arith.subf %481, %479 : vector<2x2xf32>
    %483 = arith.mulf %482, %470 : vector<2x2xf32>
    %484 = arith.mulf %479, %480 : vector<2x2xf32>
    %485 = arith.addf %483, %484 : vector<2x2xf32>
    %486 = arith.index_cast %c7_i32 : i32 to index
    %c0_199 = arith.constant 0 : index
    %c0_200 = arith.constant 0 : index
    %487 = vector.load %arg8[%486, %c0_199, %c0_200] : memref<8x2x2xf32, #tpu.memory_space<vmem>>, vector<1x2x2xf32>
    %488 = vector.shape_cast %487 : vector<1x2x2xf32> to vector<2x2xf32>
    %489 = vector.shape_cast %485 : vector<2x2xf32> to vector<1x2x2xf32>
    tpu.vector_store %arg8[%486, %c0_199, %c0_200], %489 {strides = array<i32>} : memref<8x2x2xf32, #tpu.memory_space<vmem>>, vector<1x2x2xf32>,
    %490 = arith.index_cast %c7_i32 : i32 to index
    %c0_201 = arith.constant 0 : index
    %c0_202 = arith.constant 0 : index
    %491 = vector.load %arg9[%490, %c0_201, %c0_202] : memref<8x2x32xf32, #tpu.memory_space<vmem>>, vector<1x2x32xf32>
    %492 = vector.shape_cast %491 : vector<1x2x32xf32> to vector<2x32xf32>
    %493 = vector.shape_cast %464 : vector<2x32xf32> to vector<1x2x32xf32>
    tpu.vector_store %arg9[%490, %c0_201, %c0_202], %493 {strides = array<i32>} : memref<8x2x32xf32, #tpu.memory_space<vmem>>, vector<1x2x32xf32>,
    %494 = arith.index_cast %c7_i32 : i32 to index
    %c0_203 = arith.constant 0 : index
    %c0_204 = arith.constant 0 : index
    %495 = vector.load %arg10[%494, %c0_203, %c0_204] : memref<8x2x2xf32, #tpu.memory_space<vmem>>, vector<1x2x2xf32>
    %496 = vector.shape_cast %495 : vector<1x2x2xf32> to vector<2x2xf32>
    %497 = vector.shape_cast %479 : vector<2x2xf32> to vector<1x2x2xf32>
    tpu.vector_store %arg10[%494, %c0_203, %c0_204], %497 {strides = array<i32>} : memref<8x2x2xf32, #tpu.memory_space<vmem>>, vector<1x2x2xf32>,
    %c0_205 = arith.constant 0 : index
    %c0_206 = arith.constant 0 : index
    %498 = vector.load %arg12[%c0_205, %c0_206] : memref<2x34xf32, #tpu.memory_space<vmem>>, vector<2x2xf32>
    tpu.vector_store %arg12[%c0_205, %c0_206], %485 {strides = array<i32>} : memref<2x34xf32, #tpu.memory_space<vmem>>, vector<2x2xf32>,
    %c0_207 = arith.constant 0 : index
    %c2_208 = arith.constant 2 : index
    %499 = vector.load %arg12[%c0_207, %c2_208] : memref<2x34xf32, #tpu.memory_space<vmem>>, vector<2x32xf32>
    tpu.vector_store %arg12[%c0_207, %c2_208], %464 {strides = array<i32>} : memref<2x34xf32, #tpu.memory_space<vmem>>, vector<2x32xf32>,
    %c0_209 = arith.constant 0 : index
    %c0_210 = arith.constant 0 : index
    %500 = vector.load %arg13[%c0_209, %c0_210] : memref<2x32xf32, #tpu.memory_space<vmem>>, vector<2x32xf32>
    tpu.vector_store %arg13[%c0_209, %c0_210], %462 {strides = array<i32>} : memref<2x32xf32, #tpu.memory_space<vmem>>, vector<2x32xf32>,
    %c8_i32 = arith.constant 8 : i32
    %c0_211 = arith.constant 0 : index
    %c0_212 = arith.constant 0 : index
    %501 = vector.load %arg13[%c0_211, %c0_212] : memref<2x32xf32, #tpu.memory_space<vmem>>, vector<2x32xf32>
    %c0_213 = arith.constant 0 : index
    %c0_214 = arith.constant 0 : index
    %502 = vector.load %arg11[%c0_213, %c0_214] : memref<2x32xf32, #tpu.memory_space<vmem>>, vector<2x32xf32>
    tpu.vector_store %arg11[%c0_213, %c0_214], %501 {strides = array<i32>} : memref<2x32xf32, #tpu.memory_space<vmem>>, vector<2x32xf32>,
    return
  }
  func.func @transform_0(%arg0: i32) -> (i32, i32, i32) {
    %c0_i32 = arith.constant 0 : i32
    %c0_i32_0 = arith.constant 0 : i32
    %c0_i32_1 = arith.constant 0 : i32
    %c0_i32_2 = arith.constant 0 : i32
    return %c0_i32, %c0_i32_0, %c0_i32_1 : i32, i32, i32
  }
  func.func @transform_1(%arg0: i32) -> (i32, i32, i32) {
    %c0_i32 = arith.constant 0 : i32
    %c0_i32_0 = arith.constant 0 : i32
    %c0_i32_1 = arith.constant 0 : i32
    %c0_i32_2 = arith.constant 0 : i32
    return %c0_i32, %c0_i32_0, %c0_i32_1 : i32, i32, i32
  }
  func.func @transform_2(%arg0: i32) -> (i32, i32) {
    %c0_i32 = arith.constant 0 : i32
    %c0_i32_0 = arith.constant 0 : i32
    %c0_i32_1 = arith.constant 0 : i32
    return %c0_i32, %c0_i32_0 : i32, i32
  }
  func.func @transform_3(%arg0: i32) -> (i32, i32) {
    %c0_i32 = arith.constant 0 : i32
    %c0_i32_0 = arith.constant 0 : i32
    %c0_i32_1 = arith.constant 0 : i32
    return %c0_i32, %c0_i32_0 : i32, i32
  }
  func.func @transform_4(%arg0: i32) -> (i32, i32) {
    %c0_i32 = arith.constant 0 : i32
    %c0_i32_0 = arith.constant 0 : i32
    %c0_i32_1 = arith.constant 0 : i32
    return %c0_i32, %c0_i32_0 : i32, i32
  }
  func.func @transform_5(%arg0: i32) -> (i32, i32) {
    %c0_i32 = arith.constant 0 : i32
    %c0_i32_0 = arith.constant 0 : i32
    %c0_i32_1 = arith.constant 0 : i32
    return %c0_i32, %c0_i32_0 : i32, i32
  }
  func.func @transform_6(%arg0: i32) -> (i32, i32) {
    %c0_i32 = arith.constant 0 : i32
    %c0_i32_0 = arith.constant 0 : i32
    %c0_i32_1 = arith.constant 0 : i32
    return %c0_i32, %c0_i32_0 : i32, i32
  }
  func.func @transform_7(%arg0: i32) -> (i32, i32, i32) {
    %c0_i32 = arith.constant 0 : i32
    %c0_i32_0 = arith.constant 0 : i32
    %c0_i32_1 = arith.constant 0 : i32
    %c0_i32_2 = arith.constant 0 : i32
    return %c0_i32, %c0_i32_0, %c0_i32_1 : i32, i32, i32
  }
  func.func @transform_8(%arg0: i32) -> (i32, i32, i32) {
    %c0_i32 = arith.constant 0 : i32
    %c0_i32_0 = arith.constant 0 : i32
    %c0_i32_1 = arith.constant 0 : i32
    %c0_i32_2 = arith.constant 0 : i32
    return %c0_i32, %c0_i32_0, %c0_i32_1 : i32, i32, i32
  }
  func.func @transform_9(%arg0: i32) -> (i32, i32, i32) {
    %c0_i32 = arith.constant 0 : i32
    %c0_i32_0 = arith.constant 0 : i32
    %c0_i32_1 = arith.constant 0 : i32
    %c0_i32_2 = arith.constant 0 : i32
    return %c0_i32, %c0_i32_0, %c0_i32_1 : i32, i32, i32
  }
  func.func @transform_10(%arg0: i32) -> (i32, i32) {
    %c0_i32 = arith.constant 0 : i32
    %c0_i32_0 = arith.constant 0 : i32
    %c0_i32_1 = arith.constant 0 : i32
    return %c0_i32, %c0_i32_0 : i32, i32
  }
}

</mosaic_0001>

<bundles_post_ra>
// kernel: _lstm_forward_impl.1
= control target key start
LH: loop header
LB: loop body
LE: loop exit
PB: predicated region body
PF: predicated region fallthrough
CT: control target
= control target key end

     0   :  { %vm67_vm0 = vcmask 1041408   ;;  %s5893_s17 = smov 126   ;;  %vm31_vm1 = vcmask 271360   ;;  %vm63_vm2 = vcmask 277504   ;;  %vm38_vm3 = vcmask 254976   ;;  %s5896_s19 = smov 64   ;;  %s7213_s3 = inlined_call_operand.vmem [shape: f32[2,34], index: 3, kind: input, shape index: {}]   ;;  %s7214_s4 = inlined_call_operand.vmem [shape: f32[34,130], index: 4, kind: input, shape index: {}]   ;;  %s7215_s2 = inlined_call_operand.vmem [shape: f32[2,34], index: 2, kind: input, shape index: {}]   ;;  %s7216_s0 = inlined_call_operand.vmem [shape: f32[8,2,130], index: 0, kind: input, shape index: {}]   ;;  %s7217_s1 = inlined_call_operand.vmem [shape: f32[8,2,1], index: 1, kind: input, shape index: {}]   ;;  %s7218_s5 = inlined_call_operand.vmem [shape: f32[32,4], index: 5, kind: input, shape index: {}]   ;;  %s7219_s8 = inlined_call_operand.vmem [shape: f32[8,2,32], index: 8, kind: output, shape index: {1}]   ;;  %s7220_s6 = inlined_call_operand.vmem [shape: f32[1,4], index: 6, kind: input, shape index: {}]   ;;  %s7221_s9 = inlined_call_operand.vmem [shape: f32[8,2,2], index: 9, kind: output, shape index: {2}]   ;;  %s7222_s7 = inlined_call_operand.vmem [shape: f32[8,2,2], index: 7, kind: output, shape index: {0}]   ;;  %s7223_s10 = inlined_call_operand.vmem [shape: f32[2,32], index: 10, kind: output, shape index: {3}]  }
   0x1   :  { %v33_v0 = vld [vmem:[%s7213_s3] sm:$0x3]  ;;  %v43_v1 = vld [vmem:[%s7214_s4 + $0x18] sm:$0xff]  ;;  %v45_v2 = vld [vmem:[%s7214_s4 + $0x28] sm:$0xff]  ;;  %s5897_s25 = smov 34   ;;  %vm544_vm11 = vcmask 261120  }
   0x2   :  { %35 = vrot.lane.b32.xlu0 %v33_v0, %s5893_s17  ;;  %v47_v3 = vld [vmem:[%s7214_s4 + $0x38] sm:$0xff]  ;;  %v48_v4 = vld [vmem:[%s7214_s4 + $0x40] sm:$0x3]  ;;  %v5970_v5 = vand.u32 4294901760, %v43_v1  ;;  %v49_v6 = vld [vmem:[%s7214_s4 + $0x48] sm:$0x3] }
   0x3   :  { %v69_v7 = vsel %vm67_vm0, %v48_v4, 0  ;;  %v5976_v8 = vand.u32 4294901760, %v47_v3  ;;  %v5978_v9 = vand.u32 4294901760, %v45_v2  ;;  %v46_v10 = vld [vmem:[%s7214_s4 + $0x30] sm:$0xff]  ;;  %v72_v11 = vsel %vm67_vm0, %v49_v6, 0  ;;  %v44_v14 = vld [vmem:[%s7214_s4 + $0x20] sm:$0xff] }
   0x4   :  { %v5984_v12 = vand.u32 4294901760, %v69_v7  ;;  %v5986_v13 = vand.u32 4294901760, %v46_v10  ;;  %v42_v15 = vld [vmem:[%s7214_s4 + $0x10] sm:$0xff]  ;;  %v40_v16 = vld [vmem:[%s7214_s4] sm:$0xff]  ;;  %v5997_v17 = vand.u32 4294901760, %v72_v11  ;;  %v5999_v18 = vand.u32 4294901760, %v44_v14 }
   0x5   :  { %v6001_v19 = vand.u32 4294901760, %v42_v15  ;;  %v6003_v20 = vand.u32 4294901760, %v40_v16  ;;  %v30_v21 = vld [vmem:[%s7215_s2] sm:$0x3]  ;;  %v6018_v24 = vsub.f32 %v47_v3, %v5976_v8  ;;  %v41_v25 = vld [vmem:[%s7214_s4 + $0x8] sm:$0xff]  ;;  %v6047_v33 = vsub.f32 %v45_v2, %v5978_v9  ;;  %s5894_s2 = smov 32  }
   0x6   :  { %v6009_v22 = vsub.f32 %v69_v7, %v5984_v12  ;;  %86 = vmatpush.msra.mxu0 %v5984_v12  ;;  %194 = vmatpush.msra.mxu3 %v5984_v12  ;;  %v6014_v23 = vsub.f32 %v46_v10, %v5986_v13  ;;  %32 = vst.msk [vmem:[#allocation2] sm:$0x3] %vm31_vm1, %v30_v21  ;;  %v6062_v38 = vand.u32 4294901760, %v41_v25  ;;  %s5898_s13 = smov 96   ;;  %vm759_vm14 = vcmask 9216  }
   0x7   :  { %v6024_v26 = vsub.f32 %v44_v14, %v5999_v18  ;;  %v6027_v27 = vsub.f32 %v42_v15, %v6001_v19  ;;  %v6030_v28 = vsub.f32 %v40_v16, %v6003_v20  ;;  %v6033_v29 = vsub.f32 %v72_v11, %v5997_v17 }
   0x8   :  { %163 = vmatpush.msra.mxu2 %v6009_v22  ;;  %88 = vmatpush.msra.mxu0 %v5986_v13  ;;  %v6038_v30 = vand.u32 4294901760, %v6009_v22  ;;  %v6041_v31 = vand.u32 4294901760, %v6014_v23  ;;  %v6044_v32 = vand.u32 4294901760, %v6018_v24  ;;  %v6076_v43 = vsub.f32 %v43_v1, %v5970_v5 }
   0x9   :  { %7295 = vst [vmem:[#allocation4_spill] sm:$0xff] %v6024_v26  ;;  %196 = vmatpush.msra.mxu3 %v5986_v13  ;;  %v6051_v34 = vand.u32 4294901760, %v6024_v26  ;;  %v6054_v35 = vand.u32 4294901760, %v6027_v27  ;;  %v6057_v36 = vand.u32 4294901760, %v6033_v29  ;;  %v6060_v37 = vand.u32 4294901760, %v6030_v28 }
   0xa   :  { %7296 = vst [vmem:[#allocation5_spill] sm:$0xff] %v6027_v27  ;;  %166 = vmatpush.msra.mxu2 %v6014_v23  ;;  %v118_v39 = vsub.f32 %v6009_v22, %v6038_v30  ;;  %90 = vmatpush.msra.mxu0 %v5999_v18  ;;  %v124_v40 = vsub.f32 %v6014_v23, %v6041_v31  ;;  %v6087_v47 = vand.u32 4294901760, %v6047_v33  ;;  %v6112_v56 = vand.u32 4294901760, %v6076_v43 }
   0xb   :  { %7297 = vst [vmem:[#allocation6_spill] sm:$0xff] %v6030_v28  ;;  %198 = vmatpush.msra.mxu3 %v5999_v18  ;;  %v130_v41 = vsub.f32 %v6024_v26, %v6051_v34  ;;  %v316_v42 = vsub.f32 %v6033_v29, %v6057_v36  ;;  %v136_v46 = vsub.f32 %v6027_v27, %v6054_v35 }
   0xc   :  { %7298 = vst [vmem:[#allocation7_spill] sm:$0xff] %v6054_v35  ;;  %v6078_v44 = vand.u32 4294901760, %v118_v39  ;;  %169 = vmatpush.msra.mxu2 %v6024_v26  ;;  %v6081_v45 = vand.u32 4294901760, %v124_v40  ;;  %92 = vmatpush.msra.mxu0 %v6001_v19  ;;  %v142_v49 = vsub.f32 %v6030_v28, %v6060_v37  ;;  %v322_v50 = vsub.f32 %v6018_v24, %v6044_v32 }
   0xd   :  { %7299 = vst [vmem:[#allocation8_spill] sm:$0xff] %v6060_v37  ;;  %200 = vmatpush.msra.mxu3 %v6001_v19  ;;  %v6090_v48 = vld [vmem:[#allocation2] sm:$0x3]  ;;  %v6098_v51 = vand.u32 4294901760, %v130_v41  ;;  %v6102_v53 = vand.u32 4294901760, %v316_v42  ;;  %v6105_v54 = vsub.f32 %v41_v25, %v6062_v38  ;;  %v6116_v57 = vand.u32 4294901760, %v136_v46 }
   0xe   :  { %7300 = vst [vmem:[#allocation9_spill] sm:$0xff] %v6078_v44  ;;  %120 = vmatpush.msra.mxu1 %v6078_v44  ;;  %172 = vmatpush.msra.mxu2 %v6027_v27  ;;  %v65_v52 = vsel %vm63_vm2, %v6090_v48, 0  ;;  %v328_v58 = vsub.f32 %v6047_v33, %v6087_v47  ;;  %v6128_v61 = vand.u32 4294901760, %v142_v49  ;;  %v6130_v62 = vand.u32 4294901760, %v322_v50 }
   0xf   :  { %7301 = vst [vmem:[#allocation10_spill] sm:$0xff] %v6081_v45  ;;  %94 = vmatpush.msra.mxu0 %v6003_v20  ;;  %v6108_v55 = vand.u32 4294901760, %v65_v52  ;;  %202 = vmatpush.msra.mxu3 %v6003_v20  ;;  %v6124_v60 = vand.u32 4294901760, %v6105_v54  ;;  %v334_v0 = vsub.f32 %v6076_v43, %v6112_v56 }
  0x10   :  { %7302 = vst [vmem:[#allocation11_spill] sm:$0xff] %v6098_v51  ;;  %126 = vmatpush.msra.mxu1 %v6081_v45  ;;  %175 = vmatpush.msra.mxu2 %v6030_v28  ;;  %v6137_v1 = vand.u32 4294901760, %v328_v58 }
  0x11   :  { %7303 = vst [vmem:[#allocation12_spill] sm:$0xff] %v6105_v54  ;;  %v96_v59 = vsub.f32 %v65_v52, %v6108_v55  ;;  %224 = vmatpush.msrb.mxu0 %v6038_v30  ;;  %318 = vmatpush.msrb.mxu3 %v6102_v53  ;;  %v340_v3 = vsub.f32 %v6105_v54, %v6124_v60  ;;  %v6146_v6 = vand.u32 4294901760, %v334_v0 }
  0x12   :  { %7304 = vst [vmem:[#allocation13_spill] sm:$0xff] %v6116_v57  ;;  %284 = vmatpush.msrb.mxu2 %v5997_v17  ;;  %132 = vmatpush.msra.mxu1 %v6098_v51 }
  0x13   :  { %7305 = vst [vmem:[#allocation14_spill] sm:$0xff] %v6128_v61  ;;  %178 = vmatmul.f32.vlgmr.msra.gmra.mxu2 %v96_v59  ;;  %v97_v63 = vand.u32 4294901760, %v96_v59  ;;  %228 = vmatpush.msrb.mxu0 %v6041_v31  ;;  %v6151_v7 = vand.u32 4294901760, %v340_v3 }
  0x14   :  { %7306 = vst [vmem:[#allocation15_spill] sm:$0xff] %v6130_v62  ;;  %138 = vmatpush.msra.mxu1 %v6116_v57  ;;  %286 = vmatpush.msrb.mxu2 %v5976_v8 }
  0x15   :  { %7307 = vst [vmem:[#allocation16_spill] sm:$0xff] %v6137_v1  ;;  %206 = vmatmul.f32.vlgmr.msra.gmra.mxu3 %v97_v63  ;;  %v98_v2 = vsub.f32 %v96_v59, %v97_v63  ;;  %232 = vmatpush.msrb.mxu0 %v6051_v34 }
  0x16   :  { %144 = vmatpush.msra.mxu1 %v6128_v61  ;;  %324 = vmatpush.msrb.mxu3 %v6130_v62  ;;  %7308 = vst [vmem:[#allocation17_spill] sm:$0xff] %v6146_v6 }
  0x17   :  { %v99_v4 = vand.u32 4294901760, %v98_v2  ;;  %146 = vmatmul.f32.vlgmr.msra.gmra.mxu1 %v6108_v55  ;;  %288 = vmatpush.msrb.mxu2 %v5978_v9  ;;  %7309 = vst [vmem:[#allocation18_spill] sm:$0xff] %v6151_v7 }
  0x18   :  { %258 = vmatpush.msrb.mxu1 %v5984_v12  ;;  %330 = vmatpush.msrb.mxu3 %v6137_v1 }
  0x19   :  { %100 = vmatmul.f32.vlgmr.msra.gmra.mxu0 %v99_v4  ;;  %290 = vmatpush.msrb.mxu2 %v5970_v5 }
  0x1a   :  { %260 = vmatpush.msrb.mxu1 %v5986_v13  ;;  %236 = vmatpush.msrb.mxu0 %v6054_v35 }
  0x1b   :  { %336 = vmatpush.msrb.mxu3 %v6146_v6  ;;  %292 = vmatpush.msrb.mxu2 %v6062_v38 }
  0x1c   :  { %262 = vmatpush.msrb.mxu1 %v5999_v18  ;;  %240 = vmatpush.msrb.mxu0 %v6060_v37 }
  0x1d   :  { %342 = vmatpush.msrb.mxu3 %v6151_v7  ;;  %422 = vmatpush.msra.mxu2 %v6057_v36 }
  0x1e   :  { %264 = vmatpush.msrb.mxu1 %v6001_v19  ;;  %298 = vmatmul.f32.vlgmr.msrb.gmra.mxu2 %v99_v4 }
  0x1f   :  { %344 = vmatmul.f32.vlgmr.msrb.gmra.mxu3 %v6108_v55  ;;  %361 = vmatpush.msra.mxu0 %v6033_v29 }
  0x20   :  { %426 = vmatpush.msra.mxu2 %v6044_v32  ;;  %456 = vmatpush.msra.mxu3 %v5997_v17 }
  0x21   :  { %242 = vmatmul.f32.vlgmr.msrb.gmra.mxu0 %v6108_v55  ;;  %266 = vmatpush.msrb.mxu1 %v6003_v20 }
  0x22   :  { %364 = vmatpush.msra.mxu0 %v6018_v24  ;;  %268 = vmatmul.f32.vlgmr.msrb.gmra.mxu1 %v6108_v55 }
  0x23   :  { %392 = vmatpush.msra.mxu1 %v5997_v17  ;;  %430 = vmatpush.msra.mxu2 %v6087_v47 }
  0x24   :  { %458 = vmatpush.msra.mxu3 %v5976_v8  ;;  %367 = vmatpush.msra.mxu0 %v6047_v33 }
  0x25   :  { %394 = vmatpush.msra.mxu1 %v5976_v8  ;;  %434 = vmatpush.msra.mxu2 %v6112_v56 }
  0x26   :  { %460 = vmatpush.msra.mxu3 %v5978_v9  ;;  %370 = vmatpush.msra.mxu0 %v6076_v43 }
  0x27   :  { %396 = vmatpush.msra.mxu1 %v5978_v9  ;;  %438 = vmatpush.msra.mxu2 %v6124_v60 }
  0x28   :  { %462 = vmatpush.msra.mxu3 %v5970_v5  ;;  %373 = vmatpush.msra.mxu0 %v6105_v54 }
  0x29   :  { %440 = vmatmul.f32.vlgmr.msra.gmra.mxu2 %v6108_v55  ;;  %376 = vmatmul.f32.vlgmr.msra.gmra.mxu0 %v96_v59 }
  0x2a   :  { %398 = vmatpush.msra.mxu1 %v5970_v5  ;;  %464 = vmatpush.msra.mxu3 %v6062_v38 }
  0x2b   :  { %466 = vmatmul.f32.vlgmr.msra.gmra.mxu3 %v6108_v55 }
  0x2c   :  { %400 = vmatpush.msra.mxu1 %v6062_v38 }
  0x2d   :  { %404 = vmatmul.f32.vlgmr.msra.gmra.mxu1 %v97_v63 }
  0x74   :  { %v36_v10 = vpop.permute.xlu0 %35 }
  0x75   :  { %39 = vst.msk [vmem:[#allocation3] sm:$0x3] %vm38_vm3, %v36_v10 }
  0x7c   :  { %v61_v11 = vld [vmem:[#allocation3] sm:$0x3] }
  0x7d   :  { %506 = vrot.lane.b32.xlu1 %v61_v11, %s5894_s2  ;;  %v62_v11 = vld [vmem:[%s7216_s0] sm:$0xf] }
  0x94   :  { %v147_v15 = vpop.f32.mrf.mxu1 }
  0x96   :  { %v101_v14 = vpop.f32.mrf.mxu0  ;;  %v179_v21 = vpop.f32.mrf.mxu2 }
  0x97   :  { %v148_v40 = vadd.f32 %v147_v15, %v101_v14 }
  0x98   :  { %v207_v16 = vpop.f32.mrf.mxu3 }
  0x99   :  { %v180_v49 = vadd.f32 %v179_v21, %v148_v40 }
  0x9b   :  { %v208_v55 = vadd.f32 %v207_v16, %v180_v49 }
  0x9e   :  { %v243_v25 = vpop.f32.mrf.mxu0 }
  0x9f   :  { %v269_v39 = vpop.f32.mrf.mxu1  ;;  %v244_v0 = vadd.f32 %v243_v25, %v208_v55  ;;  %v5895_v25 = vmov 0  }
  0xa0   :  { %5792 = vset.pattern.permute.xlu0 %v5895_v25  ;;  %5793 = vset.pattern.permute.xlu1 %v5895_v25 }
  0xa1   :  { %v299_v41 = vpop.f32.mrf.mxu2  ;;  %v270_v10 = vadd.f32 %v269_v39, %v244_v0 }
  0xa2   :  { %v345_v42 = vpop.f32.mrf.mxu3 }
  0xa3   :  { %v346_v46 = vadd.f32 %v345_v42, %v299_v41 }
  0xa6   :  { %v377_v50 = vpop.f32.mrf.mxu0 }
  0xa7   :  { %v378_v52 = vadd.f32 %v377_v50, %v346_v46 }
  0xaa   :  { %v405_v58 = vpop.f32.mrf.mxu1 }
  0xab   :  { %v406_v59 = vadd.f32 %v405_v58, %v378_v52  ;;  %v55_v58 = vlaneseq }
  0xac   :  { %v441_v63 = vpop.f32.mrf.mxu2 }
  0xad   :  { %v442_v2 = vadd.f32 %v441_v63, %v406_v59 }
  0xae   :  { %v467_v3 = vpop.f32.mrf.mxu3 }
  0xaf   :  { %v468_v4 = vadd.f32 %v467_v3, %v442_v2  ;;  %v56_v2 = vand.u32 127, %v55_v58 }
  0xb1   :  { %v472_v14 = vrot.slane %v468_v4, 6  ;;  %vm57_vm8 = vcmp.ge.s32.totalorder %v56_v2, 64  ;;  %vm58_vm9 = vcmp.lt.s32.totalorder %v56_v2, 96 }
  0xb2   :  { %vm6193_vm10 = vmand %vm57_vm8, %vm58_vm9 }
  0xb3   :  { %v473_v15 = vsel %vm67_vm0, %v270_v10, %v472_v14  ;;  %v7310_v10 = vmov 0 }
  0xb4   :  { %v475_v41 = vadd.f32 %v473_v15, %v62_v11  ;;  %v7311_v10 = vsel %vm6193_vm10, 4294967295, %v7310_v10  ;;  %v526_v15 = vld [vmem:[%s7217_s1] sm:$0x3] }
  0xb5   :  { %7312 = vst [vmem:[#allocation19_spill] sm:$0xff] %v7311_v10 }
  0xb6   :  { %5795 = vtanh.f32 %v475_v41  ;;  %v5735_v21 = vmul.f32 -1.442695, %v475_v41 }
  0xb8   :  { %5797 = vpow2.f32 %v5735_v21 }
  0xbc   :  { %v5796_v16 = vpop.eup %5795 }
  0xbd   :  { %497 = vst [vmem:[#allocation1] ss:$4 sm:$0xff] %v5796_v16 }
  0xbe   :  { %v5798_v40 = vpop.eup %5797 }
  0xbf   :  { %v480_v42 = vadd.f32 1.0, %v5798_v40 }
  0xc1   :  { %5799 = vrcp.f32 %v480_v42  ;;  %v492_v50 = vand.u32 2147483648, %v480_v42  ;;  %v490_v55 = vand.u32 2147483647, %v480_v42  ;;  %vm486_vm5 = vweird.f32 %v480_v42 }
  0xc3   :  { %v493_v63 = vor.u32 1.1754944e-38, %v492_v50  ;;  %vm491_vm7 = vcmp.eq.f32.partialorder %v490_v55, 8.507059e+37 }
  0xc4   :  { %v498_v4 = vld.sshfl [vmem:[#allocation1] sm:$0xff pattern:$0x73625140] }
  0xc7   :  { %v5800_v39 = vpop.eup %5799 }
  0xc8   :  { %v482_v46 = vmul.f32 %v5800_v39, %v480_v42  ;;  %vm487_vm4 = vweird.f32 %v5800_v39 }
  0xc9   :  { %vm488_vm6 = vmor %vm486_vm5, %vm487_vm4  ;;  %vm768_vm4 = vcmask 271376  }
  0xca   :  { %v483_v49 = vsub.f32 1.0, %v482_v46  ;;  %v53_v46 = vld [vmem:[%s7218_s5 + $0x18] sm:$0xff] }
  0xcb   :  { %v6214_v50 = vand.u32 4294901760, %v53_v46 }
  0xcc   :  { %v484_v52 = vmul.f32 %v5800_v39, %v483_v49  ;;  %v52_v49 = vld [vmem:[%s7218_s5 + $0x10] sm:$0xff] }
  0xcd   :  { %7313 = vst [vmem:[#allocation20_spill] sm:$0xff] %v6214_v50  ;;  %v6219_v55 = vsub.f32 %v53_v46, %v6214_v50  ;;  %660 = vmatpush.msrb.mxu3 %v6214_v50  ;;  %560 = vmatpush.msrb.mxu0 %v6214_v50 }
  0xce   :  { %v485_v59 = vadd.f32 %v5800_v39, %v484_v52  ;;  %v6216_v52 = vand.u32 4294901760, %v52_v49 }
  0xcf   :  { %631 = vmatpush.msrb.mxu2 %v6219_v55 }
  0xd0   :  { %v489_v0 = vsel %vm488_vm6, %v5800_v39, %v485_v59  ;;  %7314 = vst [vmem:[#allocation21_spill] sm:$0xff] %v6216_v52  ;;  %v6222_v58 = vsub.f32 %v52_v49, %v6216_v52  ;;  %v6227_v59 = vand.u32 4294901760, %v6219_v55  ;;  %662 = vmatpush.msrb.mxu3 %v6216_v52  ;;  %562 = vmatpush.msrb.mxu0 %v6216_v52 }
  0xd1   :  { %v494_v3 = vsel %vm491_vm7, %v493_v63, %v489_v0 }
  0xd2   :  { %501 = vst [vmem:[#allocation1] ss:$4 sm:$0xff] %v494_v3  ;;  %v6230_v63 = vand.u32 4294901760, %v6222_v58  ;;  %v591_v0 = vsub.f32 %v6219_v55, %v6227_v59  ;;  %634 = vmatpush.msrb.mxu2 %v6222_v58 }
  0xd3   :  { %7315 = vst [vmem:[#allocation22_spill] sm:$0xff] %v6222_v58 }
  0xd4   :  { %7316 = vst [vmem:[#allocation23_spill] sm:$0xff] %v6227_v59  ;;  %v597_v2 = vsub.f32 %v6222_v58, %v6230_v63  ;;  %v6240_v3 = vand.u32 4294901760, %v591_v0 }
  0xd5   :  { %7317 = vst [vmem:[#allocation24_spill] sm:$0xff] %v6230_v63 }
  0xd6   :  { %593 = vmatpush.msrb.mxu1 %v6240_v3 }
  0xd9   :  { %v502_v11 = vld.sshfl [vmem:[#allocation1] sm:$0xff pattern:$0x73625140] }
  0xda   :  { %533 = vst [vmem:[#allocation1] ss:$4 sm:$0xff] %v475_v41  ;;  %v504_v14 = vsel %vm6193_vm10, %v498_v4, %v502_v11  ;;  %v6242_v4 = vand.u32 4294901760, %v597_v2 }
  0xdb   :  { %511 = vrot.lane.b32.xlu0 %v504_v14, %s5896_s19 }
  0xdc   :  { %599 = vmatpush.msrb.mxu1 %v6242_v4 }
  0xe3   :  { %529 = vperm.xlu0 %5792, %v526_v15  }
  0xef   :  { %v507_v40 = vpop.permute.xlu1 %506 }
  0xf0   :  { %v509_v42 = vmul.f32 %v507_v40, %v504_v14  ;;  %v50_v40 = vld [vmem:[%s7218_s5] sm:$0xff] }
 0x14d   :  { %v512_v21 = vpop.permute.xlu0 %511 }
 0x14e   :  { %v514_v16 = vmul.f32 %v512_v21, %v504_v14  ;;  %v51_v21 = vld [vmem:[%s7218_s5 + $0x8] sm:$0xff] }
 0x150   :  { %516 = vrot.lane.b32.xlu1 %v514_v16, %s5894_s2  ;;  %v6251_v16 = vand.u32 4294901760, %v51_v21 }
 0x152   :  { %7318 = vst [vmem:[#allocation25_spill] sm:$0xff] %v6251_v16  ;;  %664 = vmatpush.msrb.mxu3 %v6251_v16  ;;  %564 = vmatpush.msrb.mxu0 %v6251_v16 }
 0x1c2   :  { %v517_v25 = vpop.permute.xlu1 %516 }
 0x1c3   :  { %v6204_v39 = vadd.f32 %v517_v25, %v509_v42  ;;  %v6257_v42 = vsub.f32 %v51_v21, %v6251_v16  ;;  %v6259_v25 = vand.u32 4294901760, %v50_v40 }
 0x1c5   :  { %5801 = vtanh.f32 %v6204_v39  ;;  %7319 = vst [vmem:[#allocation26_spill] sm:$0xff] %v6257_v42  ;;  %637 = vmatpush.msrb.mxu2 %v6257_v42  ;;  %666 = vmatpush.msrb.mxu3 %v6259_v25 }
 0x1c6   :  { %7320 = vst [vmem:[#allocation27_spill] sm:$0xff] %v6259_v25  ;;  %566 = vmatpush.msrb.mxu0 %v6259_v25 }
 0x1c7   :  { %828 = vmatpush.msra.mxu3 %v6078_v44 }
 0x1c8   :  { %689 = vmatpush.msra.mxu0 %v6227_v59 }
 0x1c9   :  { %834 = vmatpush.msra.mxu3 %v6081_v45 }
 0x1ca   :  { %693 = vmatpush.msra.mxu0 %v6230_v63 }
 0x1cb   :  { %v5802_v41 = vpop.eup %5801  ;;  %840 = vmatpush.msra.mxu3 %v6098_v51 }
 0x1cc   :  { %522 = vrot.lane.b32.xlu2 %v5802_v41, %s5896_s19  ;;  %v6267_v41 = vsub.f32 %v50_v40, %v6259_v25 }
 0x1cd   :  { %846 = vmatpush.msra.mxu3 %v6116_v57 }
 0x1ce   :  { %7322 = vst [vmem:[#allocation29_spill] sm:$0xff] %v6267_v41  ;;  %v6276_v49 = vand.u32 4294901760, %v6267_v41  ;;  %640 = vmatpush.msrb.mxu2 %v6267_v41 }
 0x1cf   :  { %852 = vmatpush.msra.mxu3 %v6128_v61 }
 0x1d0   :  { %7323 = vst [vmem:[#allocation30_spill] sm:$0xff] %v6276_v49  ;;  %794 = vmatpush.msra.mxu2 %v5984_v12  ;;  %v609_v2 = vsub.f32 %v6267_v41, %v6276_v49 }
 0x1d2   :  { %796 = vmatpush.msra.mxu2 %v5986_v13 }
 0x1d4   :  { %798 = vmatpush.msra.mxu2 %v5999_v18 }
 0x1d6   :  { %800 = vmatpush.msra.mxu2 %v6001_v19 }
 0x1d8   :  { %802 = vmatpush.msra.mxu2 %v6003_v20 }
 0x226   :  { %v523_v11 = vpop.permute.xlu2 %522 }
 0x227   :  { %v525_v15 = vmul.f32 %v523_v11, %v504_v14  ;;  %v6264_v14 = vand.u32 4294901760, %v6257_v42  ;;  %v6290_v11 = vand.u32 4294901760, %v609_v2 }
 0x229   :  { %542 = vrot.lane.b32.xlu2 %v525_v15, %s5894_s2  ;;  %7321 = vst [vmem:[#allocation28_spill] sm:$0xff] %v6264_v14  ;;  %v603_v46 = vsub.f32 %v6257_v42, %v6264_v14  ;;  %697 = vmatpush.msra.mxu0 %v6264_v14 }
 0x22a   :  { %7325 = vst [vmem:[#allocation32_spill] sm:$0xff] %v6290_v11 }
 0x22b   :  { %v6282_v0 = vand.u32 4294901760, %v603_v46  ;;  %701 = vmatpush.msra.mxu0 %v6276_v49 }
 0x22d   :  { %7324 = vst [vmem:[#allocation31_spill] sm:$0xff] %v6282_v0  ;;  %605 = vmatpush.msrb.mxu1 %v6282_v0 }
 0x22f   :  { %611 = vmatpush.msrb.mxu1 %v6290_v11 }
 0x231   :  { %765 = vrot.lane.b32.xlu2 %v525_v15, %s5897_s25  ;;  %720 = vmatpush.msra.mxu1 %v6214_v50 }
 0x233   :  { %722 = vmatpush.msra.mxu1 %v6216_v52 }
 0x235   :  { %724 = vmatpush.msra.mxu1 %v6251_v16 }
 0x237   :  { %726 = vmatpush.msra.mxu1 %v6259_v25 }
 0x283   :  { %v543_v15 = vpop.permute.xlu2 %542 }
 0x284   :  { %v545_v21 = vsel %vm544_vm11, %v543_v15, 0  ;;  %762 = vst.msk [vmem:[%s7219_s8] sm:$0x3] %vm38_vm3, %v543_v15 }
 0x285   :  { %v567_v40 = vand.u32 4294901760, %v545_v21 }
 0x287   :  { %v568_v46 = vsub.f32 %v545_v21, %v567_v40  ;;  %613 = vmatmul.f32.vlgmr.msrb.gmra.mxu1 %v567_v40 }
 0x288   :  { %902 = vmatpush.msrb.mxu1 %v5984_v12 }
 0x289   :  { %v569_v2 = vand.u32 4294901760, %v568_v46  ;;  %643 = vmatmul.f32.vlgmr.msrb.gmra.mxu2 %v568_v46 }
 0x28a   :  { %904 = vmatpush.msrb.mxu1 %v5986_v13  ;;  %932 = vmatpush.msrb.mxu2 %v6038_v30 }
 0x28b   :  { %v570_v10 = vsub.f32 %v568_v46, %v569_v2  ;;  %670 = vmatmul.f32.vlgmr.msrb.gmra.mxu3 %v569_v2 }
 0x28c   :  { %906 = vmatpush.msrb.mxu1 %v5999_v18  ;;  %966 = vmatpush.msrb.mxu3 %v5984_v12 }
 0x28d   :  { %v571_v49 = vand.u32 4294901760, %v570_v10  ;;  %936 = vmatpush.msrb.mxu2 %v6041_v31  ;;  %v6342_v10 = vld [vmem:[%s7220_s6] ss:$0 sm:$0xff] }
 0x28e   :  { %908 = vmatpush.msrb.mxu1 %v6001_v19  ;;  %968 = vmatpush.msrb.mxu3 %v5986_v13 }
 0x28f   :  { %572 = vmatmul.f32.vlgmr.msrb.gmra.mxu0 %v571_v49  ;;  %728 = vmatmul.f32.vlgmr.msra.gmra.mxu1 %v567_v40 }
 0x290   :  { %871 = vmatpush.msrb.mxu0 %v6009_v22  ;;  %910 = vmatpush.msrb.mxu1 %v6003_v20 }
 0x291   :  { %970 = vmatpush.msrb.mxu3 %v5999_v18  ;;  %940 = vmatpush.msrb.mxu2 %v6051_v34 }
 0x292   :  { %1026 = vmatpush.msra.mxu1 %v6102_v53  ;;  %874 = vmatpush.msrb.mxu0 %v6014_v23 }
 0x293   :  { %972 = vmatpush.msrb.mxu3 %v6001_v19  ;;  %944 = vmatpush.msrb.mxu2 %v6054_v35 }
 0x294   :  { %1032 = vmatpush.msra.mxu1 %v6130_v62  ;;  %877 = vmatpush.msrb.mxu0 %v6024_v26 }
 0x295   :  { %974 = vmatpush.msrb.mxu3 %v6003_v20  ;;  %948 = vmatpush.msrb.mxu2 %v6060_v37 }
 0x296   :  { %1038 = vmatpush.msra.mxu1 %v6137_v1  ;;  %880 = vmatpush.msrb.mxu0 %v6027_v27 }
 0x297   :  { %703 = vmatmul.f32.vlgmr.msra.gmra.mxu0 %v567_v40 }
 0x298   :  { %1044 = vmatpush.msra.mxu1 %v6146_v6  ;;  %883 = vmatpush.msrb.mxu0 %v6030_v28 }
 0x29a   :  { %992 = vmatpush.msra.mxu0 %v5997_v17  ;;  %1050 = vmatpush.msra.mxu1 %v6151_v7 }
 0x29c   :  { %994 = vmatpush.msra.mxu0 %v5976_v8 }
 0x29e   :  { %996 = vmatpush.msra.mxu0 %v5978_v9 }
 0x2a0   :  { %998 = vmatpush.msra.mxu0 %v5970_v5 }
 0x2a2   :  { %1000 = vmatpush.msra.mxu0 %v6062_v38 }
 0x304   :  { %v614_v49 = vpop.f32.mrf.mxu1 }
 0x30c   :  { %v573_v15 = vpop.f32.mrf.mxu0  ;;  %v644_v46 = vpop.f32.mrf.mxu2 }
 0x30d   :  { %v574_v21 = vadd.f32 %v6342_v10, %v573_v15  ;;  %v729_v27 = vpop.f32.mrf.mxu1 }
 0x30e   :  { %v671_v7 = vpop.f32.mrf.mxu3 }
 0x30f   :  { %v615_v40 = vadd.f32 %v614_v49, %v574_v21 }
 0x311   :  { %v645_v2 = vadd.f32 %v644_v46, %v615_v40 }
 0x313   :  { %v672_v28 = vadd.f32 %v671_v7, %v645_v2 }
 0x314   :  { %v704_v6 = vpop.f32.mrf.mxu0 }
 0x315   :  { %v705_v37 = vadd.f32 %v704_v6, %v672_v28 }
 0x317   :  { %v730_v1 = vadd.f32 %v729_v27, %v705_v37 }
 0x319   :  { %v5736_v35 = vmul.f32 -1.442695, %v730_v1  ;;  %754 = vrot.lane.b32.xlu1 %v730_v1, %s5893_s17  ;;  %v534_v1 = vld.sshfl [vmem:[#allocation1 + $0x8] sm:$0xff pattern:$0x73625140] }
 0x31b   :  { %5803 = vpow2.f32 %v5736_v35 }
 0x321   :  { %v5804_v26 = vpop.eup %5803  ;;  %771 = vrot.lane.b32.xlu1 %v6204_v39, %s5898_s13 }
 0x322   :  { %v735_v62 = vadd.f32 1.0, %v5804_v26  ;;  %v530_v26 = vpop.permute.xlu0 %529 }
 0x323   :  { %v536_v39 = vmul.f32 %v534_v1, %v530_v26 }
 0x324   :  { %5805 = vrcp.f32 %v735_v62  ;;  %v747_v40 = vand.u32 2147483648, %v735_v62  ;;  %v745_v28 = vand.u32 2147483647, %v735_v62  ;;  %vm741_vm13 = vweird.f32 %v735_v62 }
 0x325   :  { %v537_v2 = vadd.f32 %v536_v39, %v6090_v48  ;;  %v7326_v39 = vld [vmem:[#allocation30_spill] sm:$0xff] }
 0x326   :  { %v748_v27 = vor.u32 1.1754944e-38, %v747_v40  ;;  %vm746_vm1 = vcmp.eq.f32.partialorder %v745_v28, 8.507059e+37 }
 0x32a   :  { %v5806_v49 = vpop.eup %5805 }
 0x32b   :  { %v737_v15 = vmul.f32 %v5806_v49, %v735_v62  ;;  %vm742_vm12 = vweird.f32 %v5806_v49 }
 0x32c   :  { %vm743_vm15 = vmor %vm741_vm13, %vm742_vm12 }
 0x32d   :  { %v738_v21 = vsub.f32 1.0, %v737_v15 }
 0x32f   :  { %v739_v7 = vmul.f32 %v5806_v49, %v738_v21 }
 0x331   :  { %v740_v6 = vadd.f32 %v5806_v49, %v739_v7 }
 0x333   :  { %v744_v35 = vsel %vm743_vm15, %v5806_v49, %v740_v6  ;;  %v766_v49 = vpop.permute.xlu2 %765 }
 0x334   :  { %v749_v37 = vsel %vm746_vm1, %v748_v27, %v744_v35 }
 0x335   :  { %763 = vst.msk [vmem:[%s7221_s9] sm:$0x3] %vm759_vm14, %v749_v37  ;;  %v751_v46 = vsub.f32 1.0, %v749_v37 }
 0x337   :  { %v752_v21 = vmul.f32 %v751_v46, %v537_v2 }
 0x38b   :  { %v755_v15 = vpop.permute.xlu1 %754 }
 0x38c   :  { %v757_v62 = vmul.f32 %v755_v15, %v749_v37 }
 0x38e   :  { %v758_v7 = vadd.f32 %v757_v62, %v752_v21 }
 0x390   :  { %760 = vst.msk [vmem:[%s7222_s7] sm:$0x3] %vm759_vm14, %v758_v7 }
 0x391   :  { %764 = vst.msk [vmem:[#allocation2] sm:$0x3] %vm759_vm14, %v758_v7 }
 0x392   :  { %769 = vst.msk [vmem:[#allocation2] sm:$0x3] %vm768_vm4, %v766_v49 }
 0x393   :  { %v772_v40 = vpop.permute.xlu1 %771 }
 0x394   :  { %774 = vst.msk [vmem:[#allocation3] sm:$0x3] %vm38_vm3, %v772_v40 }
 0x399   :  { %v6360_v28 = vld [vmem:[#allocation2] sm:$0x3] }
 0x39a   :  { %v780_v48 = vsel %vm63_vm2, %v6360_v28, 0 }
 0x39b   :  { %v776_v6 = vld [vmem:[#allocation3] sm:$0x3]  ;;  %v803_v27 = vand.u32 4294901760, %v780_v48 }
 0x39c   :  { %1214 = vrot.lane.b32.xlu0 %v776_v6, %s5894_s2 }
 0x39d   :  { %854 = vmatmul.f32.vlgmr.msra.gmra.mxu3 %v803_v27  ;;  %v804_v35 = vsub.f32 %v780_v48, %v803_v27 }
 0x39e   :  { %1100 = vmatpush.msra.mxu3 %v5997_v17 }
 0x39f   :  { %886 = vmatmul.f32.vlgmr.msrb.gmra.mxu0 %v804_v35  ;;  %v805_v37 = vand.u32 4294901760, %v804_v35 }
 0x3a0   :  { %1102 = vmatpush.msra.mxu3 %v5976_v8  ;;  %1130 = vmatpush.msrb.mxu0 %v6057_v36 }
 0x3a1   :  { %914 = vmatmul.f32.vlgmr.msrb.gmra.mxu1 %v805_v37  ;;  %v806_v26 = vsub.f32 %v804_v35, %v805_v37 }
 0x3a2   :  { %1104 = vmatpush.msra.mxu3 %v5978_v9  ;;  %1134 = vmatpush.msrb.mxu0 %v6044_v32 }
 0x3a3   :  { %v807_v1 = vand.u32 4294901760, %v806_v26  ;;  %1164 = vmatpush.msrb.mxu1 %v5997_v17 }
 0x3a4   :  { %1106 = vmatpush.msra.mxu3 %v5970_v5  ;;  %1138 = vmatpush.msrb.mxu0 %v6087_v47 }
 0x3a5   :  { %808 = vmatmul.f32.vlgmr.msra.gmra.mxu2 %v807_v1  ;;  %976 = vmatmul.f32.vlgmr.msrb.gmra.mxu3 %v803_v27 }
 0x3a6   :  { %1166 = vmatpush.msrb.mxu1 %v5976_v8  ;;  %1069 = vmatpush.msra.mxu2 %v6033_v29 }
 0x3a7   :  { %1006 = vmatmul.f32.vlgmr.msra.gmra.mxu0 %v807_v1  ;;  %1108 = vmatpush.msra.mxu3 %v6062_v38 }
 0x3a8   :  { %1142 = vmatpush.msrb.mxu0 %v6112_v56  ;;  %1168 = vmatpush.msrb.mxu1 %v5978_v9 }
 0x3a9   :  { %1052 = vmatmul.f32.vlgmr.msra.gmra.mxu1 %v803_v27  ;;  %1072 = vmatpush.msra.mxu2 %v6018_v24 }
 0x3aa   :  { %1146 = vmatpush.msrb.mxu0 %v6124_v60  ;;  %1170 = vmatpush.msrb.mxu1 %v5970_v5 }
 0x3ab   :  { %1075 = vmatpush.msra.mxu2 %v6047_v33  ;;  %1298 = vmatpush.msrb.mxu3 %v6240_v3 }
 0x3ac   :  { %1172 = vmatpush.msrb.mxu1 %v6062_v38  ;;  %1336 = vmatpush.msra.mxu0 %v6219_v55 }
 0x3ad   :  { %950 = vmatmul.f32.vlgmr.msrb.gmra.mxu2 %v803_v27  ;;  %1112 = vmatmul.f32.vlgmr.msra.gmra.mxu3 %v805_v37 }
 0x3ae   :  { %1078 = vmatpush.msra.mxu2 %v6076_v43  ;;  %1304 = vmatpush.msrb.mxu3 %v6242_v4 }
 0x3af   :  { %1148 = vmatmul.f32.vlgmr.msrb.gmra.mxu0 %v803_v27  ;;  %1365 = vmatpush.msra.mxu1 %v6214_v50 }
 0x3b0   :  { %1081 = vmatpush.msra.mxu2 %v6105_v54  ;;  %1310 = vmatpush.msrb.mxu3 %v6282_v0 }
 0x3b1   :  { %1174 = vmatmul.f32.vlgmr.msrb.gmra.mxu1 %v803_v27  ;;  %1339 = vmatpush.msra.mxu0 %v6222_v58 }
 0x3b2   :  { %1316 = vmatpush.msrb.mxu3 %v6290_v11  ;;  %1367 = vmatpush.msra.mxu1 %v6216_v52 }
 0x3b3   :  { %1342 = vmatpush.msra.mxu0 %v6257_v42  ;;  %1265 = vmatpush.msrb.mxu2 %v6214_v50 }
 0x3b4   :  { %1369 = vmatpush.msra.mxu1 %v6251_v16  ;;  %1425 = vmatpush.msra.mxu3 %v6214_v50 }
 0x3b5   :  { %1084 = vmatmul.f32.vlgmr.msra.gmra.mxu2 %v804_v35  ;;  %1345 = vmatpush.msra.mxu0 %v6267_v41 }
 0x3b6   :  { %1267 = vmatpush.msrb.mxu2 %v6216_v52  ;;  %1371 = vmatpush.msra.mxu1 %v6259_v25 }
 0x3b7   :  { %1427 = vmatpush.msra.mxu3 %v6216_v52  ;;  %1500 = vmatpush.msrb.mxu0 %v5984_v12 }
 0x3b8   :  { %1534 = vmatpush.msrb.mxu1 %v6078_v44  ;;  %1269 = vmatpush.msrb.mxu2 %v6251_v16 }
 0x3b9   :  { %1429 = vmatpush.msra.mxu3 %v6251_v16  ;;  %1502 = vmatpush.msrb.mxu0 %v5986_v13 }
 0x3ba   :  { %1540 = vmatpush.msrb.mxu1 %v6081_v45  ;;  %1271 = vmatpush.msrb.mxu2 %v6259_v25  ;;  %v5737_v45 = vld [vmem:[%s7216_s0 + $0x4] sm:$0xf] }
 0x3bb   :  { %1431 = vmatpush.msra.mxu3 %v6259_v25  ;;  %1504 = vmatpush.msrb.mxu0 %v5999_v18 }
 0x3bc   :  { %1394 = vmatpush.msra.mxu2 %v6227_v59  ;;  %1546 = vmatpush.msrb.mxu1 %v6098_v51 }
 0x3bd   :  { %1506 = vmatpush.msrb.mxu0 %v6001_v19 }
 0x3be   :  { %1398 = vmatpush.msra.mxu2 %v6230_v63  ;;  %1552 = vmatpush.msrb.mxu1 %v6116_v57 }
 0x3bf   :  { %1508 = vmatpush.msrb.mxu0 %v6003_v20 }
 0x3c0   :  { %1402 = vmatpush.msra.mxu2 %v6264_v14  ;;  %1558 = vmatpush.msrb.mxu1 %v6128_v61 }
 0x3c2   :  { %1406 = vmatpush.msra.mxu2 %v7326_v39 }
 0x41c   :  { %v887_v2 = vpop.f32.mrf.mxu0 }
 0x41e   :  { %v915_v21 = vpop.f32.mrf.mxu1 }
 0x420   :  { %v855_v46 = vpop.f32.mrf.mxu3 }
 0x424   :  { %v1007_v49 = vpop.f32.mrf.mxu0 }
 0x426   :  { %v1053_v48 = vpop.f32.mrf.mxu1 }
 0x427   :  { %v1054_v6 = vadd.f32 %v1053_v48, %v1007_v49 }
 0x428   :  { %v809_v15 = vpop.f32.mrf.mxu2  ;;  %v977_v62 = vpop.f32.mrf.mxu3 }
 0x429   :  { %v856_v40 = vadd.f32 %v855_v46, %v809_v15 }
 0x42b   :  { %v888_v27 = vadd.f32 %v887_v2, %v856_v40 }
 0x42c   :  { %v1149_v14 = vpop.f32.mrf.mxu0 }
 0x42d   :  { %v916_v1 = vadd.f32 %v915_v21, %v888_v27 }
 0x42e   :  { %v1175_v39 = vpop.f32.mrf.mxu1 }
 0x430   :  { %v951_v7 = vpop.f32.mrf.mxu2  ;;  %v1113_v26 = vpop.f32.mrf.mxu3 }
 0x431   :  { %v952_v57 = vadd.f32 %v951_v7, %v916_v1  ;;  %v1215_v1 = vpop.permute.xlu0 %1214 }
 0x433   :  { %v978_v59 = vadd.f32 %v977_v62, %v952_v57 }
 0x438   :  { %v1085_v35 = vpop.f32.mrf.mxu2 }
 0x439   :  { %v1086_v37 = vadd.f32 %v1085_v35, %v1054_v6 }
 0x43b   :  { %v1114_v61 = vadd.f32 %v1113_v26, %v1086_v37  ;;  %v5739_v26 = vld [vmem:[%s7217_s1 + $0x2] sm:$0x3] }
 0x43d   :  { %v1150_v63 = vadd.f32 %v1149_v14, %v1114_v61 }
 0x43f   :  { %v1176_v51 = vadd.f32 %v1175_v39, %v1150_v63 }
 0x441   :  { %v1180_v44 = vrot.slane %v1176_v51, 6 }
 0x443   :  { %v1181_v46 = vsel %vm67_vm0, %v978_v59, %v1180_v44 }
 0x444   :  { %v1183_v15 = vadd.f32 %v5737_v45, %v1181_v46 }
 0x446   :  { %5807 = vtanh.f32 %v1183_v15  ;;  %v5738_v2 = vmul.f32 -1.442695, %v1183_v15 }
 0x448   :  { %5809 = vpow2.f32 %v5738_v2 }
 0x44c   :  { %v5808_v49 = vpop.eup %5807 }
 0x44d   :  { %1205 = vst [vmem:[#allocation1] ss:$4 sm:$0xff] %v5808_v49 }
 0x44e   :  { %v5810_v21 = vpop.eup %5809 }
 0x44f   :  { %v1188_v40 = vadd.f32 1.0, %v5810_v21 }
 0x451   :  { %5811 = vrcp.f32 %v1188_v40  ;;  %v1200_v57 = vand.u32 2147483648, %v1188_v40  ;;  %v1198_v62 = vand.u32 2147483647, %v1188_v40  ;;  %vm1194_vm6 = vweird.f32 %v1188_v40 }
 0x453   :  { %v1201_v44 = vor.u32 1.1754944e-38, %v1200_v57  ;;  %vm1199_vm8 = vcmp.eq.f32.partialorder %v1198_v62, 8.507059e+37 }
 0x454   :  { %v1206_v59 = vld.sshfl [vmem:[#allocation1] sm:$0xff pattern:$0x73625140] }
 0x457   :  { %v5812_v61 = vpop.eup %5811 }
 0x458   :  { %v1190_v14 = vmul.f32 %v5812_v61, %v1188_v40  ;;  %vm1195_vm5 = vweird.f32 %v5812_v61 }
 0x459   :  { %vm1196_vm7 = vmor %vm1194_vm6, %vm1195_vm5 }
 0x45a   :  { %v1191_v63 = vsub.f32 1.0, %v1190_v14 }
 0x45c   :  { %v1192_v39 = vmul.f32 %v5812_v61, %v1191_v63 }
 0x45e   :  { %v1193_v7 = vadd.f32 %v5812_v61, %v1192_v39 }
 0x460   :  { %v1197_v45 = vsel %vm1196_vm7, %v5812_v61, %v1193_v7 }
 0x461   :  { %v1202_v51 = vsel %vm1199_vm8, %v1201_v44, %v1197_v45 }
 0x462   :  { %1209 = vst [vmem:[#allocation1] ss:$4 sm:$0xff] %v1202_v51 }
 0x469   :  { %v1210_v48 = vld.sshfl [vmem:[#allocation1] sm:$0xff pattern:$0x73625140] }
 0x46a   :  { %1242 = vst [vmem:[#allocation1] ss:$4 sm:$0xff] %v1183_v15  ;;  %v1212_v27 = vsel %vm6193_vm10, %v1206_v59, %v1210_v48  ;;  %v7328_v59 = vld [vmem:[#allocation15_spill] sm:$0xff]  ;;  %v7329_v48 = vld [vmem:[#allocation4_spill] sm:$0xff] }
 0x46b   :  { %1219 = vrot.lane.b32.xlu2 %v1212_v27, %s5896_s19  ;;  %v1217_v46 = vmul.f32 %v1215_v1, %v1212_v27  ;;  %v7334_v1 = vld [vmem:[#allocation17_spill] sm:$0xff] }
 0x4c5   :  { %v1220_v35 = vpop.permute.xlu2 %1219 }
 0x4c6   :  { %v1222_v37 = vmul.f32 %v1220_v35, %v1212_v27  ;;  %v7331_v35 = vld [vmem:[#allocation16_spill] sm:$0xff] }
 0x4c8   :  { %1224 = vrot.lane.b32.xlu1 %v1222_v37, %s5894_s2  ;;  %v7332_v37 = vld [vmem:[#allocation5_spill] sm:$0xff] }
 0x4d0   :  { %1238 = vperm.xlu1 %5793, %v5739_v26   ;;  %v7333_v26 = vld [vmem:[#allocation8_spill] sm:$0xff] }
 0x53a   :  { %v1225_v2 = vpop.permute.xlu1 %1224 }
 0x53b   :  { %v1227_v49 = vadd.f32 %v1225_v2, %v1217_v46  ;;  %v7335_v46 = vld [vmem:[#allocation6_spill] sm:$0xff] }
 0x53c   :  { %v7336_v2 = vld [vmem:[#allocation18_spill] sm:$0xff] }
 0x53d   :  { %5813 = vtanh.f32 %v1227_v49  ;;  %1477 = vrot.lane.b32.xlu1 %v1227_v49, %s5898_s13 }
 0x542   :  { %v6433_v61 = vpop.permute.xlu1 %1238 }
 0x543   :  { %v5814_v15 = vpop.eup %5813 }
 0x544   :  { %1230 = vrot.lane.b32.xlu2 %v5814_v15, %s5896_s19 }
 0x59e   :  { %v1231_v21 = vpop.permute.xlu2 %1230 }
 0x59f   :  { %v1233_v40 = vmul.f32 %v1231_v21, %v1212_v27  ;;  %v7330_v27 = vld [vmem:[#allocation7_spill] sm:$0xff] }
 0x5a1   :  { %1248 = vrot.lane.b32.xlu0 %v1233_v40, %s5894_s2 }
 0x5a9   :  { %1472 = vrot.lane.b32.xlu0 %v1233_v40, %s5897_s25 }
 0x5af   :  { %v1478_v14 = vpop.permute.xlu1 %1477 }
 0x5b0   :  { %1480 = vst.msk [vmem:[#allocation3] sm:$0x3] %vm38_vm3, %v1478_v14 }
 0x5b7   :  { %v1482_v63 = vld [vmem:[#allocation3] sm:$0x3] }
 0x5b8   :  { %1920 = vrot.lane.b32.xlu0 %v1482_v63, %s5894_s2 }
 0x613   :  { %v1249_v57 = vpop.permute.xlu0 %1248 }
 0x614   :  { %v1250_v39 = vsel %vm544_vm11, %v1249_v57, 0  ;;  %5742 = vst.msk [vmem:[%s7219_s8 + $0x2] sm:$0x3] %vm38_vm3, %v1249_v57 }
 0x615   :  { %v1272_v62 = vand.u32 4294901760, %v1250_v39 }
 0x617   :  { %v1273_v7 = vsub.f32 %v1250_v39, %v1272_v62  ;;  %1318 = vmatmul.f32.vlgmr.msrb.gmra.mxu3 %v1272_v62 }
 0x618   :  { %1608 = vmatpush.msrb.mxu3 %v5984_v12 }
 0x619   :  { %v1274_v44 = vand.u32 4294901760, %v1273_v7  ;;  %1348 = vmatmul.f32.vlgmr.msra.gmra.mxu0 %v1273_v7 }
 0x61a   :  { %1610 = vmatpush.msrb.mxu3 %v5986_v13  ;;  %1638 = vmatpush.msra.mxu0 %v6038_v30 }
 0x61b   :  { %v1275_v45 = vsub.f32 %v1273_v7, %v1274_v44  ;;  %1375 = vmatmul.f32.vlgmr.msra.gmra.mxu1 %v1274_v44 }
 0x61c   :  { %1612 = vmatpush.msrb.mxu3 %v5999_v18  ;;  %1672 = vmatpush.msra.mxu1 %v5984_v12 }
 0x61d   :  { %v1276_v51 = vand.u32 4294901760, %v1275_v45  ;;  %1642 = vmatpush.msra.mxu0 %v6041_v31 }
 0x61e   :  { %1614 = vmatpush.msrb.mxu3 %v6001_v19  ;;  %1674 = vmatpush.msra.mxu1 %v5986_v13 }
 0x61f   :  { %1277 = vmatmul.f32.vlgmr.msrb.gmra.mxu2 %v1276_v51  ;;  %1433 = vmatmul.f32.vlgmr.msra.gmra.mxu3 %v1272_v62 }
 0x620   :  { %1577 = vmatpush.msrb.mxu2 %v6009_v22  ;;  %1616 = vmatpush.msrb.mxu3 %v6003_v20 }
 0x621   :  { %1676 = vmatpush.msra.mxu1 %v5999_v18  ;;  %1646 = vmatpush.msra.mxu0 %v6051_v34 }
 0x622   :  { %1732 = vmatpush.msra.mxu3 %v6102_v53  ;;  %1580 = vmatpush.msrb.mxu2 %v6014_v23 }
 0x623   :  { %1678 = vmatpush.msra.mxu1 %v6001_v19  ;;  %1650 = vmatpush.msra.mxu0 %v7330_v27 }
 0x624   :  { %1738 = vmatpush.msra.mxu3 %v7328_v59  ;;  %1583 = vmatpush.msrb.mxu2 %v7329_v48 }
 0x625   :  { %1680 = vmatpush.msra.mxu1 %v6003_v20  ;;  %1654 = vmatpush.msra.mxu0 %v7333_v26 }
 0x626   :  { %1744 = vmatpush.msra.mxu3 %v7331_v35  ;;  %1586 = vmatpush.msrb.mxu2 %v7332_v37 }
 0x627   :  { %1408 = vmatmul.f32.vlgmr.msra.gmra.mxu2 %v1272_v62 }
 0x628   :  { %1750 = vmatpush.msra.mxu3 %v7334_v1  ;;  %1589 = vmatpush.msrb.mxu2 %v7335_v46 }
 0x62a   :  { %1698 = vmatpush.msra.mxu2 %v5997_v17  ;;  %1756 = vmatpush.msra.mxu3 %v7336_v2 }
 0x62c   :  { %1700 = vmatpush.msra.mxu2 %v5976_v8 }
 0x62e   :  { %1702 = vmatpush.msra.mxu2 %v5978_v9 }
 0x630   :  { %1704 = vmatpush.msra.mxu2 %v5970_v5 }
 0x632   :  { %1706 = vmatpush.msra.mxu2 %v6062_v38 }
 0x696   :  { %v1349_v14 = vpop.f32.mrf.mxu0 }
 0x698   :  { %v1376_v57 = vpop.f32.mrf.mxu1 }
 0x69a   :  { %v1319_v49 = vpop.f32.mrf.mxu3 }
 0x6a2   :  { %v1278_v15 = vpop.f32.mrf.mxu2  ;;  %v1434_v44 = vpop.f32.mrf.mxu3 }
 0x6a3   :  { %v1279_v21 = vadd.f32 %v6342_v10, %v1278_v15 }
 0x6a5   :  { %v1320_v40 = vadd.f32 %v1319_v49, %v1279_v21 }
 0x6a7   :  { %v1350_v63 = vadd.f32 %v1349_v14, %v1320_v40 }
 0x6a9   :  { %v1377_v39 = vadd.f32 %v1376_v57, %v1350_v63 }
 0x6aa   :  { %v1409_v62 = vpop.f32.mrf.mxu2 }
 0x6ab   :  { %v1410_v7 = vadd.f32 %v1409_v62, %v1377_v39 }
 0x6ad   :  { %v1435_v45 = vadd.f32 %v1434_v44, %v1410_v7 }
 0x6af   :  { %v5740_v51 = vmul.f32 -1.442695, %v1435_v45  ;;  %1459 = vrot.lane.b32.xlu2 %v1435_v45, %s5893_s17 }
 0x6b1   :  { %5815 = vpow2.f32 %v5740_v51 }
 0x6b7   :  { %v5816_v2 = vpop.eup %5815 }
 0x6b8   :  { %v1440_v46 = vadd.f32 1.0, %v5816_v2  ;;  %v1243_v2 = vld.sshfl [vmem:[#allocation1 + $0x8] sm:$0xff pattern:$0x73625140] }
 0x6b9   :  { %v1245_v39 = vmul.f32 %v1243_v2, %v6433_v61  ;;  %v7341_v2 = vld [vmem:[#allocation24_spill] sm:$0xff] }
 0x6ba   :  { %5817 = vrcp.f32 %v1440_v46  ;;  %v1452_v15 = vand.u32 2147483648, %v1440_v46  ;;  %v1450_v21 = vand.u32 2147483647, %v1440_v46  ;;  %vm1446_vm12 = vweird.f32 %v1440_v46 }
 0x6bc   :  { %v1453_v14 = vor.u32 1.1754944e-38, %v1452_v15  ;;  %vm1451_vm15 = vcmp.eq.f32.partialorder %v1450_v21, 8.507059e+37 }
 0x6c0   :  { %v5818_v1 = vpop.eup %5817 }
 0x6c1   :  { %v1442_v26 = vmul.f32 %v5818_v1, %v1440_v46  ;;  %vm1447_vm9 = vweird.f32 %v5818_v1 }
 0x6c2   :  { %vm1448_vm13 = vmor %vm1446_vm12, %vm1447_vm9 }
 0x6c3   :  { %v1443_v37 = vsub.f32 1.0, %v1442_v26 }
 0x6c5   :  { %v1444_v49 = vmul.f32 %v5818_v1, %v1443_v37  ;;  %v1246_v37 = vadd.f32 %v1245_v39, %v6360_v28  ;;  %v7342_v39 = vld [vmem:[#allocation13_spill] sm:$0xff] }
 0x6c7   :  { %v1445_v40 = vadd.f32 %v5818_v1, %v1444_v49 }
 0x6c9   :  { %v1449_v63 = vsel %vm1448_vm13, %v5818_v1, %v1445_v40  ;;  %v1473_v1 = vpop.permute.xlu0 %1472  ;;  %v7337_v40 = vld [vmem:[#allocation9_spill] sm:$0xff] }
 0x6ca   :  { %v1454_v57 = vsel %vm1451_vm15, %v1453_v14, %v1449_v63  ;;  %v7338_v14 = vld [vmem:[#allocation10_spill] sm:$0xff]  ;;  %v7339_v63 = vld [vmem:[#allocation23_spill] sm:$0xff] }
 0x6cb   :  { %5743 = vst.msk [vmem:[%s7221_s9 + $0x2] sm:$0x3] %vm759_vm14, %v1454_v57  ;;  %v1456_v26 = vsub.f32 1.0, %v1454_v57 }
 0x6cd   :  { %v1457_v7 = vmul.f32 %v1456_v26, %v1246_v37  ;;  %v7343_v26 = vld [vmem:[#allocation28_spill] sm:$0xff]  ;;  %v7344_v37 = vld [vmem:[#allocation14_spill] sm:$0xff] }
 0x709   :  { %v1460_v62 = vpop.permute.xlu2 %1459 }
 0x70a   :  { %v1462_v44 = vmul.f32 %v1460_v62, %v1454_v57  ;;  %v7340_v57 = vld [vmem:[#allocation11_spill] sm:$0xff]  ;;  %v7345_v62 = vld [vmem:[#allocation30_spill] sm:$0xff] }
 0x70c   :  { %v1463_v46 = vadd.f32 %v1462_v44, %v1457_v7 }
 0x70e   :  { %5741 = vst.msk [vmem:[%s7222_s7 + $0x2] sm:$0x3] %vm759_vm14, %v1463_v46 }
 0x70f   :  { %1471 = vst.msk [vmem:[#allocation2] sm:$0x3] %vm759_vm14, %v1463_v46 }
 0x710   :  { %1475 = vst.msk [vmem:[#allocation2] sm:$0x3] %vm768_vm4, %v1473_v1 }
 0x717   :  { %v6487_v45 = vld [vmem:[#allocation2] sm:$0x3] }
 0x718   :  { %v1486_v61 = vsel %vm63_vm2, %v6487_v45, 0 }
 0x719   :  { %v1509_v28 = vand.u32 4294901760, %v1486_v61 }
 0x71b   :  { %1560 = vmatmul.f32.vlgmr.msrb.gmra.mxu1 %v1509_v28  ;;  %v1510_v51 = vsub.f32 %v1486_v61, %v1509_v28 }
 0x71c   :  { %1806 = vmatpush.msrb.mxu1 %v5997_v17 }
 0x71d   :  { %1592 = vmatmul.f32.vlgmr.msrb.gmra.mxu2 %v1510_v51  ;;  %v1511_v15 = vand.u32 4294901760, %v1510_v51 }
 0x71e   :  { %1808 = vmatpush.msrb.mxu1 %v5976_v8  ;;  %1836 = vmatpush.msrb.mxu2 %v6057_v36 }
 0x71f   :  { %1620 = vmatmul.f32.vlgmr.msrb.gmra.mxu3 %v1511_v15  ;;  %v1512_v49 = vsub.f32 %v1510_v51, %v1511_v15 }
 0x720   :  { %1810 = vmatpush.msrb.mxu1 %v5978_v9  ;;  %1840 = vmatpush.msrb.mxu2 %v6044_v32 }
 0x721   :  { %v1513_v21 = vand.u32 4294901760, %v1512_v49  ;;  %1870 = vmatpush.msrb.mxu3 %v5997_v17 }
 0x722   :  { %1812 = vmatpush.msrb.mxu1 %v5970_v5  ;;  %1844 = vmatpush.msrb.mxu2 %v6087_v47 }
 0x723   :  { %1514 = vmatmul.f32.vlgmr.msrb.gmra.mxu0 %v1513_v21  ;;  %1682 = vmatmul.f32.vlgmr.msra.gmra.mxu1 %v1509_v28 }
 0x724   :  { %1872 = vmatpush.msrb.mxu3 %v5976_v8  ;;  %1775 = vmatpush.msrb.mxu0 %v6033_v29 }
 0x725   :  { %1712 = vmatmul.f32.vlgmr.msra.gmra.mxu2 %v1513_v21  ;;  %1814 = vmatpush.msrb.mxu1 %v6062_v38 }
 0x726   :  { %1848 = vmatpush.msrb.mxu2 %v6112_v56  ;;  %1874 = vmatpush.msrb.mxu3 %v5978_v9 }
 0x727   :  { %1758 = vmatmul.f32.vlgmr.msra.gmra.mxu3 %v1509_v28  ;;  %1778 = vmatpush.msrb.mxu0 %v6018_v24 }
 0x728   :  { %1852 = vmatpush.msrb.mxu2 %v6124_v60  ;;  %1876 = vmatpush.msrb.mxu3 %v5970_v5 }
 0x729   :  { %1781 = vmatpush.msrb.mxu0 %v6047_v33  ;;  %2004 = vmatpush.msra.mxu1 %v6240_v3 }
 0x72a   :  { %1878 = vmatpush.msrb.mxu3 %v6062_v38  ;;  %2042 = vmatpush.msra.mxu2 %v6219_v55 }
 0x72b   :  { %1656 = vmatmul.f32.vlgmr.msra.gmra.mxu0 %v1509_v28  ;;  %1818 = vmatmul.f32.vlgmr.msrb.gmra.mxu1 %v1511_v15 }
 0x72c   :  { %1784 = vmatpush.msrb.mxu0 %v6076_v43  ;;  %2010 = vmatpush.msra.mxu1 %v6242_v4 }
 0x72d   :  { %1854 = vmatmul.f32.vlgmr.msrb.gmra.mxu2 %v1509_v28  ;;  %2071 = vmatpush.msra.mxu3 %v6214_v50 }
 0x72e   :  { %1787 = vmatpush.msrb.mxu0 %v6105_v54  ;;  %2016 = vmatpush.msra.mxu1 %v6282_v0 }
 0x72f   :  { %1880 = vmatmul.f32.vlgmr.msrb.gmra.mxu3 %v1509_v28  ;;  %2045 = vmatpush.msra.mxu2 %v6222_v58 }
 0x730   :  { %2022 = vmatpush.msra.mxu1 %v6290_v11  ;;  %2073 = vmatpush.msra.mxu3 %v6216_v52 }
 0x731   :  { %2048 = vmatpush.msra.mxu2 %v6257_v42  ;;  %1971 = vmatpush.msra.mxu0 %v6214_v50  ;;  %v5744_v42 = vld [vmem:[%s7216_s0 + $0x8] sm:$0xf] }
 0x732   :  { %2075 = vmatpush.msra.mxu3 %v6251_v16  ;;  %2131 = vmatpush.msrb.mxu1 %v6214_v50 }
 0x733   :  { %1790 = vmatmul.f32.vlgmr.msrb.gmra.mxu0 %v1510_v51  ;;  %2051 = vmatpush.msra.mxu2 %v6267_v41 }
 0x734   :  { %1973 = vmatpush.msra.mxu0 %v6216_v52  ;;  %2077 = vmatpush.msra.mxu3 %v6259_v25 }
 0x735   :  { %2133 = vmatpush.msrb.mxu1 %v6216_v52  ;;  %2206 = vmatpush.msrb.mxu2 %v5984_v12 }
 0x736   :  { %2240 = vmatpush.msrb.mxu3 %v7337_v40  ;;  %1975 = vmatpush.msra.mxu0 %v6251_v16 }
 0x737   :  { %2135 = vmatpush.msrb.mxu1 %v6251_v16  ;;  %2208 = vmatpush.msrb.mxu2 %v5986_v13 }
 0x738   :  { %2246 = vmatpush.msrb.mxu3 %v7338_v14  ;;  %1977 = vmatpush.msra.mxu0 %v6259_v25 }
 0x739   :  { %2137 = vmatpush.msrb.mxu1 %v6259_v25  ;;  %2210 = vmatpush.msrb.mxu2 %v5999_v18 }
 0x73a   :  { %2100 = vmatpush.msrb.mxu0 %v7339_v63  ;;  %2252 = vmatpush.msrb.mxu3 %v7340_v57 }
 0x73b   :  { %2212 = vmatpush.msrb.mxu2 %v6001_v19 }
 0x73c   :  { %2104 = vmatpush.msrb.mxu0 %v7341_v2  ;;  %2258 = vmatpush.msrb.mxu3 %v7342_v39 }
 0x73d   :  { %2214 = vmatpush.msrb.mxu2 %v6003_v20 }
 0x73e   :  { %2108 = vmatpush.msrb.mxu0 %v7343_v26  ;;  %2264 = vmatpush.msrb.mxu3 %v7344_v37 }
 0x740   :  { %2112 = vmatpush.msrb.mxu0 %v7345_v62 }
 0x798   :  { %v1561_v7 = vpop.f32.mrf.mxu1 }
 0x7a0   :  { %v1515_v44 = vpop.f32.mrf.mxu0  ;;  %v1593_v46 = vpop.f32.mrf.mxu2 }
 0x7a1   :  { %v1683_v61 = vpop.f32.mrf.mxu1  ;;  %v1562_v15 = vadd.f32 %v1561_v7, %v1515_v44 }
 0x7a2   :  { %v1621_v1 = vpop.f32.mrf.mxu3 }
 0x7a3   :  { %v1594_v21 = vadd.f32 %v1593_v46, %v1562_v15  ;;  %v5746_v15 = vld [vmem:[%s7217_s1 + $0x4] sm:$0x3] }
 0x7a5   :  { %v1622_v63 = vadd.f32 %v1621_v1, %v1594_v21 }
 0x7a8   :  { %v1657_v28 = vpop.f32.mrf.mxu0  ;;  %v1713_v51 = vpop.f32.mrf.mxu2 }
 0x7a9   :  { %v1819_v26 = vpop.f32.mrf.mxu1  ;;  %v1658_v40 = vadd.f32 %v1657_v28, %v1622_v63 }
 0x7aa   :  { %v1759_v49 = vpop.f32.mrf.mxu3 }
 0x7ab   :  { %v1760_v39 = vadd.f32 %v1759_v49, %v1713_v51  ;;  %v1684_v16 = vadd.f32 %v1683_v61, %v1658_v40  ;;  %v1921_v49 = vpop.permute.xlu0 %1920 }
 0x7b0   :  { %v1791_v2 = vpop.f32.mrf.mxu0  ;;  %v1855_v14 = vpop.f32.mrf.mxu2 }
 0x7b1   :  { %v1792_v57 = vadd.f32 %v1791_v2, %v1760_v39 }
 0x7b2   :  { %v1881_v62 = vpop.f32.mrf.mxu3 }
 0x7b3   :  { %v1820_v37 = vadd.f32 %v1819_v26, %v1792_v57 }
 0x7b5   :  { %v1856_v25 = vadd.f32 %v1855_v14, %v1820_v37 }
 0x7b7   :  { %v1882_v41 = vadd.f32 %v1881_v62, %v1856_v25 }
 0x7b9   :  { %v1886_v52 = vrot.slane %v1882_v41, 6 }
 0x7bb   :  { %v1887_v7 = vsel %vm67_vm0, %v1684_v16, %v1886_v52 }
 0x7bc   :  { %v1889_v44 = vadd.f32 %v5744_v42, %v1887_v7 }
 0x7be   :  { %5819 = vtanh.f32 %v1889_v44  ;;  %v5745_v46 = vmul.f32 -1.442695, %v1889_v44 }
 0x7c0   :  { %5821 = vpow2.f32 %v5745_v46 }
 0x7c4   :  { %v5820_v2 = vpop.eup %5819 }
 0x7c5   :  { %1911 = vst [vmem:[#allocation1] ss:$4 sm:$0xff] %v5820_v2 }
 0x7c6   :  { %v5822_v57 = vpop.eup %5821 }
 0x7c7   :  { %v1894_v39 = vadd.f32 1.0, %v5822_v57 }
 0x7c9   :  { %5823 = vrcp.f32 %v1894_v39  ;;  %v1906_v40 = vand.u32 2147483648, %v1894_v39  ;;  %v1904_v37 = vand.u32 2147483647, %v1894_v39  ;;  %vm1900_vm5 = vweird.f32 %v1894_v39 }
 0x7cb   :  { %v1907_v52 = vor.u32 1.1754944e-38, %v1906_v40  ;;  %vm1905_vm7 = vcmp.eq.f32.partialorder %v1904_v37, 8.507059e+37 }
 0x7cc   :  { %v1912_v41 = vld.sshfl [vmem:[#allocation1] sm:$0xff pattern:$0x73625140] }
 0x7cf   :  { %v5824_v14 = vpop.eup %5823 }
 0x7d0   :  { %v1896_v63 = vmul.f32 %v5824_v14, %v1894_v39  ;;  %vm1901_vm1 = vweird.f32 %v5824_v14 }
 0x7d1   :  { %vm1902_vm6 = vmor %vm1900_vm5, %vm1901_vm1 }
 0x7d2   :  { %v1897_v25 = vsub.f32 1.0, %v1896_v63 }
 0x7d4   :  { %v1898_v26 = vmul.f32 %v5824_v14, %v1897_v25 }
 0x7d6   :  { %v1899_v62 = vadd.f32 %v5824_v14, %v1898_v26 }
 0x7d8   :  { %v1903_v16 = vsel %vm1902_vm6, %v5824_v14, %v1899_v62 }
 0x7d9   :  { %v1908_v42 = vsel %vm1905_vm7, %v1907_v52, %v1903_v16 }
 0x7da   :  { %1915 = vst [vmem:[#allocation1] ss:$4 sm:$0xff] %v1908_v42  ;;  %v7346_v42 = vld [vmem:[#allocation5_spill] sm:$0xff] }
 0x7e1   :  { %v1916_v1 = vld.sshfl [vmem:[#allocation1] sm:$0xff pattern:$0x73625140] }
 0x7e2   :  { %1948 = vst [vmem:[#allocation1] ss:$4 sm:$0xff] %v1889_v44  ;;  %v1918_v61 = vsel %vm6193_vm10, %v1912_v41, %v1916_v1  ;;  %v7347_v41 = vld [vmem:[#allocation8_spill] sm:$0xff]  ;;  %v7348_v1 = vld [vmem:[#allocation17_spill] sm:$0xff] }
 0x7e3   :  { %1925 = vrot.lane.b32.xlu2 %v1918_v61, %s5896_s19  ;;  %v1923_v21 = vmul.f32 %v1921_v49, %v1918_v61 }
 0x83d   :  { %v1926_v28 = vpop.permute.xlu2 %1925 }
 0x83e   :  { %v1928_v51 = vmul.f32 %v1926_v28, %v1918_v61  ;;  %v7350_v28 = vld [vmem:[#allocation18_spill] sm:$0xff] }
 0x840   :  { %1930 = vrot.lane.b32.xlu1 %v1928_v51, %s5894_s2 }
 0x848   :  { %1944 = vperm.xlu1 %5793, %v5746_v15  }
 0x8b2   :  { %v1931_v7 = vpop.permute.xlu1 %1930 }
 0x8b3   :  { %v1933_v46 = vadd.f32 %v1931_v7, %v1923_v21 }
 0x8b5   :  { %5825 = vtanh.f32 %v1933_v46  ;;  %2183 = vrot.lane.b32.xlu1 %v1933_v46, %s5898_s13 }
 0x8ba   :  { %v6559_v39 = vpop.permute.xlu1 %1944 }
 0x8bb   :  { %v5826_v44 = vpop.eup %5825 }
 0x8bc   :  { %1936 = vrot.lane.b32.xlu2 %v5826_v44, %s5896_s19 }
 0x916   :  { %v1937_v2 = vpop.permute.xlu2 %1936 }
 0x917   :  { %v1939_v57 = vmul.f32 %v1937_v2, %v1918_v61  ;;  %v7349_v61 = vld [vmem:[#allocation6_spill] sm:$0xff] }
 0x919   :  { %1954 = vrot.lane.b32.xlu0 %v1939_v57, %s5894_s2 }
 0x921   :  { %2178 = vrot.lane.b32.xlu0 %v1939_v57, %s5897_s25 }
 0x927   :  { %v2184_v14 = vpop.permute.xlu1 %2183 }
 0x928   :  { %2186 = vst.msk [vmem:[#allocation3] sm:$0x3] %vm38_vm3, %v2184_v14 }
 0x92f   :  { %v2188_v63 = vld [vmem:[#allocation3] sm:$0x3] }
 0x930   :  { %2626 = vrot.lane.b32.xlu0 %v2188_v63, %s5894_s2 }
 0x98b   :  { %v1955_v25 = vpop.permute.xlu0 %1954 }
 0x98c   :  { %v1956_v40 = vsel %vm544_vm11, %v1955_v25, 0  ;;  %5749 = vst.msk [vmem:[%s7219_s8 + $0x4] sm:$0x3] %vm38_vm3, %v1955_v25 }
 0x98d   :  { %v1978_v26 = vand.u32 4294901760, %v1956_v40 }
 0x98f   :  { %v1979_v37 = vsub.f32 %v1956_v40, %v1978_v26  ;;  %2024 = vmatmul.f32.vlgmr.msra.gmra.mxu1 %v1978_v26 }
 0x990   :  { %2314 = vmatpush.msra.mxu1 %v5984_v12 }
 0x991   :  { %v1980_v62 = vand.u32 4294901760, %v1979_v37  ;;  %2054 = vmatmul.f32.vlgmr.msra.gmra.mxu2 %v1979_v37 }
 0x992   :  { %2316 = vmatpush.msra.mxu1 %v5986_v13  ;;  %2344 = vmatpush.msra.mxu2 %v6038_v30 }
 0x993   :  { %v1981_v52 = vsub.f32 %v1979_v37, %v1980_v62  ;;  %2081 = vmatmul.f32.vlgmr.msra.gmra.mxu3 %v1980_v62 }
 0x994   :  { %2318 = vmatpush.msra.mxu1 %v5999_v18  ;;  %2378 = vmatpush.msra.mxu3 %v5984_v12 }
 0x995   :  { %v1982_v16 = vand.u32 4294901760, %v1981_v52  ;;  %2348 = vmatpush.msra.mxu2 %v6041_v31 }
 0x996   :  { %2320 = vmatpush.msra.mxu1 %v6001_v19  ;;  %2380 = vmatpush.msra.mxu3 %v5986_v13 }
 0x997   :  { %1983 = vmatmul.f32.vlgmr.msra.gmra.mxu0 %v1982_v16  ;;  %2139 = vmatmul.f32.vlgmr.msrb.gmra.mxu1 %v1978_v26 }
 0x998   :  { %2283 = vmatpush.msra.mxu0 %v6009_v22  ;;  %2322 = vmatpush.msra.mxu1 %v6003_v20 }
 0x999   :  { %2382 = vmatpush.msra.mxu3 %v5999_v18  ;;  %2352 = vmatpush.msra.mxu2 %v6051_v34 }
 0x99a   :  { %2438 = vmatpush.msrb.mxu1 %v6102_v53  ;;  %2286 = vmatpush.msra.mxu0 %v6014_v23 }
 0x99b   :  { %2384 = vmatpush.msra.mxu3 %v6001_v19  ;;  %2356 = vmatpush.msra.mxu2 %v7330_v27 }
 0x99c   :  { %2444 = vmatpush.msrb.mxu1 %v7328_v59  ;;  %2289 = vmatpush.msra.mxu0 %v7329_v48 }
 0x99d   :  { %2386 = vmatpush.msra.mxu3 %v6003_v20  ;;  %2360 = vmatpush.msra.mxu2 %v7347_v41 }
 0x99e   :  { %2450 = vmatpush.msrb.mxu1 %v7331_v35  ;;  %2292 = vmatpush.msra.mxu0 %v7346_v42 }
 0x99f   :  { %2114 = vmatmul.f32.vlgmr.msrb.gmra.mxu0 %v1978_v26 }
 0x9a0   :  { %2456 = vmatpush.msrb.mxu1 %v7348_v1  ;;  %2295 = vmatpush.msra.mxu0 %v7349_v61 }
 0x9a2   :  { %2404 = vmatpush.msrb.mxu0 %v5997_v17  ;;  %2462 = vmatpush.msrb.mxu1 %v7350_v28 }
 0x9a4   :  { %2406 = vmatpush.msrb.mxu0 %v5976_v8 }
 0x9a6   :  { %2408 = vmatpush.msrb.mxu0 %v5978_v9 }
 0x9a8   :  { %2410 = vmatpush.msrb.mxu0 %v5970_v5 }
 0x9aa   :  { %2412 = vmatpush.msrb.mxu0 %v6062_v38 }
 0xa0c   :  { %v2025_v51 = vpop.f32.mrf.mxu1 }
 0xa14   :  { %v1984_v15 = vpop.f32.mrf.mxu0  ;;  %v2055_v7 = vpop.f32.mrf.mxu2 }
 0xa15   :  { %v1985_v49 = vadd.f32 %v6342_v10, %v1984_v15  ;;  %v2140_v63 = vpop.f32.mrf.mxu1 }
 0xa16   :  { %v2082_v44 = vpop.f32.mrf.mxu3 }
 0xa17   :  { %v2026_v21 = vadd.f32 %v2025_v51, %v1985_v49 }
 0xa19   :  { %v2056_v46 = vadd.f32 %v2055_v7, %v2026_v21 }
 0xa1b   :  { %v2083_v2 = vadd.f32 %v2082_v44, %v2056_v46  ;;  %v1949_v44 = vld.sshfl [vmem:[#allocation1 + $0x8] sm:$0xff pattern:$0x73625140] }
 0xa1c   :  { %v2115_v57 = vpop.f32.mrf.mxu0 }
 0xa1d   :  { %v2116_v14 = vadd.f32 %v2115_v57, %v2083_v2  ;;  %v1951_v2 = vmul.f32 %v1949_v44, %v6559_v39  ;;  %v7356_v44 = vld [vmem:[#allocation9_spill] sm:$0xff] }
 0xa1f   :  { %v2141_v25 = vadd.f32 %v2140_v63, %v2116_v14  ;;  %v1952_v14 = vadd.f32 %v1951_v2, %v6487_v45  ;;  %v7357_v2 = vld [vmem:[#allocation10_spill] sm:$0xff] }
 0xa21   :  { %v5747_v40 = vmul.f32 -1.442695, %v2141_v25  ;;  %2165 = vrot.lane.b32.xlu2 %v2141_v25, %s5893_s17 }
 0xa23   :  { %5827 = vpow2.f32 %v5747_v40 }
 0xa29   :  { %v5828_v26 = vpop.eup %5827 }
 0xa2a   :  { %v2146_v37 = vadd.f32 1.0, %v5828_v26 }
 0xa2c   :  { %5829 = vrcp.f32 %v2146_v37  ;;  %v2158_v10 = vand.u32 2147483648, %v2146_v37  ;;  %v2156_v15 = vand.u32 2147483647, %v2146_v37  ;;  %vm2152_vm9 = vweird.f32 %v2146_v37 }
 0xa2e   :  { %v2159_v21 = vor.u32 1.1754944e-38, %v2158_v10  ;;  %vm2157_vm13 = vcmp.eq.f32.partialorder %v2156_v15, 8.507059e+37  ;;  %v7351_v15 = vld [vmem:[#allocation21_spill] sm:$0xff] }
 0xa32   :  { %v5830_v62 = vpop.eup %5829 }
 0xa33   :  { %v2148_v52 = vmul.f32 %v5830_v62, %v2146_v37  ;;  %vm2153_vm8 = vweird.f32 %v5830_v62  ;;  %v2179_v37 = vpop.permute.xlu0 %2178 }
 0xa34   :  { %vm2154_vm12 = vmor %vm2152_vm9, %vm2153_vm8 }
 0xa35   :  { %v2149_v16 = vsub.f32 1.0, %v2148_v52 }
 0xa37   :  { %v2150_v51 = vmul.f32 %v5830_v62, %v2149_v16 }
 0xa39   :  { %v2151_v49 = vadd.f32 %v5830_v62, %v2150_v51 }
 0xa3b   :  { %v2155_v7 = vsel %vm2154_vm12, %v5830_v62, %v2151_v49  ;;  %v7352_v49 = vld [vmem:[#allocation26_spill] sm:$0xff] }
 0xa3c   :  { %v2160_v46 = vsel %vm2157_vm13, %v2159_v21, %v2155_v7  ;;  %v7353_v21 = vld [vmem:[#allocation25_spill] sm:$0xff] }
 0xa3d   :  { %5750 = vst.msk [vmem:[%s7221_s9 + $0x4] sm:$0x3] %vm759_vm14, %v2160_v46  ;;  %v2162_v57 = vsub.f32 1.0, %v2160_v46  ;;  %v7354_v7 = vld [vmem:[#allocation29_spill] sm:$0xff] }
 0xa3f   :  { %v2163_v25 = vmul.f32 %v2162_v57, %v1952_v14  ;;  %v7358_v57 = vld [vmem:[#allocation23_spill] sm:$0xff] }
 0xa40   :  { %v7359_v14 = vld [vmem:[#allocation11_spill] sm:$0xff] }
 0xa7b   :  { %v2166_v63 = vpop.permute.xlu2 %2165 }
 0xa7c   :  { %v2168_v40 = vmul.f32 %v2166_v63, %v2160_v46  ;;  %v7355_v46 = vld [vmem:[#allocation27_spill] sm:$0xff]  ;;  %v7360_v63 = vld [vmem:[#allocation24_spill] sm:$0xff] }
 0xa7e   :  { %v2169_v26 = vadd.f32 %v2168_v40, %v2163_v25  ;;  %v7361_v25 = vld [vmem:[#allocation13_spill] sm:$0xff]  ;;  %v7362_v40 = vld [vmem:[#allocation28_spill] sm:$0xff] }
 0xa80   :  { %5748 = vst.msk [vmem:[%s7222_s7 + $0x4] sm:$0x3] %vm759_vm14, %v2169_v26 }
 0xa81   :  { %2177 = vst.msk [vmem:[#allocation2] sm:$0x3] %vm759_vm14, %v2169_v26  ;;  %v7363_v26 = vld [vmem:[#allocation14_spill] sm:$0xff] }
 0xa82   :  { %2181 = vst.msk [vmem:[#allocation2] sm:$0x3] %vm768_vm4, %v2179_v37  ;;  %v7364_v37 = vld [vmem:[#allocation30_spill] sm:$0xff] }
 0xa89   :  { %v6613_v62 = vld [vmem:[#allocation2] sm:$0x3] }
 0xa8a   :  { %v2192_v39 = vsel %vm63_vm2, %v6613_v62, 0 }
 0xa8b   :  { %v2215_v45 = vand.u32 4294901760, %v2192_v39 }
 0xa8d   :  { %2266 = vmatmul.f32.vlgmr.msrb.gmra.mxu3 %v2215_v45  ;;  %v2216_v52 = vsub.f32 %v2192_v39, %v2215_v45 }
 0xa8e   :  { %2512 = vmatpush.msrb.mxu3 %v5997_v17 }
 0xa8f   :  { %2298 = vmatmul.f32.vlgmr.msra.gmra.mxu0 %v2216_v52  ;;  %v2217_v16 = vand.u32 4294901760, %v2216_v52 }
 0xa90   :  { %2514 = vmatpush.msrb.mxu3 %v5976_v8  ;;  %2542 = vmatpush.msra.mxu0 %v6057_v36 }
 0xa91   :  { %2326 = vmatmul.f32.vlgmr.msra.gmra.mxu1 %v2217_v16  ;;  %v2218_v10 = vsub.f32 %v2216_v52, %v2217_v16 }
 0xa92   :  { %2516 = vmatpush.msrb.mxu3 %v5978_v9  ;;  %2546 = vmatpush.msra.mxu0 %v6044_v32 }
 0xa93   :  { %v2219_v51 = vand.u32 4294901760, %v2218_v10  ;;  %2576 = vmatpush.msra.mxu1 %v5997_v17 }
 0xa94   :  { %2518 = vmatpush.msrb.mxu3 %v5970_v5  ;;  %2550 = vmatpush.msra.mxu0 %v6087_v47 }
 0xa95   :  { %2220 = vmatmul.f32.vlgmr.msrb.gmra.mxu2 %v2219_v51  ;;  %2388 = vmatmul.f32.vlgmr.msra.gmra.mxu3 %v2215_v45 }
 0xa96   :  { %2578 = vmatpush.msra.mxu1 %v5976_v8  ;;  %2481 = vmatpush.msrb.mxu2 %v6033_v29 }
 0xa97   :  { %2418 = vmatmul.f32.vlgmr.msrb.gmra.mxu0 %v2219_v51  ;;  %2520 = vmatpush.msrb.mxu3 %v6062_v38 }
 0xa98   :  { %2554 = vmatpush.msra.mxu0 %v6112_v56  ;;  %2580 = vmatpush.msra.mxu1 %v5978_v9 }
 0xa99   :  { %2464 = vmatmul.f32.vlgmr.msrb.gmra.mxu1 %v2215_v45  ;;  %2484 = vmatpush.msrb.mxu2 %v6018_v24 }
 0xa9a   :  { %2558 = vmatpush.msra.mxu0 %v6124_v60  ;;  %2582 = vmatpush.msra.mxu1 %v5970_v5 }
 0xa9b   :  { %2487 = vmatpush.msrb.mxu2 %v6047_v33  ;;  %2710 = vmatpush.msra.mxu3 %v6240_v3 }
 0xa9c   :  { %2584 = vmatpush.msra.mxu1 %v6062_v38  ;;  %2748 = vmatpush.msrb.mxu0 %v6219_v55 }
 0xa9d   :  { %2362 = vmatmul.f32.vlgmr.msra.gmra.mxu2 %v2215_v45  ;;  %2524 = vmatmul.f32.vlgmr.msrb.gmra.mxu3 %v2217_v16 }
 0xa9e   :  { %2490 = vmatpush.msrb.mxu2 %v6076_v43  ;;  %2716 = vmatpush.msra.mxu3 %v6242_v4 }
 0xa9f   :  { %2560 = vmatmul.f32.vlgmr.msra.gmra.mxu0 %v2215_v45  ;;  %2777 = vmatpush.msrb.mxu1 %v6214_v50 }
 0xaa0   :  { %2493 = vmatpush.msrb.mxu2 %v6105_v54  ;;  %2722 = vmatpush.msra.mxu3 %v6282_v0  ;;  %v5751_v0 = vld [vmem:[%s7216_s0 + $0xc] sm:$0xf] }
 0xaa1   :  { %2586 = vmatmul.f32.vlgmr.msra.gmra.mxu1 %v2215_v45  ;;  %2751 = vmatpush.msrb.mxu0 %v6222_v58 }
 0xaa2   :  { %2728 = vmatpush.msra.mxu3 %v6290_v11  ;;  %2779 = vmatpush.msrb.mxu1 %v7351_v15 }
 0xaa3   :  { %2754 = vmatpush.msrb.mxu0 %v7352_v49  ;;  %2677 = vmatpush.msra.mxu2 %v6214_v50 }
 0xaa4   :  { %2781 = vmatpush.msrb.mxu1 %v7353_v21  ;;  %2837 = vmatpush.msrb.mxu3 %v6214_v50 }
 0xaa5   :  { %2496 = vmatmul.f32.vlgmr.msrb.gmra.mxu2 %v2216_v52  ;;  %2757 = vmatpush.msrb.mxu0 %v7354_v7 }
 0xaa6   :  { %2679 = vmatpush.msra.mxu2 %v7351_v15  ;;  %2783 = vmatpush.msrb.mxu1 %v7355_v46 }
 0xaa7   :  { %2839 = vmatpush.msrb.mxu3 %v7351_v15  ;;  %2912 = vmatpush.msra.mxu0 %v5984_v12 }
 0xaa8   :  { %2946 = vmatpush.msra.mxu1 %v7356_v44  ;;  %2681 = vmatpush.msra.mxu2 %v7353_v21 }
 0xaa9   :  { %2841 = vmatpush.msrb.mxu3 %v7353_v21  ;;  %2914 = vmatpush.msra.mxu0 %v5986_v13 }
 0xaaa   :  { %2952 = vmatpush.msra.mxu1 %v7357_v2  ;;  %2683 = vmatpush.msra.mxu2 %v7355_v46 }
 0xaab   :  { %2843 = vmatpush.msrb.mxu3 %v7355_v46  ;;  %2916 = vmatpush.msra.mxu0 %v5999_v18 }
 0xaac   :  { %2806 = vmatpush.msrb.mxu2 %v7358_v57  ;;  %2958 = vmatpush.msra.mxu1 %v7359_v14 }
 0xaad   :  { %2918 = vmatpush.msra.mxu0 %v6001_v19 }
 0xaae   :  { %2810 = vmatpush.msrb.mxu2 %v7360_v63  ;;  %2964 = vmatpush.msra.mxu1 %v7361_v25 }
 0xaaf   :  { %2920 = vmatpush.msra.mxu0 %v6003_v20 }
 0xab0   :  { %2814 = vmatpush.msrb.mxu2 %v7362_v40  ;;  %2970 = vmatpush.msra.mxu1 %v7363_v26 }
 0xab2   :  { %2818 = vmatpush.msrb.mxu2 %v7364_v37 }
 0xb0c   :  { %v2299_v45 = vpop.f32.mrf.mxu0 }
 0xb0e   :  { %v2327_v16 = vpop.f32.mrf.mxu1 }
 0xb10   :  { %v2267_v39 = vpop.f32.mrf.mxu3 }
 0xb14   :  { %v2419_v14 = vpop.f32.mrf.mxu0 }
 0xb16   :  { %v2465_v57 = vpop.f32.mrf.mxu1 }
 0xb17   :  { %v2466_v25 = vadd.f32 %v2465_v57, %v2419_v14 }
 0xb18   :  { %v2221_v52 = vpop.f32.mrf.mxu2  ;;  %v2389_v10 = vpop.f32.mrf.mxu3 }
 0xb19   :  { %v2268_v63 = vadd.f32 %v2267_v39, %v2221_v52 }
 0xb1b   :  { %v2300_v2 = vadd.f32 %v2299_v45, %v2268_v63 }
 0xb1c   :  { %v2561_v21 = vpop.f32.mrf.mxu0 }
 0xb1d   :  { %v2328_v7 = vadd.f32 %v2327_v16, %v2300_v2  ;;  %v5753_v16 = vld [vmem:[%s7217_s1 + $0x6] sm:$0x3] }
 0xb1e   :  { %v2587_v37 = vpop.f32.mrf.mxu1 }
 0xb20   :  { %v2363_v51 = vpop.f32.mrf.mxu2  ;;  %v2525_v40 = vpop.f32.mrf.mxu3 }
 0xb21   :  { %v2364_v49 = vadd.f32 %v2363_v51, %v2328_v7 }
 0xb23   :  { %v2390_v58 = vadd.f32 %v2389_v10, %v2364_v49  ;;  %v2627_v10 = vpop.permute.xlu0 %2626 }
 0xb28   :  { %v2497_v44 = vpop.f32.mrf.mxu2 }
 0xb29   :  { %v2498_v46 = vadd.f32 %v2497_v44, %v2466_v25 }
 0xb2b   :  { %v2526_v26 = vadd.f32 %v2525_v40, %v2498_v46 }
 0xb2d   :  { %v2562_v15 = vadd.f32 %v2561_v21, %v2526_v26 }
 0xb2f   :  { %v2588_v11 = vadd.f32 %v2587_v37, %v2562_v15 }
 0xb31   :  { %v2592_v54 = vrot.slane %v2588_v11, 6 }
 0xb33   :  { %v2593_v39 = vsel %vm67_vm0, %v2390_v58, %v2592_v54 }
 0xb34   :  { %v2595_v57 = vadd.f32 %v5751_v0, %v2593_v39 }
 0xb36   :  { %5831 = vtanh.f32 %v2595_v57  ;;  %v5752_v14 = vmul.f32 -1.442695, %v2595_v57 }
 0xb38   :  { %5833 = vpow2.f32 %v5752_v14 }
 0xb3c   :  { %v5832_v44 = vpop.eup %5831 }
 0xb3d   :  { %2617 = vst [vmem:[#allocation1] ss:$4 sm:$0xff] %v5832_v44 }
 0xb3e   :  { %v5834_v46 = vpop.eup %5833 }
 0xb3f   :  { %v2600_v2 = vadd.f32 1.0, %v5834_v46 }
 0xb41   :  { %5835 = vrcp.f32 %v2600_v2  ;;  %v2612_v49 = vand.u32 2147483648, %v2600_v2  ;;  %v2610_v25 = vand.u32 2147483647, %v2600_v2  ;;  %vm2606_vm1 = vweird.f32 %v2600_v2 }
 0xb43   :  { %v2613_v54 = vor.u32 1.1754944e-38, %v2612_v49  ;;  %vm2611_vm6 = vcmp.eq.f32.partialorder %v2610_v25, 8.507059e+37 }
 0xb44   :  { %v2618_v11 = vld.sshfl [vmem:[#allocation1] sm:$0xff pattern:$0x73625140] }
 0xb47   :  { %v5836_v21 = vpop.eup %5835 }
 0xb48   :  { %v2602_v7 = vmul.f32 %v5836_v21, %v2600_v2  ;;  %vm2607_vm15 = vweird.f32 %v5836_v21 }
 0xb49   :  { %vm2608_vm5 = vmor %vm2606_vm1, %vm2607_vm15 }
 0xb4a   :  { %v2603_v15 = vsub.f32 1.0, %v2602_v7 }
 0xb4c   :  { %v2604_v63 = vmul.f32 %v5836_v21, %v2603_v15 }
 0xb4e   :  { %v2605_v40 = vadd.f32 %v5836_v21, %v2604_v63 }
 0xb50   :  { %v2609_v58 = vsel %vm2608_vm5, %v5836_v21, %v2605_v40 }
 0xb51   :  { %v2614_v0 = vsel %vm2611_vm6, %v2613_v54, %v2609_v58 }
 0xb52   :  { %2621 = vst [vmem:[#allocation1] ss:$4 sm:$0xff] %v2614_v0 }
 0xb59   :  { %v2622_v26 = vld.sshfl [vmem:[#allocation1] sm:$0xff pattern:$0x73625140] }
 0xb5a   :  { %v2624_v37 = vsel %vm6193_vm10, %v2618_v11, %v2622_v26  ;;  %2654 = vst [vmem:[#allocation1] ss:$4 sm:$0xff] %v2595_v57  ;;  %v6728_v26 = vld [vmem:[%s7220_s6] ss:$0 sm:$0xff] }
 0xb5b   :  { %2631 = vrot.lane.b32.xlu2 %v2624_v37, %s5896_s19  ;;  %v2629_v51 = vmul.f32 %v2627_v10, %v2624_v37 }
 0xbb5   :  { %v2632_v45 = vpop.permute.xlu2 %2631 }
 0xbb6   :  { %v2634_v52 = vmul.f32 %v2632_v45, %v2624_v37 }
 0xbb8   :  { %2636 = vrot.lane.b32.xlu1 %v2634_v52, %s5894_s2 }
 0xbc0   :  { %2650 = vperm.xlu1 %5793, %v5753_v16  }
 0xc2a   :  { %v2637_v39 = vpop.permute.xlu1 %2636 }
 0xc2b   :  { %v2639_v14 = vadd.f32 %v2637_v39, %v2629_v51 }
 0xc2d   :  { %5837 = vtanh.f32 %v2639_v14  ;;  %2889 = vrot.lane.b32.xlu1 %v2639_v14, %s5898_s13 }
 0xc32   :  { %v6685_v2 = vpop.permute.xlu1 %2650 }
 0xc33   :  { %v5838_v44 = vpop.eup %5837 }
 0xc34   :  { %2642 = vrot.lane.b32.xlu2 %v5838_v44, %s5896_s19 }
 0xc8e   :  { %v2643_v57 = vpop.permute.xlu2 %2642 }
 0xc8f   :  { %v2645_v46 = vmul.f32 %v2643_v57, %v2624_v37 }
 0xc91   :  { %2660 = vrot.lane.b32.xlu0 %v2645_v46, %s5894_s2 }
 0xc99   :  { %2884 = vrot.lane.b32.xlu0 %v2645_v46, %s5897_s25 }
 0xc9f   :  { %v2890_v21 = vpop.permute.xlu1 %2889 }
 0xca0   :  { %2892 = vst.msk [vmem:[#allocation3] sm:$0x3] %vm38_vm3, %v2890_v21 }
 0xca7   :  { %v2894_v7 = vld [vmem:[#allocation3] sm:$0x3] }
 0xca8   :  { %3332 = vrot.lane.b32.xlu0 %v2894_v7, %s5894_s2 }
 0xd03   :  { %v2661_v15 = vpop.permute.xlu0 %2660 }
 0xd04   :  { %v2662_v49 = vsel %vm544_vm11, %v2661_v15, 0  ;;  %5756 = vst.msk [vmem:[%s7219_s8 + $0x6] sm:$0x3] %vm38_vm3, %v2661_v15 }
 0xd05   :  { %v2684_v63 = vand.u32 4294901760, %v2662_v49 }
 0xd07   :  { %v2685_v25 = vsub.f32 %v2662_v49, %v2684_v63  ;;  %2730 = vmatmul.f32.vlgmr.msra.gmra.mxu3 %v2684_v63 }
 0xd08   :  { %3020 = vmatpush.msra.mxu3 %v5984_v12 }
 0xd09   :  { %v2686_v40 = vand.u32 4294901760, %v2685_v25  ;;  %2760 = vmatmul.f32.vlgmr.msrb.gmra.mxu0 %v2685_v25 }
 0xd0a   :  { %3022 = vmatpush.msra.mxu3 %v5986_v13  ;;  %3050 = vmatpush.msrb.mxu0 %v6038_v30 }
 0xd0b   :  { %v2687_v54 = vsub.f32 %v2685_v25, %v2686_v40  ;;  %2787 = vmatmul.f32.vlgmr.msrb.gmra.mxu1 %v2686_v40 }
 0xd0c   :  { %3024 = vmatpush.msra.mxu3 %v5999_v18  ;;  %3084 = vmatpush.msrb.mxu1 %v5984_v12 }
 0xd0d   :  { %v2688_v58 = vand.u32 4294901760, %v2687_v54  ;;  %3054 = vmatpush.msrb.mxu0 %v6041_v31 }
 0xd0e   :  { %3026 = vmatpush.msra.mxu3 %v6001_v19  ;;  %3086 = vmatpush.msrb.mxu1 %v5986_v13 }
 0xd0f   :  { %2689 = vmatmul.f32.vlgmr.msra.gmra.mxu2 %v2688_v58  ;;  %2845 = vmatmul.f32.vlgmr.msrb.gmra.mxu3 %v2684_v63 }
 0xd10   :  { %2989 = vmatpush.msra.mxu2 %v6009_v22  ;;  %3028 = vmatpush.msra.mxu3 %v6003_v20 }
 0xd11   :  { %3088 = vmatpush.msrb.mxu1 %v5999_v18  ;;  %3058 = vmatpush.msrb.mxu0 %v6051_v34 }
 0xd12   :  { %3144 = vmatpush.msrb.mxu3 %v6102_v53  ;;  %2992 = vmatpush.msra.mxu2 %v6014_v23 }
 0xd13   :  { %3090 = vmatpush.msrb.mxu1 %v6001_v19  ;;  %3062 = vmatpush.msrb.mxu0 %v7330_v27 }
 0xd14   :  { %3150 = vmatpush.msrb.mxu3 %v7328_v59  ;;  %2995 = vmatpush.msra.mxu2 %v7329_v48 }
 0xd15   :  { %3092 = vmatpush.msrb.mxu1 %v6003_v20  ;;  %3066 = vmatpush.msrb.mxu0 %v7347_v41 }
 0xd16   :  { %3156 = vmatpush.msrb.mxu3 %v7331_v35  ;;  %2998 = vmatpush.msra.mxu2 %v7346_v42 }
 0xd17   :  { %2820 = vmatmul.f32.vlgmr.msrb.gmra.mxu2 %v2684_v63 }
 0xd18   :  { %3162 = vmatpush.msrb.mxu3 %v7348_v1  ;;  %3001 = vmatpush.msra.mxu2 %v7349_v61 }
 0xd1a   :  { %3110 = vmatpush.msrb.mxu2 %v5997_v17  ;;  %3168 = vmatpush.msrb.mxu3 %v7350_v28 }
 0xd1c   :  { %3112 = vmatpush.msrb.mxu2 %v5976_v8 }
 0xd1e   :  { %3114 = vmatpush.msrb.mxu2 %v5978_v9 }
 0xd20   :  { %3116 = vmatpush.msrb.mxu2 %v5970_v5 }
 0xd22   :  { %3118 = vmatpush.msrb.mxu2 %v6062_v38 }
 0xd86   :  { %v2761_v52 = vpop.f32.mrf.mxu0 }
 0xd88   :  { %v2788_v10 = vpop.f32.mrf.mxu1 }
 0xd8a   :  { %v2731_v0 = vpop.f32.mrf.mxu3 }
 0xd92   :  { %v2690_v11 = vpop.f32.mrf.mxu2  ;;  %v2846_v44 = vpop.f32.mrf.mxu3 }
 0xd93   :  { %v2691_v37 = vadd.f32 %v6728_v26, %v2690_v11 }
 0xd95   :  { %v2732_v45 = vadd.f32 %v2731_v0, %v2691_v37 }
 0xd97   :  { %v2762_v16 = vadd.f32 %v2761_v52, %v2732_v45  ;;  %v2655_v45 = vld.sshfl [vmem:[#allocation1 + $0x8] sm:$0xff pattern:$0x73625140] }
 0xd98   :  { %v2657_v52 = vmul.f32 %v2655_v45, %v6685_v2  ;;  %v7373_v45 = vld [vmem:[#allocation27_spill] sm:$0xff] }
 0xd99   :  { %v2789_v51 = vadd.f32 %v2788_v10, %v2762_v16 }
 0xd9a   :  { %v2821_v39 = vpop.f32.mrf.mxu2  ;;  %v2658_v10 = vadd.f32 %v2657_v52, %v6613_v62  ;;  %v7374_v52 = vld [vmem:[#allocation9_spill] sm:$0xff] }
 0xd9b   :  { %v2822_v14 = vadd.f32 %v2821_v39, %v2789_v51 }
 0xd9d   :  { %v2847_v57 = vadd.f32 %v2846_v44, %v2822_v14 }
 0xd9f   :  { %v5754_v46 = vmul.f32 -1.442695, %v2847_v57  ;;  %2871 = vrot.lane.b32.xlu2 %v2847_v57, %s5893_s17  ;;  %v2885_v57 = vpop.permute.xlu0 %2884 }
 0xda1   :  { %5839 = vpow2.f32 %v5754_v46 }
 0xda7   :  { %v5840_v21 = vpop.eup %5839 }
 0xda8   :  { %v2852_v7 = vadd.f32 1.0, %v5840_v21 }
 0xdaa   :  { %5841 = vrcp.f32 %v2852_v7  ;;  %v2864_v25 = vand.u32 2147483648, %v2852_v7  ;;  %v2862_v54 = vand.u32 2147483647, %v2852_v7  ;;  %vm2858_vm8 = vweird.f32 %v2852_v7 }
 0xdac   :  { %v2865_v0 = vor.u32 1.1754944e-38, %v2864_v25  ;;  %vm2863_vm12 = vcmp.eq.f32.partialorder %v2862_v54, 8.507059e+37  ;;  %v7366_v25 = vld [vmem:[#allocation31_spill] sm:$0xff]  ;;  %v7368_v54 = vld [vmem:[#allocation32_spill] sm:$0xff] }
 0xdb0   :  { %v5842_v15 = vpop.eup %5841 }
 0xdb1   :  { %v2854_v49 = vmul.f32 %v5842_v15, %v2852_v7  ;;  %vm2859_vm7 = vweird.f32 %v5842_v15 }
 0xdb2   :  { %vm2860_vm9 = vmor %vm2858_vm8, %vm2859_vm7 }
 0xdb3   :  { %v2855_v63 = vsub.f32 1.0, %v2854_v49 }
 0xdb5   :  { %v2856_v40 = vmul.f32 %v5842_v15, %v2855_v63  ;;  %v7365_v63 = vld [vmem:[#allocation12_spill] sm:$0xff] }
 0xdb7   :  { %v2857_v58 = vadd.f32 %v5842_v15, %v2856_v40  ;;  %v7367_v40 = vld [vmem:[#allocation22_spill] sm:$0xff] }
 0xdb9   :  { %v2861_v11 = vsel %vm2860_vm9, %v5842_v15, %v2857_v58  ;;  %v7369_v58 = vld [vmem:[#allocation21_spill] sm:$0xff] }
 0xdba   :  { %v2866_v37 = vsel %vm2863_vm12, %v2865_v0, %v2861_v11  ;;  %v7370_v0 = vld [vmem:[#allocation26_spill] sm:$0xff]  ;;  %v7371_v11 = vld [vmem:[#allocation25_spill] sm:$0xff] }
 0xdbb   :  { %5757 = vst.msk [vmem:[%s7221_s9 + $0x6] sm:$0x3] %vm759_vm14, %v2866_v37  ;;  %v2868_v16 = vsub.f32 1.0, %v2866_v37 }
 0xdbd   :  { %v2869_v39 = vmul.f32 %v2868_v16, %v2658_v10  ;;  %v7375_v16 = vld [vmem:[#allocation10_spill] sm:$0xff]  ;;  %v7376_v10 = vld [vmem:[#allocation23_spill] sm:$0xff] }
 0xdf9   :  { %v2872_v51 = vpop.permute.xlu2 %2871 }
 0xdfa   :  { %v2874_v14 = vmul.f32 %v2872_v51, %v2866_v37  ;;  %v7372_v37 = vld [vmem:[#allocation29_spill] sm:$0xff]  ;;  %v7377_v51 = vld [vmem:[#allocation11_spill] sm:$0xff] }
 0xdfc   :  { %v2875_v44 = vadd.f32 %v2874_v14, %v2869_v39  ;;  %v7378_v39 = vld [vmem:[#allocation24_spill] sm:$0xff]  ;;  %v7379_v14 = vld [vmem:[#allocation13_spill] sm:$0xff] }
 0xdfe   :  { %5755 = vst.msk [vmem:[%s7222_s7 + $0x6] sm:$0x3] %vm759_vm14, %v2875_v44 }
 0xdff   :  { %2883 = vst.msk [vmem:[#allocation2] sm:$0x3] %vm759_vm14, %v2875_v44  ;;  %v7380_v44 = vld [vmem:[#allocation28_spill] sm:$0xff] }
 0xe00   :  { %2887 = vst.msk [vmem:[#allocation2] sm:$0x3] %vm768_vm4, %v2885_v57  ;;  %v7381_v57 = vld [vmem:[#allocation14_spill] sm:$0xff] }
 0xe07   :  { %v6744_v46 = vld [vmem:[#allocation2] sm:$0x3] }
 0xe08   :  { %v2898_v2 = vsel %vm63_vm2, %v6744_v46, 0 }
 0xe09   :  { %v2921_v62 = vand.u32 4294901760, %v2898_v2 }
 0xe0b   :  { %2972 = vmatmul.f32.vlgmr.msra.gmra.mxu1 %v2921_v62  ;;  %v2922_v21 = vsub.f32 %v2898_v2, %v2921_v62  ;;  %v7382_v2 = vld [vmem:[#allocation30_spill] sm:$0xff] }
 0xe0c   :  { %3218 = vmatpush.msra.mxu1 %v5997_v17 }
 0xe0d   :  { %3004 = vmatmul.f32.vlgmr.msra.gmra.mxu2 %v2922_v21  ;;  %v2923_v7 = vand.u32 4294901760, %v2922_v21 }
 0xe0e   :  { %3220 = vmatpush.msra.mxu1 %v5976_v8  ;;  %3248 = vmatpush.msra.mxu2 %v6057_v36 }
 0xe0f   :  { %3032 = vmatmul.f32.vlgmr.msra.gmra.mxu3 %v2923_v7  ;;  %v2924_v15 = vsub.f32 %v2922_v21, %v2923_v7 }
 0xe10   :  { %3222 = vmatpush.msra.mxu1 %v5978_v9  ;;  %3252 = vmatpush.msra.mxu2 %v6044_v32 }
 0xe11   :  { %v2925_v49 = vand.u32 4294901760, %v2924_v15  ;;  %3282 = vmatpush.msra.mxu3 %v5997_v17 }
 0xe12   :  { %3224 = vmatpush.msra.mxu1 %v5970_v5  ;;  %3256 = vmatpush.msra.mxu2 %v6087_v47 }
 0xe13   :  { %2926 = vmatmul.f32.vlgmr.msra.gmra.mxu0 %v2925_v49  ;;  %3094 = vmatmul.f32.vlgmr.msrb.gmra.mxu1 %v2921_v62 }
 0xe14   :  { %3284 = vmatpush.msra.mxu3 %v5976_v8  ;;  %3187 = vmatpush.msra.mxu0 %v6033_v29 }
 0xe15   :  { %3124 = vmatmul.f32.vlgmr.msrb.gmra.mxu2 %v2925_v49  ;;  %3226 = vmatpush.msra.mxu1 %v6062_v38 }
 0xe16   :  { %3260 = vmatpush.msra.mxu2 %v6112_v56  ;;  %3286 = vmatpush.msra.mxu3 %v5978_v9 }
 0xe17   :  { %3170 = vmatmul.f32.vlgmr.msrb.gmra.mxu3 %v2921_v62  ;;  %3190 = vmatpush.msra.mxu0 %v6018_v24 }
 0xe18   :  { %3264 = vmatpush.msra.mxu2 %v6124_v60  ;;  %3288 = vmatpush.msra.mxu3 %v5970_v5 }
 0xe19   :  { %3193 = vmatpush.msra.mxu0 %v6047_v33  ;;  %3416 = vmatpush.msrb.mxu1 %v6240_v3 }
 0xe1a   :  { %3290 = vmatpush.msra.mxu3 %v6062_v38  ;;  %3454 = vmatpush.msrb.mxu2 %v6219_v55 }
 0xe1b   :  { %3068 = vmatmul.f32.vlgmr.msrb.gmra.mxu0 %v2921_v62  ;;  %3230 = vmatmul.f32.vlgmr.msra.gmra.mxu1 %v2923_v7 }
 0xe1c   :  { %3196 = vmatpush.msra.mxu0 %v6076_v43  ;;  %3422 = vmatpush.msrb.mxu1 %v6242_v4 }
 0xe1d   :  { %3266 = vmatmul.f32.vlgmr.msra.gmra.mxu2 %v2921_v62  ;;  %3483 = vmatpush.msrb.mxu3 %v6214_v50 }
 0xe1e   :  { %3199 = vmatpush.msra.mxu0 %v7365_v63  ;;  %3428 = vmatpush.msrb.mxu1 %v7366_v25  ;;  %v5758_v63 = vld [vmem:[%s7216_s0 + $0x10] sm:$0xf] }
 0xe1f   :  { %3292 = vmatmul.f32.vlgmr.msra.gmra.mxu3 %v2921_v62  ;;  %3457 = vmatpush.msrb.mxu2 %v7367_v40 }
 0xe20   :  { %3434 = vmatpush.msrb.mxu1 %v7368_v54  ;;  %3485 = vmatpush.msrb.mxu3 %v7369_v58 }
 0xe21   :  { %3460 = vmatpush.msrb.mxu2 %v7370_v0  ;;  %3383 = vmatpush.msrb.mxu0 %v6214_v50 }
 0xe22   :  { %3487 = vmatpush.msrb.mxu3 %v7371_v11  ;;  %3543 = vmatpush.msra.mxu1 %v6214_v50 }
 0xe23   :  { %3202 = vmatmul.f32.vlgmr.msra.gmra.mxu0 %v2922_v21  ;;  %3463 = vmatpush.msrb.mxu2 %v7372_v37 }
 0xe24   :  { %3385 = vmatpush.msrb.mxu0 %v7369_v58  ;;  %3489 = vmatpush.msrb.mxu3 %v7373_v45 }
 0xe25   :  { %3545 = vmatpush.msra.mxu1 %v7369_v58  ;;  %3618 = vmatpush.msra.mxu2 %v5984_v12 }
 0xe26   :  { %3652 = vmatpush.msra.mxu3 %v7374_v52  ;;  %3387 = vmatpush.msrb.mxu0 %v7371_v11 }
 0xe27   :  { %3547 = vmatpush.msra.mxu1 %v7371_v11  ;;  %3620 = vmatpush.msra.mxu2 %v5986_v13 }
 0xe28   :  { %3658 = vmatpush.msra.mxu3 %v7375_v16  ;;  %3389 = vmatpush.msrb.mxu0 %v7373_v45 }
 0xe29   :  { %3549 = vmatpush.msra.mxu1 %v7373_v45  ;;  %3622 = vmatpush.msra.mxu2 %v5999_v18 }
 0xe2a   :  { %3512 = vmatpush.msra.mxu0 %v7376_v10  ;;  %3664 = vmatpush.msra.mxu3 %v7377_v51 }
 0xe2b   :  { %3624 = vmatpush.msra.mxu2 %v6001_v19 }
 0xe2c   :  { %3516 = vmatpush.msra.mxu0 %v7378_v39  ;;  %3670 = vmatpush.msra.mxu3 %v7379_v14 }
 0xe2d   :  { %3626 = vmatpush.msra.mxu2 %v6003_v20 }
 0xe2e   :  { %3520 = vmatpush.msra.mxu0 %v7380_v44  ;;  %3676 = vmatpush.msra.mxu3 %v7381_v57 }
 0xe30   :  { %3524 = vmatpush.msra.mxu0 %v7382_v2 }
 0xe88   :  { %v2973_v62 = vpop.f32.mrf.mxu1 }
 0xe90   :  { %v2927_v21 = vpop.f32.mrf.mxu0  ;;  %v3005_v7 = vpop.f32.mrf.mxu2 }
 0xe91   :  { %v3095_v49 = vpop.f32.mrf.mxu1  ;;  %v2974_v39 = vadd.f32 %v2973_v62, %v2927_v21 }
 0xe92   :  { %v3033_v15 = vpop.f32.mrf.mxu3 }
 0xe93   :  { %v3006_v14 = vadd.f32 %v3005_v7, %v2974_v39  ;;  %v5760_v7 = vld [vmem:[%s7217_s1 + $0x8] sm:$0x3] }
 0xe95   :  { %v3034_v11 = vadd.f32 %v3033_v15, %v3006_v14  ;;  %v3333_v15 = vpop.permute.xlu0 %3332 }
 0xe98   :  { %v3069_v51 = vpop.f32.mrf.mxu0  ;;  %v3125_v10 = vpop.f32.mrf.mxu2 }
 0xe99   :  { %v3231_v44 = vpop.f32.mrf.mxu1  ;;  %v3070_v58 = vadd.f32 %v3069_v51, %v3034_v11 }
 0xe9a   :  { %v3171_v16 = vpop.f32.mrf.mxu3 }
 0xe9b   :  { %v3172_v52 = vadd.f32 %v3171_v16, %v3125_v10  ;;  %v3096_v25 = vadd.f32 %v3095_v49, %v3070_v58 }
 0xea0   :  { %v3203_v45 = vpop.f32.mrf.mxu0  ;;  %v3267_v0 = vpop.f32.mrf.mxu2 }
 0xea1   :  { %v3204_v37 = vadd.f32 %v3203_v45, %v3172_v52 }
 0xea2   :  { %v3293_v2 = vpop.f32.mrf.mxu3 }
 0xea3   :  { %v3232_v57 = vadd.f32 %v3231_v44, %v3204_v37 }
 0xea5   :  { %v3268_v54 = vadd.f32 %v3267_v0, %v3232_v57 }
 0xea7   :  { %v3294_v40 = vadd.f32 %v3293_v2, %v3268_v54 }
 0xea9   :  { %v3298_v50 = vrot.slane %v3294_v40, 6 }
 0xeab   :  { %v3299_v62 = vsel %vm67_vm0, %v3096_v25, %v3298_v50 }
 0xeac   :  { %v3301_v39 = vadd.f32 %v5758_v63, %v3299_v62 }
 0xeae   :  { %5843 = vtanh.f32 %v3301_v39  ;;  %v5759_v16 = vmul.f32 -1.442695, %v3301_v39 }
 0xeb0   :  { %5845 = vpow2.f32 %v5759_v16 }
 0xeb4   :  { %v5844_v45 = vpop.eup %5843 }
 0xeb5   :  { %3323 = vst [vmem:[#allocation1] ss:$4 sm:$0xff] %v5844_v45 }
 0xeb6   :  { %v5846_v37 = vpop.eup %5845 }
 0xeb7   :  { %v3306_v52 = vadd.f32 1.0, %v5846_v37 }
 0xeb9   :  { %5847 = vrcp.f32 %v3306_v52  ;;  %v3318_v58 = vand.u32 2147483648, %v3306_v52  ;;  %v3316_v51 = vand.u32 2147483647, %v3306_v52  ;;  %vm3312_vm15 = vweird.f32 %v3306_v52 }
 0xebb   :  { %v3319_v50 = vor.u32 1.1754944e-38, %v3318_v58  ;;  %vm3317_vm5 = vcmp.eq.f32.partialorder %v3316_v51, 8.507059e+37 }
 0xebc   :  { %v3324_v40 = vld.sshfl [vmem:[#allocation1] sm:$0xff pattern:$0x73625140] }
 0xebf   :  { %v5848_v0 = vpop.eup %5847 }
 0xec0   :  { %v3308_v11 = vmul.f32 %v5848_v0, %v3306_v52  ;;  %vm3313_vm13 = vweird.f32 %v5848_v0 }
 0xec1   :  { %vm3314_vm1 = vmor %vm3312_vm15, %vm3313_vm13 }
 0xec2   :  { %v3309_v54 = vsub.f32 1.0, %v3308_v11 }
 0xec4   :  { %v3310_v10 = vmul.f32 %v5848_v0, %v3309_v54 }
 0xec6   :  { %v3311_v14 = vadd.f32 %v5848_v0, %v3310_v10 }
 0xec8   :  { %v3315_v63 = vsel %vm3314_vm1, %v5848_v0, %v3311_v14 }
 0xec9   :  { %v3320_v25 = vsel %vm3317_vm5, %v3319_v50, %v3315_v63 }
 0xeca   :  { %3327 = vst [vmem:[#allocation1] ss:$4 sm:$0xff] %v3320_v25 }
 0xed1   :  { %v3328_v44 = vld.sshfl [vmem:[#allocation1] sm:$0xff pattern:$0x73625140] }
 0xed2   :  { %v3330_v57 = vsel %vm6193_vm10, %v3324_v40, %v3328_v44  ;;  %3360 = vst [vmem:[#allocation1] ss:$4 sm:$0xff] %v3301_v39 }
 0xed3   :  { %3337 = vrot.lane.b32.xlu2 %v3330_v57, %s5896_s19  ;;  %v3335_v49 = vmul.f32 %v3333_v15, %v3330_v57 }
 0xf2d   :  { %v3338_v2 = vpop.permute.xlu2 %3337 }
 0xf2e   :  { %v3340_v21 = vmul.f32 %v3338_v2, %v3330_v57 }
 0xf30   :  { %3342 = vrot.lane.b32.xlu1 %v3340_v21, %s5894_s2 }
 0xf38   :  { %3356 = vperm.xlu1 %5793, %v5760_v7  }
 0xfa2   :  { %v3343_v62 = vpop.permute.xlu1 %3342 }
 0xfa3   :  { %v3345_v16 = vadd.f32 %v3343_v62, %v3335_v49 }
 0xfa5   :  { %5849 = vtanh.f32 %v3345_v16  ;;  %3595 = vrot.lane.b32.xlu1 %v3345_v16, %s5898_s13 }
 0xfaa   :  { %v6816_v52 = vpop.permute.xlu1 %3356 }
 0xfab   :  { %v5850_v45 = vpop.eup %5849 }
 0xfac   :  { %3348 = vrot.lane.b32.xlu2 %v5850_v45, %s5896_s19 }
0x1006   :  { %v3349_v39 = vpop.permute.xlu2 %3348 }
0x1007   :  { %v3351_v37 = vmul.f32 %v3349_v39, %v3330_v57 }
0x1009   :  { %3366 = vrot.lane.b32.xlu0 %v3351_v37, %s5894_s2 }
0x1011   :  { %3590 = vrot.lane.b32.xlu0 %v3351_v37, %s5897_s25 }
0x1017   :  { %v3596_v0 = vpop.permute.xlu1 %3595 }
0x1018   :  { %3598 = vst.msk [vmem:[#allocation3] sm:$0x3] %vm38_vm3, %v3596_v0 }
0x101f   :  { %v3600_v11 = vld [vmem:[#allocation3] sm:$0x3] }
0x1020   :  { %4038 = vrot.lane.b32.xlu0 %v3600_v11, %s5894_s2 }
0x107b   :  { %v3367_v54 = vpop.permute.xlu0 %3366 }
0x107c   :  { %v3368_v58 = vsel %vm544_vm11, %v3367_v54, 0  ;;  %5763 = vst.msk [vmem:[%s7219_s8 + $0x8] sm:$0x3] %vm38_vm3, %v3367_v54 }
0x107d   :  { %v3390_v10 = vand.u32 4294901760, %v3368_v58 }
0x107f   :  { %v3391_v51 = vsub.f32 %v3368_v58, %v3390_v10  ;;  %3436 = vmatmul.f32.vlgmr.msrb.gmra.mxu1 %v3390_v10 }
0x1080   :  { %3726 = vmatpush.msrb.mxu1 %v5984_v12 }
0x1081   :  { %v3392_v14 = vand.u32 4294901760, %v3391_v51  ;;  %3466 = vmatmul.f32.vlgmr.msrb.gmra.mxu2 %v3391_v51 }
0x1082   :  { %3728 = vmatpush.msrb.mxu1 %v5986_v13  ;;  %3756 = vmatpush.msrb.mxu2 %v6038_v30 }
0x1083   :  { %v3393_v50 = vsub.f32 %v3391_v51, %v3392_v14  ;;  %3493 = vmatmul.f32.vlgmr.msrb.gmra.mxu3 %v3392_v14 }
0x1084   :  { %3730 = vmatpush.msrb.mxu1 %v5999_v18  ;;  %3790 = vmatpush.msrb.mxu3 %v5984_v12 }
0x1085   :  { %v3394_v63 = vand.u32 4294901760, %v3393_v50  ;;  %3760 = vmatpush.msrb.mxu2 %v6041_v31 }
0x1086   :  { %3732 = vmatpush.msrb.mxu1 %v6001_v19  ;;  %3792 = vmatpush.msrb.mxu3 %v5986_v13 }
0x1087   :  { %3395 = vmatmul.f32.vlgmr.msrb.gmra.mxu0 %v3394_v63  ;;  %3551 = vmatmul.f32.vlgmr.msra.gmra.mxu1 %v3390_v10 }
0x1088   :  { %3695 = vmatpush.msrb.mxu0 %v6009_v22  ;;  %3734 = vmatpush.msrb.mxu1 %v6003_v20 }
0x1089   :  { %3794 = vmatpush.msrb.mxu3 %v5999_v18  ;;  %3764 = vmatpush.msrb.mxu2 %v6051_v34 }
0x108a   :  { %3850 = vmatpush.msra.mxu1 %v6102_v53  ;;  %3698 = vmatpush.msrb.mxu0 %v6014_v23 }
0x108b   :  { %3796 = vmatpush.msrb.mxu3 %v6001_v19  ;;  %3768 = vmatpush.msrb.mxu2 %v7330_v27 }
0x108c   :  { %3856 = vmatpush.msra.mxu1 %v7328_v59  ;;  %3701 = vmatpush.msrb.mxu0 %v7329_v48 }
0x108d   :  { %3798 = vmatpush.msrb.mxu3 %v6003_v20  ;;  %3772 = vmatpush.msrb.mxu2 %v7347_v41 }
0x108e   :  { %3862 = vmatpush.msra.mxu1 %v7331_v35  ;;  %3704 = vmatpush.msrb.mxu0 %v7346_v42 }
0x108f   :  { %3526 = vmatmul.f32.vlgmr.msra.gmra.mxu0 %v3390_v10 }
0x1090   :  { %3868 = vmatpush.msra.mxu1 %v7348_v1  ;;  %3707 = vmatpush.msrb.mxu0 %v7349_v61 }
0x1092   :  { %3816 = vmatpush.msra.mxu0 %v5997_v17  ;;  %3874 = vmatpush.msra.mxu1 %v7350_v28 }
0x1094   :  { %3818 = vmatpush.msra.mxu0 %v5976_v8 }
0x1096   :  { %3820 = vmatpush.msra.mxu0 %v5978_v9 }
0x1098   :  { %3822 = vmatpush.msra.mxu0 %v5970_v5 }
0x109a   :  { %3824 = vmatpush.msra.mxu0 %v6062_v38 }
0x10fc   :  { %v3437_v25 = vpop.f32.mrf.mxu1 }
0x1104   :  { %v3396_v40 = vpop.f32.mrf.mxu0  ;;  %v3467_v2 = vpop.f32.mrf.mxu2 }
0x1105   :  { %v3397_v44 = vadd.f32 %v6728_v26, %v3396_v40  ;;  %v3552_v16 = vpop.f32.mrf.mxu1 }
0x1106   :  { %v3494_v7 = vpop.f32.mrf.mxu3 }
0x1107   :  { %v3438_v57 = vadd.f32 %v3437_v25, %v3397_v44  ;;  %v3361_v44 = vld.sshfl [vmem:[#allocation1 + $0x8] sm:$0xff pattern:$0x73625140] }
0x1109   :  { %v3468_v21 = vadd.f32 %v3467_v2, %v3438_v57  ;;  %v3363_v57 = vmul.f32 %v3361_v44, %v6816_v52  ;;  %v7392_v44 = vld [vmem:[#allocation27_spill] sm:$0xff] }
0x110b   :  { %v3495_v15 = vadd.f32 %v3494_v7, %v3468_v21  ;;  %v3364_v21 = vadd.f32 %v3363_v57, %v6744_v46  ;;  %v7393_v57 = vld [vmem:[#allocation9_spill] sm:$0xff] }
0x110c   :  { %v3527_v49 = vpop.f32.mrf.mxu0 }
0x110d   :  { %v3528_v62 = vadd.f32 %v3527_v49, %v3495_v15 }
0x110f   :  { %v3553_v45 = vadd.f32 %v3552_v16, %v3528_v62  ;;  %v3591_v16 = vpop.permute.xlu0 %3590 }
0x1111   :  { %v5761_v39 = vmul.f32 -1.442695, %v3553_v45  ;;  %3577 = vrot.lane.b32.xlu2 %v3553_v45, %s5893_s17 }
0x1113   :  { %5851 = vpow2.f32 %v5761_v39 }
0x1119   :  { %v5852_v37 = vpop.eup %5851 }
0x111a   :  { %v3558_v0 = vadd.f32 1.0, %v5852_v37 }
0x111c   :  { %5853 = vrcp.f32 %v3558_v0  ;;  %v3570_v10 = vand.u32 2147483648, %v3558_v0  ;;  %v3568_v14 = vand.u32 2147483647, %v3558_v0  ;;  %vm3564_vm7 = vweird.f32 %v3558_v0 }
0x111e   :  { %v3571_v63 = vor.u32 1.1754944e-38, %v3570_v10  ;;  %vm3569_vm9 = vcmp.eq.f32.partialorder %v3568_v14, 8.507059e+37  ;;  %v7385_v10 = vld [vmem:[#allocation31_spill] sm:$0xff]  ;;  %v7387_v14 = vld [vmem:[#allocation32_spill] sm:$0xff] }
0x1122   :  { %v5854_v11 = vpop.eup %5853 }
0x1123   :  { %v3560_v54 = vmul.f32 %v5854_v11, %v3558_v0  ;;  %vm3565_vm6 = vweird.f32 %v5854_v11 }
0x1124   :  { %vm3566_vm8 = vmor %vm3564_vm7, %vm3565_vm6 }
0x1125   :  { %v3561_v58 = vsub.f32 1.0, %v3560_v54  ;;  %v7383_v54 = vld [vmem:[#allocation20_spill] sm:$0xff] }
0x1127   :  { %v3562_v51 = vmul.f32 %v5854_v11, %v3561_v58  ;;  %v7384_v58 = vld [vmem:[#allocation12_spill] sm:$0xff] }
0x1129   :  { %v3563_v50 = vadd.f32 %v5854_v11, %v3562_v51  ;;  %v7386_v51 = vld [vmem:[#allocation22_spill] sm:$0xff] }
0x112b   :  { %v3567_v25 = vsel %vm3566_vm8, %v5854_v11, %v3563_v50  ;;  %v7388_v50 = vld [vmem:[#allocation21_spill] sm:$0xff] }
0x112c   :  { %v3572_v40 = vsel %vm3569_vm9, %v3571_v63, %v3567_v25  ;;  %v7389_v63 = vld [vmem:[#allocation26_spill] sm:$0xff]  ;;  %v7390_v25 = vld [vmem:[#allocation25_spill] sm:$0xff] }
0x112d   :  { %5764 = vst.msk [vmem:[%s7221_s9 + $0x8] sm:$0x3] %vm759_vm14, %v3572_v40  ;;  %v3574_v2 = vsub.f32 1.0, %v3572_v40 }
0x112f   :  { %v3575_v15 = vmul.f32 %v3574_v2, %v3364_v21  ;;  %v7394_v2 = vld [vmem:[#allocation10_spill] sm:$0xff]  ;;  %v7395_v21 = vld [vmem:[#allocation23_spill] sm:$0xff] }
0x116b   :  { %v3578_v7 = vpop.permute.xlu2 %3577 }
0x116c   :  { %v3580_v49 = vmul.f32 %v3578_v7, %v3572_v40  ;;  %v7391_v40 = vld [vmem:[#allocation29_spill] sm:$0xff]  ;;  %v7396_v7 = vld [vmem:[#allocation11_spill] sm:$0xff] }
0x116e   :  { %v3581_v62 = vadd.f32 %v3580_v49, %v3575_v15  ;;  %v7397_v15 = vld [vmem:[#allocation24_spill] sm:$0xff]  ;;  %v7398_v49 = vld [vmem:[#allocation13_spill] sm:$0xff] }
0x1170   :  { %5762 = vst.msk [vmem:[%s7222_s7 + $0x8] sm:$0x3] %vm759_vm14, %v3581_v62 }
0x1171   :  { %3589 = vst.msk [vmem:[#allocation2] sm:$0x3] %vm759_vm14, %v3581_v62  ;;  %v7399_v62 = vld [vmem:[#allocation28_spill] sm:$0xff] }
0x1172   :  { %3593 = vst.msk [vmem:[#allocation2] sm:$0x3] %vm768_vm4, %v3591_v16  ;;  %v7400_v16 = vld [vmem:[#allocation14_spill] sm:$0xff] }
0x1179   :  { %v6870_v45 = vld [vmem:[#allocation2] sm:$0x3] }
0x117a   :  { %v3604_v52 = vsel %vm63_vm2, %v6870_v45, 0 }
0x117b   :  { %v3627_v46 = vand.u32 4294901760, %v3604_v52 }
0x117d   :  { %3678 = vmatmul.f32.vlgmr.msra.gmra.mxu3 %v3627_v46  ;;  %v3628_v39 = vsub.f32 %v3604_v52, %v3627_v46  ;;  %v7401_v52 = vld [vmem:[#allocation30_spill] sm:$0xff] }
0x117e   :  { %3924 = vmatpush.msra.mxu3 %v5997_v17 }
0x117f   :  { %3710 = vmatmul.f32.vlgmr.msrb.gmra.mxu0 %v3628_v39  ;;  %v3629_v37 = vand.u32 4294901760, %v3628_v39 }
0x1180   :  { %3926 = vmatpush.msra.mxu3 %v5976_v8  ;;  %3954 = vmatpush.msrb.mxu0 %v6057_v36 }
0x1181   :  { %3738 = vmatmul.f32.vlgmr.msrb.gmra.mxu1 %v3629_v37  ;;  %v3630_v0 = vsub.f32 %v3628_v39, %v3629_v37 }
0x1182   :  { %3928 = vmatpush.msra.mxu3 %v5978_v9  ;;  %3958 = vmatpush.msrb.mxu0 %v6044_v32 }
0x1183   :  { %v3631_v11 = vand.u32 4294901760, %v3630_v0  ;;  %3988 = vmatpush.msrb.mxu1 %v5997_v17 }
0x1184   :  { %3930 = vmatpush.msra.mxu3 %v5970_v5  ;;  %3962 = vmatpush.msrb.mxu0 %v6087_v47 }
0x1185   :  { %3632 = vmatmul.f32.vlgmr.msra.gmra.mxu2 %v3631_v11  ;;  %3800 = vmatmul.f32.vlgmr.msrb.gmra.mxu3 %v3627_v46 }
0x1186   :  { %3990 = vmatpush.msrb.mxu1 %v5976_v8  ;;  %3893 = vmatpush.msra.mxu2 %v6033_v29 }
0x1187   :  { %3830 = vmatmul.f32.vlgmr.msra.gmra.mxu0 %v3631_v11  ;;  %3932 = vmatpush.msra.mxu3 %v6062_v38 }
0x1188   :  { %3966 = vmatpush.msrb.mxu0 %v6112_v56  ;;  %3992 = vmatpush.msrb.mxu1 %v5978_v9 }
0x1189   :  { %3876 = vmatmul.f32.vlgmr.msra.gmra.mxu1 %v3627_v46  ;;  %3896 = vmatpush.msra.mxu2 %v6018_v24 }
0x118a   :  { %3970 = vmatpush.msrb.mxu0 %v6124_v60  ;;  %3994 = vmatpush.msrb.mxu1 %v5970_v5 }
0x118b   :  { %3899 = vmatpush.msra.mxu2 %v6047_v33  ;;  %4122 = vmatpush.msrb.mxu3 %v6240_v3 }
0x118c   :  { %3996 = vmatpush.msrb.mxu1 %v6062_v38  ;;  %4160 = vmatpush.msra.mxu0 %v6219_v55 }
0x118d   :  { %3774 = vmatmul.f32.vlgmr.msrb.gmra.mxu2 %v3627_v46  ;;  %3936 = vmatmul.f32.vlgmr.msra.gmra.mxu3 %v3629_v37 }
0x118e   :  { %3902 = vmatpush.msra.mxu2 %v6076_v43  ;;  %4128 = vmatpush.msrb.mxu3 %v6242_v4 }
0x118f   :  { %3972 = vmatmul.f32.vlgmr.msrb.gmra.mxu0 %v3627_v46  ;;  %4189 = vmatpush.msra.mxu1 %v7383_v54 }
0x1190   :  { %3905 = vmatpush.msra.mxu2 %v7384_v58  ;;  %4134 = vmatpush.msrb.mxu3 %v7385_v10  ;;  %v5765_v58 = vld [vmem:[%s7216_s0 + $0x14] sm:$0xf] }
0x1191   :  { %3998 = vmatmul.f32.vlgmr.msrb.gmra.mxu1 %v3627_v46  ;;  %4163 = vmatpush.msra.mxu0 %v7386_v51 }
0x1192   :  { %4140 = vmatpush.msrb.mxu3 %v7387_v14  ;;  %4191 = vmatpush.msra.mxu1 %v7388_v50 }
0x1193   :  { %4166 = vmatpush.msra.mxu0 %v7389_v63  ;;  %4089 = vmatpush.msrb.mxu2 %v7383_v54 }
0x1194   :  { %4193 = vmatpush.msra.mxu1 %v7390_v25  ;;  %4249 = vmatpush.msra.mxu3 %v7383_v54 }
0x1195   :  { %3908 = vmatmul.f32.vlgmr.msra.gmra.mxu2 %v3628_v39  ;;  %4169 = vmatpush.msra.mxu0 %v7391_v40 }
0x1196   :  { %4091 = vmatpush.msrb.mxu2 %v7388_v50  ;;  %4195 = vmatpush.msra.mxu1 %v7392_v44 }
0x1197   :  { %4251 = vmatpush.msra.mxu3 %v7388_v50  ;;  %4324 = vmatpush.msrb.mxu0 %v5984_v12 }
0x1198   :  { %4358 = vmatpush.msrb.mxu1 %v7393_v57  ;;  %4093 = vmatpush.msrb.mxu2 %v7390_v25 }
0x1199   :  { %4253 = vmatpush.msra.mxu3 %v7390_v25  ;;  %4326 = vmatpush.msrb.mxu0 %v5986_v13 }
0x119a   :  { %4364 = vmatpush.msrb.mxu1 %v7394_v2  ;;  %4095 = vmatpush.msrb.mxu2 %v7392_v44 }
0x119b   :  { %4255 = vmatpush.msra.mxu3 %v7392_v44  ;;  %4328 = vmatpush.msrb.mxu0 %v5999_v18 }
0x119c   :  { %4218 = vmatpush.msra.mxu2 %v7395_v21  ;;  %4370 = vmatpush.msrb.mxu1 %v7396_v7 }
0x119d   :  { %4330 = vmatpush.msrb.mxu0 %v6001_v19 }
0x119e   :  { %4222 = vmatpush.msra.mxu2 %v7397_v15  ;;  %4376 = vmatpush.msrb.mxu1 %v7398_v49 }
0x119f   :  { %4332 = vmatpush.msrb.mxu0 %v6003_v20 }
0x11a0   :  { %4226 = vmatpush.msra.mxu2 %v7399_v62  ;;  %4382 = vmatpush.msrb.mxu1 %v7400_v16 }
0x11a2   :  { %4230 = vmatpush.msra.mxu2 %v7401_v52 }
0x11fc   :  { %v3711_v39 = vpop.f32.mrf.mxu0 }
0x11fe   :  { %v3739_v0 = vpop.f32.mrf.mxu1 }
0x1200   :  { %v3679_v46 = vpop.f32.mrf.mxu3 }
0x1204   :  { %v3831_v21 = vpop.f32.mrf.mxu0 }
0x1206   :  { %v3877_v2 = vpop.f32.mrf.mxu1 }
0x1207   :  { %v3878_v49 = vadd.f32 %v3877_v2, %v3831_v21 }
0x1208   :  { %v3633_v37 = vpop.f32.mrf.mxu2  ;;  %v3801_v11 = vpop.f32.mrf.mxu3 }
0x1209   :  { %v3680_v15 = vadd.f32 %v3679_v46, %v3633_v37  ;;  %v5767_v37 = vld [vmem:[%s7217_s1 + $0xa] sm:$0x3] }
0x120b   :  { %v3712_v57 = vadd.f32 %v3711_v39, %v3680_v15 }
0x120c   :  { %v3973_v63 = vpop.f32.mrf.mxu0 }
0x120d   :  { %v3740_v25 = vadd.f32 %v3739_v0, %v3712_v57  ;;  %v4039_v0 = vpop.permute.xlu0 %4038 }
0x120e   :  { %v3999_v52 = vpop.f32.mrf.mxu1 }
0x1210   :  { %v3775_v7 = vpop.f32.mrf.mxu2  ;;  %v3937_v62 = vpop.f32.mrf.mxu3 }
0x1211   :  { %v3776_v50 = vadd.f32 %v3775_v7, %v3740_v25 }
0x1213   :  { %v3802_v10 = vadd.f32 %v3801_v11, %v3776_v50 }
0x1218   :  { %v3909_v44 = vpop.f32.mrf.mxu2 }
0x1219   :  { %v3910_v40 = vadd.f32 %v3909_v44, %v3878_v49 }
0x121b   :  { %v3938_v16 = vadd.f32 %v3937_v62, %v3910_v40 }
0x121d   :  { %v3974_v14 = vadd.f32 %v3973_v63, %v3938_v16 }
0x121f   :  { %v4000_v51 = vadd.f32 %v3999_v52, %v3974_v14 }
0x1221   :  { %v4004_v54 = vrot.slane %v4000_v51, 6 }
0x1223   :  { %v4005_v46 = vsel %vm67_vm0, %v3802_v10, %v4004_v54 }
0x1224   :  { %v4007_v2 = vadd.f32 %v5765_v58, %v4005_v46 }
0x1226   :  { %5855 = vtanh.f32 %v4007_v2  ;;  %v5766_v21 = vmul.f32 -1.442695, %v4007_v2 }
0x1228   :  { %5857 = vpow2.f32 %v5766_v21 }
0x122c   :  { %v5856_v44 = vpop.eup %5855 }
0x122d   :  { %4029 = vst [vmem:[#allocation1] ss:$4 sm:$0xff] %v5856_v44 }
0x122e   :  { %v5858_v40 = vpop.eup %5857 }
0x122f   :  { %v4012_v57 = vadd.f32 1.0, %v5858_v40 }
0x1231   :  { %5859 = vrcp.f32 %v4012_v57  ;;  %v4024_v50 = vand.u32 2147483648, %v4012_v57  ;;  %v4022_v15 = vand.u32 2147483647, %v4012_v57  ;;  %vm4018_vm13 = vweird.f32 %v4012_v57 }
0x1233   :  { %v4025_v54 = vor.u32 1.1754944e-38, %v4024_v50  ;;  %vm4023_vm1 = vcmp.eq.f32.partialorder %v4022_v15, 8.507059e+37 }
0x1234   :  { %v4030_v51 = vld.sshfl [vmem:[#allocation1] sm:$0xff pattern:$0x73625140] }
0x1237   :  { %v5860_v63 = vpop.eup %5859 }
0x1238   :  { %v4014_v25 = vmul.f32 %v5860_v63, %v4012_v57  ;;  %vm4019_vm12 = vweird.f32 %v5860_v63 }
0x1239   :  { %vm4020_vm15 = vmor %vm4018_vm13, %vm4019_vm12 }
0x123a   :  { %v4015_v14 = vsub.f32 1.0, %v4014_v25 }
0x123c   :  { %v4016_v7 = vmul.f32 %v5860_v63, %v4015_v14 }
0x123e   :  { %v4017_v49 = vadd.f32 %v5860_v63, %v4016_v7 }
0x1240   :  { %v4021_v58 = vsel %vm4020_vm15, %v5860_v63, %v4017_v49 }
0x1241   :  { %v4026_v10 = vsel %vm4023_vm1, %v4025_v54, %v4021_v58 }
0x1242   :  { %4033 = vst [vmem:[#allocation1] ss:$4 sm:$0xff] %v4026_v10 }
0x1249   :  { %v4034_v62 = vld.sshfl [vmem:[#allocation1] sm:$0xff pattern:$0x73625140] }
0x124a   :  { %v4036_v16 = vsel %vm6193_vm10, %v4030_v51, %v4034_v62  ;;  %4066 = vst [vmem:[#allocation1] ss:$4 sm:$0xff] %v4007_v2 }
0x124b   :  { %4043 = vrot.lane.b32.xlu2 %v4036_v16, %s5896_s19  ;;  %v4041_v11 = vmul.f32 %v4039_v0, %v4036_v16 }
0x12a5   :  { %v4044_v52 = vpop.permute.xlu2 %4043 }
0x12a6   :  { %v4046_v39 = vmul.f32 %v4044_v52, %v4036_v16 }
0x12a8   :  { %4048 = vrot.lane.b32.xlu1 %v4046_v39, %s5894_s2 }
0x12b0   :  { %4062 = vperm.xlu1 %5793, %v5767_v37  }
0x131a   :  { %v4049_v46 = vpop.permute.xlu1 %4048 }
0x131b   :  { %v4051_v21 = vadd.f32 %v4049_v46, %v4041_v11 }
0x131d   :  { %5861 = vtanh.f32 %v4051_v21  ;;  %4301 = vrot.lane.b32.xlu1 %v4051_v21, %s5898_s13 }
0x1322   :  { %v6942_v57 = vpop.permute.xlu1 %4062 }
0x1323   :  { %v5862_v44 = vpop.eup %5861 }
0x1324   :  { %4054 = vrot.lane.b32.xlu2 %v5862_v44, %s5896_s19 }
0x137e   :  { %v4055_v2 = vpop.permute.xlu2 %4054 }
0x137f   :  { %v4057_v40 = vmul.f32 %v4055_v2, %v4036_v16 }
0x1381   :  { %4072 = vrot.lane.b32.xlu0 %v4057_v40, %s5894_s2 }
0x1389   :  { %4296 = vrot.lane.b32.xlu0 %v4057_v40, %s5897_s25 }
0x138f   :  { %v4302_v63 = vpop.permute.xlu1 %4301 }
0x1390   :  { %4304 = vst.msk [vmem:[#allocation3] sm:$0x3] %vm38_vm3, %v4302_v63 }
0x1397   :  { %v4306_v25 = vld [vmem:[#allocation3] sm:$0x3] }
0x1398   :  { %4744 = vrot.lane.b32.xlu0 %v4306_v25, %s5894_s2 }
0x13f3   :  { %v4073_v14 = vpop.permute.xlu0 %4072 }
0x13f4   :  { %v4074_v50 = vsel %vm544_vm11, %v4073_v14, 0  ;;  %5770 = vst.msk [vmem:[%s7219_s8 + $0xa] sm:$0x3] %vm38_vm3, %v4073_v14 }
0x13f5   :  { %v4096_v7 = vand.u32 4294901760, %v4074_v50 }
0x13f7   :  { %v4097_v15 = vsub.f32 %v4074_v50, %v4096_v7  ;;  %4142 = vmatmul.f32.vlgmr.msrb.gmra.mxu3 %v4096_v7 }
0x13f8   :  { %4432 = vmatpush.msrb.mxu3 %v5984_v12 }
0x13f9   :  { %v4098_v49 = vand.u32 4294901760, %v4097_v15  ;;  %4172 = vmatmul.f32.vlgmr.msra.gmra.mxu0 %v4097_v15 }
0x13fa   :  { %4434 = vmatpush.msrb.mxu3 %v5986_v13  ;;  %4462 = vmatpush.msra.mxu0 %v6038_v30 }
0x13fb   :  { %v4099_v54 = vsub.f32 %v4097_v15, %v4098_v49  ;;  %4199 = vmatmul.f32.vlgmr.msra.gmra.mxu1 %v4098_v49 }
0x13fc   :  { %4436 = vmatpush.msrb.mxu3 %v5999_v18  ;;  %4496 = vmatpush.msra.mxu1 %v5984_v12 }
0x13fd   :  { %v4100_v58 = vand.u32 4294901760, %v4099_v54  ;;  %4466 = vmatpush.msra.mxu0 %v6041_v31 }
0x13fe   :  { %4438 = vmatpush.msrb.mxu3 %v6001_v19  ;;  %4498 = vmatpush.msra.mxu1 %v5986_v13 }
0x13ff   :  { %4101 = vmatmul.f32.vlgmr.msrb.gmra.mxu2 %v4100_v58  ;;  %4257 = vmatmul.f32.vlgmr.msra.gmra.mxu3 %v4096_v7 }
0x1400   :  { %4401 = vmatpush.msrb.mxu2 %v6009_v22  ;;  %4440 = vmatpush.msrb.mxu3 %v6003_v20 }
0x1401   :  { %4500 = vmatpush.msra.mxu1 %v5999_v18  ;;  %4470 = vmatpush.msra.mxu0 %v6051_v34 }
0x1402   :  { %4556 = vmatpush.msra.mxu3 %v6102_v53  ;;  %4404 = vmatpush.msrb.mxu2 %v6014_v23 }
0x1403   :  { %4502 = vmatpush.msra.mxu1 %v6001_v19  ;;  %4474 = vmatpush.msra.mxu0 %v7330_v27 }
0x1404   :  { %4562 = vmatpush.msra.mxu3 %v7328_v59  ;;  %4407 = vmatpush.msrb.mxu2 %v7329_v48 }
0x1405   :  { %4504 = vmatpush.msra.mxu1 %v6003_v20  ;;  %4478 = vmatpush.msra.mxu0 %v7347_v41 }
0x1406   :  { %4568 = vmatpush.msra.mxu3 %v7331_v35  ;;  %4410 = vmatpush.msrb.mxu2 %v7346_v42 }
0x1407   :  { %4232 = vmatmul.f32.vlgmr.msra.gmra.mxu2 %v4096_v7 }
0x1408   :  { %4574 = vmatpush.msra.mxu3 %v7348_v1  ;;  %4413 = vmatpush.msrb.mxu2 %v7349_v61 }
0x140a   :  { %4522 = vmatpush.msra.mxu2 %v5997_v17  ;;  %4580 = vmatpush.msra.mxu3 %v7350_v28 }
0x140c   :  { %4524 = vmatpush.msra.mxu2 %v5976_v8 }
0x140e   :  { %4526 = vmatpush.msra.mxu2 %v5978_v9 }
0x1410   :  { %4528 = vmatpush.msra.mxu2 %v5970_v5 }
0x1412   :  { %4530 = vmatpush.msra.mxu2 %v6062_v38 }
0x1476   :  { %v4173_v52 = vpop.f32.mrf.mxu0 }
0x1478   :  { %v4200_v37 = vpop.f32.mrf.mxu1 }
0x147a   :  { %v4143_v10 = vpop.f32.mrf.mxu3 }
0x1482   :  { %v4102_v51 = vpop.f32.mrf.mxu2  ;;  %v4258_v21 = vpop.f32.mrf.mxu3 }
0x1483   :  { %v4103_v62 = vadd.f32 %v6728_v26, %v4102_v51  ;;  %v4067_v51 = vld.sshfl [vmem:[#allocation1 + $0x8] sm:$0xff pattern:$0x73625140] }
0x1485   :  { %v4144_v16 = vadd.f32 %v4143_v10, %v4103_v62  ;;  %v4069_v62 = vmul.f32 %v4067_v51, %v6942_v57  ;;  %v7412_v51 = vld [vmem:[#allocation9_spill] sm:$0xff] }
0x1487   :  { %v4174_v39 = vadd.f32 %v4173_v52, %v4144_v16  ;;  %v4070_v52 = vadd.f32 %v4069_v62, %v6870_v45  ;;  %v7413_v62 = vld [vmem:[#allocation10_spill] sm:$0xff] }
0x1489   :  { %v4201_v0 = vadd.f32 %v4200_v37, %v4174_v39 }
0x148a   :  { %v4233_v11 = vpop.f32.mrf.mxu2 }
0x148b   :  { %v4234_v46 = vadd.f32 %v4233_v11, %v4201_v0 }
0x148d   :  { %v4259_v44 = vadd.f32 %v4258_v21, %v4234_v46  ;;  %v4297_v46 = vpop.permute.xlu0 %4296 }
0x148f   :  { %v5768_v2 = vmul.f32 -1.442695, %v4259_v44  ;;  %4283 = vrot.lane.b32.xlu2 %v4259_v44, %s5893_s17 }
0x1491   :  { %5863 = vpow2.f32 %v5768_v2 }
0x1497   :  { %v5864_v40 = vpop.eup %5863 }
0x1498   :  { %v4264_v63 = vadd.f32 1.0, %v5864_v40 }
0x149a   :  { %5865 = vrcp.f32 %v4264_v63  ;;  %v4276_v26 = vand.u32 2147483648, %v4264_v63  ;;  %v4274_v15 = vand.u32 2147483647, %v4264_v63  ;;  %vm4270_vm6 = vweird.f32 %v4264_v63 }
0x149c   :  { %v4277_v54 = vor.u32 1.1754944e-38, %v4276_v26  ;;  %vm4275_vm8 = vcmp.eq.f32.partialorder %v4274_v15, 8.507059e+37  ;;  %v7405_v26 = vld [vmem:[#allocation22_spill] sm:$0xff]  ;;  %v7407_v15 = vld [vmem:[#allocation21_spill] sm:$0xff] }
0x14a0   :  { %v5866_v25 = vpop.eup %5865 }
0x14a1   :  { %v4266_v14 = vmul.f32 %v5866_v25, %v4264_v63  ;;  %vm4271_vm5 = vweird.f32 %v5866_v25 }
0x14a2   :  { %vm4272_vm7 = vmor %vm4270_vm6, %vm4271_vm5 }
0x14a3   :  { %v4267_v50 = vsub.f32 1.0, %v4266_v14  ;;  %v7403_v14 = vld [vmem:[#allocation12_spill] sm:$0xff] }
0x14a5   :  { %v4268_v7 = vmul.f32 %v5866_v25, %v4267_v50  ;;  %v7404_v50 = vld [vmem:[#allocation31_spill] sm:$0xff] }
0x14a7   :  { %v4269_v49 = vadd.f32 %v5866_v25, %v4268_v7  ;;  %v7406_v7 = vld [vmem:[#allocation32_spill] sm:$0xff] }
0x14a9   :  { %v4273_v58 = vsel %vm4272_vm7, %v5866_v25, %v4269_v49  ;;  %v7402_v25 = vld [vmem:[#allocation20_spill] sm:$0xff]  ;;  %v7408_v49 = vld [vmem:[#allocation26_spill] sm:$0xff] }
0x14aa   :  { %v4278_v10 = vsel %vm4275_vm8, %v4277_v54, %v4273_v58  ;;  %v7409_v54 = vld [vmem:[#allocation25_spill] sm:$0xff] }
0x14ab   :  { %5771 = vst.msk [vmem:[%s7221_s9 + $0xa] sm:$0x3] %vm759_vm14, %v4278_v10  ;;  %v4280_v16 = vsub.f32 1.0, %v4278_v10  ;;  %v7410_v58 = vld [vmem:[#allocation29_spill] sm:$0xff] }
0x14ad   :  { %v4281_v37 = vmul.f32 %v4280_v16, %v4070_v52  ;;  %v7414_v16 = vld [vmem:[#allocation23_spill] sm:$0xff] }
0x14ae   :  { %v7415_v52 = vld [vmem:[#allocation11_spill] sm:$0xff] }
0x14e9   :  { %v4284_v39 = vpop.permute.xlu2 %4283 }
0x14ea   :  { %v4286_v0 = vmul.f32 %v4284_v39, %v4278_v10  ;;  %v7411_v10 = vld [vmem:[#allocation27_spill] sm:$0xff]  ;;  %v7416_v39 = vld [vmem:[#allocation24_spill] sm:$0xff] }
0x14ec   :  { %v4287_v11 = vadd.f32 %v4286_v0, %v4281_v37  ;;  %v7417_v37 = vld [vmem:[#allocation13_spill] sm:$0xff]  ;;  %v7418_v0 = vld [vmem:[#allocation28_spill] sm:$0xff] }
0x14ee   :  { %5769 = vst.msk [vmem:[%s7222_s7 + $0xa] sm:$0x3] %vm759_vm14, %v4287_v11 }
0x14ef   :  { %4295 = vst.msk [vmem:[#allocation2] sm:$0x3] %vm759_vm14, %v4287_v11  ;;  %v7419_v11 = vld [vmem:[#allocation14_spill] sm:$0xff] }
0x14f0   :  { %4299 = vst.msk [vmem:[#allocation2] sm:$0x3] %vm768_vm4, %v4297_v46  ;;  %v7420_v46 = vld [vmem:[#allocation30_spill] sm:$0xff] }
0x14f7   :  { %v6996_v21 = vld [vmem:[#allocation2] sm:$0x3] }
0x14f8   :  { %v4310_v57 = vsel %vm63_vm2, %v6996_v21, 0 }
0x14f9   :  { %v4333_v45 = vand.u32 4294901760, %v4310_v57 }
0x14fb   :  { %4384 = vmatmul.f32.vlgmr.msrb.gmra.mxu1 %v4333_v45  ;;  %v4334_v44 = vsub.f32 %v4310_v57, %v4333_v45 }
0x14fc   :  { %4630 = vmatpush.msrb.mxu1 %v5997_v17 }
0x14fd   :  { %4416 = vmatmul.f32.vlgmr.msrb.gmra.mxu2 %v4334_v44  ;;  %v4335_v2 = vand.u32 4294901760, %v4334_v44 }
0x14fe   :  { %4632 = vmatpush.msrb.mxu1 %v5976_v8  ;;  %4660 = vmatpush.msrb.mxu2 %v6057_v36 }
0x14ff   :  { %4444 = vmatmul.f32.vlgmr.msrb.gmra.mxu3 %v4335_v2  ;;  %v4336_v40 = vsub.f32 %v4334_v44, %v4335_v2 }
0x1500   :  { %4634 = vmatpush.msrb.mxu1 %v5978_v9  ;;  %4664 = vmatpush.msrb.mxu2 %v6044_v32 }
0x1501   :  { %v4337_v63 = vand.u32 4294901760, %v4336_v40  ;;  %4694 = vmatpush.msrb.mxu3 %v5997_v17 }
0x1502   :  { %4636 = vmatpush.msrb.mxu1 %v5970_v5  ;;  %4668 = vmatpush.msrb.mxu2 %v6087_v47 }
0x1503   :  { %4338 = vmatmul.f32.vlgmr.msrb.gmra.mxu0 %v4337_v63  ;;  %4506 = vmatmul.f32.vlgmr.msra.gmra.mxu1 %v4333_v45 }
0x1504   :  { %4696 = vmatpush.msrb.mxu3 %v5976_v8  ;;  %4599 = vmatpush.msrb.mxu0 %v6033_v29 }
0x1505   :  { %4536 = vmatmul.f32.vlgmr.msra.gmra.mxu2 %v4337_v63  ;;  %4638 = vmatpush.msrb.mxu1 %v6062_v38 }
0x1506   :  { %4672 = vmatpush.msrb.mxu2 %v6112_v56  ;;  %4698 = vmatpush.msrb.mxu3 %v5978_v9 }
0x1507   :  { %4582 = vmatmul.f32.vlgmr.msra.gmra.mxu3 %v4333_v45  ;;  %4602 = vmatpush.msrb.mxu0 %v6018_v24 }
0x1508   :  { %4676 = vmatpush.msrb.mxu2 %v6124_v60  ;;  %4700 = vmatpush.msrb.mxu3 %v5970_v5 }
0x1509   :  { %4605 = vmatpush.msrb.mxu0 %v6047_v33  ;;  %4828 = vmatpush.msra.mxu1 %v6240_v3 }
0x150a   :  { %4702 = vmatpush.msrb.mxu3 %v6062_v38  ;;  %4866 = vmatpush.msra.mxu2 %v6219_v55 }
0x150b   :  { %4480 = vmatmul.f32.vlgmr.msra.gmra.mxu0 %v4333_v45  ;;  %4642 = vmatmul.f32.vlgmr.msrb.gmra.mxu1 %v4335_v2 }
0x150c   :  { %4608 = vmatpush.msrb.mxu0 %v6076_v43  ;;  %4834 = vmatpush.msra.mxu1 %v6242_v4 }
0x150d   :  { %4678 = vmatmul.f32.vlgmr.msrb.gmra.mxu2 %v4333_v45  ;;  %4895 = vmatpush.msra.mxu3 %v7402_v25 }
0x150e   :  { %4611 = vmatpush.msrb.mxu0 %v7403_v14  ;;  %4840 = vmatpush.msra.mxu1 %v7404_v50  ;;  %v5772_v50 = vld [vmem:[%s7216_s0 + $0x18] sm:$0xf] }
0x150f   :  { %4704 = vmatmul.f32.vlgmr.msrb.gmra.mxu3 %v4333_v45  ;;  %4869 = vmatpush.msra.mxu2 %v7405_v26 }
0x1510   :  { %4846 = vmatpush.msra.mxu1 %v7406_v7  ;;  %4897 = vmatpush.msra.mxu3 %v7407_v15 }
0x1511   :  { %4872 = vmatpush.msra.mxu2 %v7408_v49  ;;  %4795 = vmatpush.msra.mxu0 %v7402_v25 }
0x1512   :  { %4899 = vmatpush.msra.mxu3 %v7409_v54  ;;  %4955 = vmatpush.msrb.mxu1 %v7402_v25 }
0x1513   :  { %4614 = vmatmul.f32.vlgmr.msrb.gmra.mxu0 %v4334_v44  ;;  %4875 = vmatpush.msra.mxu2 %v7410_v58 }
0x1514   :  { %4797 = vmatpush.msra.mxu0 %v7407_v15  ;;  %4901 = vmatpush.msra.mxu3 %v7411_v10 }
0x1515   :  { %4957 = vmatpush.msrb.mxu1 %v7407_v15  ;;  %5030 = vmatpush.msrb.mxu2 %v5984_v12 }
0x1516   :  { %5064 = vmatpush.msrb.mxu3 %v7412_v51  ;;  %4799 = vmatpush.msra.mxu0 %v7409_v54 }
0x1517   :  { %4959 = vmatpush.msrb.mxu1 %v7409_v54  ;;  %5032 = vmatpush.msrb.mxu2 %v5986_v13 }
0x1518   :  { %5070 = vmatpush.msrb.mxu3 %v7413_v62  ;;  %4801 = vmatpush.msra.mxu0 %v7411_v10 }
0x1519   :  { %4961 = vmatpush.msrb.mxu1 %v7411_v10  ;;  %5034 = vmatpush.msrb.mxu2 %v5999_v18 }
0x151a   :  { %4924 = vmatpush.msrb.mxu0 %v7414_v16  ;;  %5076 = vmatpush.msrb.mxu3 %v7415_v52 }
0x151b   :  { %5036 = vmatpush.msrb.mxu2 %v6001_v19 }
0x151c   :  { %4928 = vmatpush.msrb.mxu0 %v7416_v39  ;;  %5082 = vmatpush.msrb.mxu3 %v7417_v37 }
0x151d   :  { %5038 = vmatpush.msrb.mxu2 %v6003_v20 }
0x151e   :  { %4932 = vmatpush.msrb.mxu0 %v7418_v0  ;;  %5088 = vmatpush.msrb.mxu3 %v7419_v11 }
0x1520   :  { %4936 = vmatpush.msrb.mxu0 %v7420_v46 }
0x1578   :  { %v4385_v57 = vpop.f32.mrf.mxu1 }
0x1580   :  { %v4339_v45 = vpop.f32.mrf.mxu0  ;;  %v4417_v44 = vpop.f32.mrf.mxu2 }
0x1581   :  { %v4507_v40 = vpop.f32.mrf.mxu1  ;;  %v4386_v62 = vadd.f32 %v4385_v57, %v4339_v45 }
0x1582   :  { %v4445_v2 = vpop.f32.mrf.mxu3 }
0x1583   :  { %v4418_v37 = vadd.f32 %v4417_v44, %v4386_v62 }
0x1585   :  { %v4446_v58 = vadd.f32 %v4445_v2, %v4418_v37  ;;  %v4745_v37 = vpop.permute.xlu0 %4744 }
0x1588   :  { %v4481_v63 = vpop.f32.mrf.mxu0  ;;  %v4537_v51 = vpop.f32.mrf.mxu2 }
0x1589   :  { %v4643_v0 = vpop.f32.mrf.mxu1  ;;  %v4482_v49 = vadd.f32 %v4481_v63, %v4446_v58 }
0x158a   :  { %v4583_v52 = vpop.f32.mrf.mxu3 }
0x158b   :  { %v4584_v39 = vadd.f32 %v4583_v52, %v4537_v51  ;;  %v4508_v26 = vadd.f32 %v4507_v40, %v4482_v49  ;;  %v5774_v52 = vld [vmem:[%s7217_s1 + $0xc] sm:$0x3] }
0x1590   :  { %v4615_v16 = vpop.f32.mrf.mxu0  ;;  %v4679_v54 = vpop.f32.mrf.mxu2 }
0x1591   :  { %v4616_v10 = vadd.f32 %v4615_v16, %v4584_v39 }
0x1592   :  { %v4705_v46 = vpop.f32.mrf.mxu3 }
0x1593   :  { %v4644_v11 = vadd.f32 %v4643_v0, %v4616_v10 }
0x1595   :  { %v4680_v15 = vadd.f32 %v4679_v54, %v4644_v11 }
0x1597   :  { %v4706_v7 = vadd.f32 %v4705_v46, %v4680_v15 }
0x1599   :  { %v4710_v14 = vrot.slane %v4706_v7, 6 }
0x159b   :  { %v4711_v57 = vsel %vm67_vm0, %v4508_v26, %v4710_v14 }
0x159c   :  { %v4713_v45 = vadd.f32 %v5772_v50, %v4711_v57 }
0x159e   :  { %5867 = vtanh.f32 %v4713_v45  ;;  %v5773_v44 = vmul.f32 -1.442695, %v4713_v45 }
0x15a0   :  { %5869 = vpow2.f32 %v5773_v44 }
0x15a4   :  { %v5868_v16 = vpop.eup %5867 }
0x15a5   :  { %4735 = vst [vmem:[#allocation1] ss:$4 sm:$0xff] %v5868_v16 }
0x15a6   :  { %v5870_v10 = vpop.eup %5869 }
0x15a7   :  { %v4718_v39 = vadd.f32 1.0, %v5870_v10 }
0x15a9   :  { %5871 = vrcp.f32 %v4718_v39  ;;  %v4730_v49 = vand.u32 2147483648, %v4718_v39  ;;  %v4728_v46 = vand.u32 2147483647, %v4718_v39  ;;  %vm4724_vm12 = vweird.f32 %v4718_v39 }
0x15ab   :  { %v4731_v14 = vor.u32 1.1754944e-38, %v4730_v49  ;;  %vm4729_vm15 = vcmp.eq.f32.partialorder %v4728_v46, 8.507059e+37 }
0x15ac   :  { %v4736_v7 = vld.sshfl [vmem:[#allocation1] sm:$0xff pattern:$0x73625140] }
0x15af   :  { %v5872_v54 = vpop.eup %5871 }
0x15b0   :  { %v4720_v58 = vmul.f32 %v5872_v54, %v4718_v39  ;;  %vm4725_vm9 = vweird.f32 %v5872_v54 }
0x15b1   :  { %vm4726_vm13 = vmor %vm4724_vm12, %vm4725_vm9 }
0x15b2   :  { %v4721_v15 = vsub.f32 1.0, %v4720_v58 }
0x15b4   :  { %v4722_v0 = vmul.f32 %v5872_v54, %v4721_v15 }
0x15b6   :  { %v4723_v2 = vadd.f32 %v5872_v54, %v4722_v0 }
0x15b8   :  { %v4727_v50 = vsel %vm4726_vm13, %v5872_v54, %v4723_v2 }
0x15b9   :  { %v4732_v26 = vsel %vm4729_vm15, %v4731_v14, %v4727_v50 }
0x15ba   :  { %4739 = vst [vmem:[#allocation1] ss:$4 sm:$0xff] %v4732_v26 }
0x15c1   :  { %v4740_v40 = vld.sshfl [vmem:[#allocation1] sm:$0xff pattern:$0x73625140] }
0x15c2   :  { %v4742_v63 = vsel %vm6193_vm10, %v4736_v7, %v4740_v40  ;;  %4772 = vst [vmem:[#allocation1] ss:$4 sm:$0xff] %v4713_v45 }
0x15c3   :  { %4749 = vrot.lane.b32.xlu2 %v4742_v63, %s5896_s19  ;;  %v4747_v11 = vmul.f32 %v4745_v37, %v4742_v63 }
0x161d   :  { %v4750_v51 = vpop.permute.xlu2 %4749 }
0x161e   :  { %v4752_v62 = vmul.f32 %v4750_v51, %v4742_v63 }
0x1620   :  { %4754 = vrot.lane.b32.xlu1 %v4752_v62, %s5894_s2 }
0x1628   :  { %4768 = vperm.xlu1 %5793, %v5774_v52   ;;  %v4773_v52 = vld.sshfl [vmem:[#allocation1 + $0x8] sm:$0xff pattern:$0x73625140] }
0x1692   :  { %v4755_v57 = vpop.permute.xlu1 %4754 }
0x1693   :  { %v4757_v44 = vadd.f32 %v4755_v57, %v4747_v11 }
0x1695   :  { %5873 = vtanh.f32 %v4757_v44  ;;  %5007 = vrot.lane.b32.xlu1 %v4757_v44, %s5898_s13 }
0x169a   :  { %v7068_v39 = vpop.permute.xlu1 %4768 }
0x169b   :  { %v5874_v16 = vpop.eup %5873  ;;  %v4775_v37 = vmul.f32 %v4773_v52, %v7068_v39 }
0x169c   :  { %4760 = vrot.lane.b32.xlu2 %v5874_v16, %s5896_s19 }
0x169d   :  { %v4776_v57 = vadd.f32 %v4775_v37, %v6996_v21 }
0x16f6   :  { %v4761_v45 = vpop.permute.xlu2 %4760 }
0x16f7   :  { %v4763_v10 = vmul.f32 %v4761_v45, %v4742_v63 }
0x16f9   :  { %4778 = vrot.lane.b32.xlu0 %v4763_v10, %s5894_s2 }
0x1701   :  { %5002 = vrot.lane.b32.xlu0 %v4763_v10, %s5897_s25 }
0x1707   :  { %v5008_v54 = vpop.permute.xlu1 %5007 }
0x1708   :  { %5010 = vst.msk [vmem:[#allocation3] sm:$0x3] %vm38_vm3, %v5008_v54 }
0x170f   :  { %v5012_v58 = vld [vmem:[#allocation3] sm:$0x3] }
0x1710   :  { %5450 = vrot.lane.b32.xlu0 %v5012_v58, %s5894_s2 }
0x176b   :  { %v4779_v15 = vpop.permute.xlu0 %4778 }
0x176c   :  { %v4780_v49 = vsel %vm544_vm11, %v4779_v15, 0  ;;  %5777 = vst.msk [vmem:[%s7219_s8 + $0xc] sm:$0x3] %vm38_vm3, %v4779_v15 }
0x176d   :  { %v4802_v0 = vand.u32 4294901760, %v4780_v49 }
0x176f   :  { %v4803_v46 = vsub.f32 %v4780_v49, %v4802_v0  ;;  %4848 = vmatmul.f32.vlgmr.msra.gmra.mxu1 %v4802_v0 }
0x1770   :  { %5138 = vmatpush.msra.mxu1 %v5984_v12 }
0x1771   :  { %v4804_v2 = vand.u32 4294901760, %v4803_v46  ;;  %4878 = vmatmul.f32.vlgmr.msra.gmra.mxu2 %v4803_v46 }
0x1772   :  { %5140 = vmatpush.msra.mxu1 %v5986_v13  ;;  %5168 = vmatpush.msra.mxu2 %v6038_v30 }
0x1773   :  { %v4805_v14 = vsub.f32 %v4803_v46, %v4804_v2  ;;  %4905 = vmatmul.f32.vlgmr.msra.gmra.mxu3 %v4804_v2  ;;  %v5003_v54 = vpop.permute.xlu0 %5002 }
0x1774   :  { %5142 = vmatpush.msra.mxu1 %v5999_v18  ;;  %5202 = vmatpush.msra.mxu3 %v5984_v12 }
0x1775   :  { %v4806_v50 = vand.u32 4294901760, %v4805_v14  ;;  %5172 = vmatpush.msra.mxu2 %v6041_v31 }
0x1776   :  { %5144 = vmatpush.msra.mxu1 %v6001_v19  ;;  %5204 = vmatpush.msra.mxu3 %v5986_v13 }
0x1777   :  { %4807 = vmatmul.f32.vlgmr.msra.gmra.mxu0 %v4806_v50  ;;  %4963 = vmatmul.f32.vlgmr.msrb.gmra.mxu1 %v4802_v0 }
0x1778   :  { %5107 = vmatpush.msra.mxu0 %v6009_v22  ;;  %5146 = vmatpush.msra.mxu1 %v6003_v20 }
0x1779   :  { %5206 = vmatpush.msra.mxu3 %v5999_v18  ;;  %5176 = vmatpush.msra.mxu2 %v6051_v34  ;;  %v7111_v18 = vld [vmem:[%s7220_s6] ss:$0 sm:$0xff] }
0x177a   :  { %5262 = vmatpush.msrb.mxu1 %v6102_v53  ;;  %5110 = vmatpush.msra.mxu0 %v6014_v23 }
0x177b   :  { %5208 = vmatpush.msra.mxu3 %v6001_v19  ;;  %5180 = vmatpush.msra.mxu2 %v7330_v27 }
0x177c   :  { %5268 = vmatpush.msrb.mxu1 %v7328_v59  ;;  %5113 = vmatpush.msra.mxu0 %v7329_v48 }
0x177d   :  { %5210 = vmatpush.msra.mxu3 %v6003_v20  ;;  %5184 = vmatpush.msra.mxu2 %v7347_v41 }
0x177e   :  { %5274 = vmatpush.msrb.mxu1 %v7331_v35  ;;  %5116 = vmatpush.msra.mxu0 %v7346_v42 }
0x177f   :  { %4938 = vmatmul.f32.vlgmr.msrb.gmra.mxu0 %v4802_v0 }
0x1780   :  { %5280 = vmatpush.msrb.mxu1 %v7348_v1  ;;  %5119 = vmatpush.msra.mxu0 %v7349_v61 }
0x1782   :  { %5228 = vmatpush.msrb.mxu0 %v5997_v17  ;;  %5286 = vmatpush.msrb.mxu1 %v7350_v28 }
0x1784   :  { %5230 = vmatpush.msrb.mxu0 %v5976_v8 }
0x1786   :  { %5232 = vmatpush.msrb.mxu0 %v5978_v9 }
0x1788   :  { %5234 = vmatpush.msrb.mxu0 %v5970_v5 }
0x178a   :  { %5236 = vmatpush.msrb.mxu0 %v6062_v38 }
0x17ec   :  { %v4849_v12 = vpop.f32.mrf.mxu1 }
0x17f4   :  { %v4808_v13 = vpop.f32.mrf.mxu0  ;;  %v4879_v22 = vpop.f32.mrf.mxu2 }
0x17f5   :  { %v4809_v19 = vadd.f32 %v7111_v18, %v4808_v13  ;;  %v4964_v59 = vpop.f32.mrf.mxu1 }
0x17f6   :  { %v4906_v30 = vpop.f32.mrf.mxu3 }
0x17f7   :  { %v4850_v20 = vadd.f32 %v4849_v12, %v4809_v19 }
0x17f9   :  { %v4880_v23 = vadd.f32 %v4879_v22, %v4850_v20 }
0x17fb   :  { %v4907_v31 = vadd.f32 %v4906_v30, %v4880_v23 }
0x17fc   :  { %v4939_v34 = vpop.f32.mrf.mxu0 }
0x17fd   :  { %v4940_v53 = vadd.f32 %v4939_v34, %v4907_v31 }
0x17ff   :  { %v4965_v48 = vadd.f32 %v4964_v59, %v4940_v53 }
0x1801   :  { %v5775_v27 = vmul.f32 -1.442695, %v4965_v48  ;;  %4989 = vrot.lane.b32.xlu2 %v4965_v48, %s5893_s17 }
0x1803   :  { %5875 = vpow2.f32 %v5775_v27 }
0x1809   :  { %v5876_v35 = vpop.eup %5875 }
0x180a   :  { %v4970_v42 = vadd.f32 1.0, %v5876_v35 }
0x180c   :  { %5877 = vrcp.f32 %v4970_v42  ;;  %v4982_v28 = vand.u32 2147483648, %v4970_v42  ;;  %v4980_v7 = vand.u32 2147483647, %v4970_v42  ;;  %vm4976_vm5 = vweird.f32 %v4970_v42 }
0x180e   :  { %v4983_v63 = vor.u32 1.1754944e-38, %v4982_v28  ;;  %vm4981_vm7 = vcmp.eq.f32.partialorder %v4980_v7, 8.507059e+37 }
0x1812   :  { %v5878_v41 = vpop.eup %5877 }
0x1813   :  { %v4972_v1 = vmul.f32 %v5878_v41, %v4970_v42  ;;  %vm4977_vm1 = vweird.f32 %v5878_v41  ;;  %v5779_v42 = vld [vmem:[%s7216_s0 + $0x1c] sm:$0xf] }
0x1814   :  { %vm4978_vm6 = vmor %vm4976_vm5, %vm4977_vm1 }
0x1815   :  { %v4973_v61 = vsub.f32 1.0, %v4972_v1 }
0x1817   :  { %v4974_v26 = vmul.f32 %v5878_v41, %v4973_v61 }
0x1819   :  { %v4975_v40 = vadd.f32 %v5878_v41, %v4974_v26 }
0x181b   :  { %v4979_v51 = vsel %vm4978_vm6, %v5878_v41, %v4975_v40 }
0x181c   :  { %v4984_v62 = vsel %vm4981_vm7, %v4983_v63, %v4979_v51 }
0x181d   :  { %5778 = vst.msk [vmem:[%s7221_s9 + $0xc] sm:$0x3] %vm759_vm14, %v4984_v62  ;;  %v4986_v11 = vsub.f32 1.0, %v4984_v62 }
0x181f   :  { %v4987_v16 = vmul.f32 %v4986_v11, %v4776_v57 }
0x185b   :  { %v4990_v44 = vpop.permute.xlu2 %4989 }
0x185c   :  { %v4992_v45 = vmul.f32 %v4990_v44, %v4984_v62 }
0x185e   :  { %v4993_v10 = vadd.f32 %v4992_v45, %v4987_v16 }
0x1860   :  { %5776 = vst.msk [vmem:[%s7222_s7 + $0xc] sm:$0x3] %vm759_vm14, %v4993_v10 }
0x1861   :  { %5001 = vst.msk [vmem:[#allocation2] sm:$0x3] %vm759_vm14, %v4993_v10 }
0x1862   :  { %5005 = vst.msk [vmem:[#allocation2] sm:$0x3] %vm768_vm4, %v5003_v54 }
0x1869   :  { %v7127_v58 = vld [vmem:[#allocation2] sm:$0x3] }
0x186a   :  { %v5016_v39 = vsel %vm63_vm2, %v7127_v58, 0 }
0x186b   :  { %v5039_v21 = vand.u32 4294901760, %v5016_v39 }
0x186d   :  { %5090 = vmatmul.f32.vlgmr.msrb.gmra.mxu3 %v5039_v21  ;;  %v5040_v15 = vsub.f32 %v5016_v39, %v5039_v21 }
0x186e   :  { %5336 = vmatpush.msrb.mxu3 %v5997_v17 }
0x186f   :  { %5122 = vmatmul.f32.vlgmr.msra.gmra.mxu0 %v5040_v15  ;;  %v5041_v49 = vand.u32 4294901760, %v5040_v15 }
0x1870   :  { %5338 = vmatpush.msrb.mxu3 %v5976_v8  ;;  %5366 = vmatpush.msra.mxu0 %v6057_v36  ;;  %v7429_v36 = vld [vmem:[#allocation27_spill] sm:$0xff] }
0x1871   :  { %5150 = vmatmul.f32.vlgmr.msra.gmra.mxu1 %v5041_v49  ;;  %v5042_v0 = vsub.f32 %v5040_v15, %v5041_v49 }
0x1872   :  { %5340 = vmatpush.msrb.mxu3 %v5978_v9  ;;  %5370 = vmatpush.msra.mxu0 %v6044_v32  ;;  %v7427_v32 = vld [vmem:[#allocation25_spill] sm:$0xff] }
0x1873   :  { %v5043_v46 = vand.u32 4294901760, %v5042_v0  ;;  %5400 = vmatpush.msra.mxu1 %v5997_v17  ;;  %v7424_v17 = vld [vmem:[#allocation32_spill] sm:$0xff]  ;;  %v5451_v0 = vpop.permute.xlu0 %5450 }
0x1874   :  { %5342 = vmatpush.msrb.mxu3 %v5970_v5  ;;  %5374 = vmatpush.msra.mxu0 %v6087_v47  ;;  %v7432_v47 = vld [vmem:[#allocation28_spill] sm:$0xff] }
0x1875   :  { %5044 = vmatmul.f32.vlgmr.msrb.gmra.mxu2 %v5043_v46  ;;  %5212 = vmatmul.f32.vlgmr.msra.gmra.mxu3 %v5039_v21 }
0x1876   :  { %5402 = vmatpush.msra.mxu1 %v5976_v8  ;;  %5305 = vmatpush.msrb.mxu2 %v6033_v29  ;;  %v7421_v8 = vld [vmem:[#allocation12_spill] sm:$0xff]  ;;  %v7426_v29 = vld [vmem:[#allocation26_spill] sm:$0xff] }
0x1877   :  { %5242 = vmatmul.f32.vlgmr.msrb.gmra.mxu0 %v5043_v46  ;;  %5344 = vmatpush.msrb.mxu3 %v6062_v38 }
0x1878   :  { %5378 = vmatpush.msra.mxu0 %v6112_v56  ;;  %5404 = vmatpush.msra.mxu1 %v5978_v9  ;;  %v7423_v9 = vld [vmem:[#allocation22_spill] sm:$0xff] }
0x1879   :  { %5288 = vmatmul.f32.vlgmr.msrb.gmra.mxu1 %v5039_v21  ;;  %5308 = vmatpush.msrb.mxu2 %v6018_v24  ;;  %v7425_v24 = vld [vmem:[#allocation21_spill] sm:$0xff]  ;;  %v7433_v56 = vld [vmem:[#allocation30_spill] sm:$0xff] }
0x187a   :  { %5382 = vmatpush.msra.mxu0 %v6124_v60  ;;  %5406 = vmatpush.msra.mxu1 %v5970_v5  ;;  %v7422_v5 = vld [vmem:[#allocation31_spill] sm:$0xff] }
0x187b   :  { %5311 = vmatpush.msrb.mxu2 %v6047_v33  ;;  %5534 = vmatpush.msra.mxu3 %v6240_v3  ;;  %v7428_v33 = vld [vmem:[#allocation29_spill] sm:$0xff] }
0x187c   :  { %5408 = vmatpush.msra.mxu1 %v6062_v38  ;;  %5572 = vmatpush.msrb.mxu0 %v6219_v55  ;;  %v7430_v38 = vld [vmem:[#allocation23_spill] sm:$0xff] }
0x187d   :  { %5186 = vmatmul.f32.vlgmr.msra.gmra.mxu2 %v5039_v21  ;;  %5348 = vmatmul.f32.vlgmr.msrb.gmra.mxu3 %v5041_v49  ;;  %v5781_v49 = vld [vmem:[%s7217_s1 + $0xe] sm:$0x3] }
0x187e   :  { %5314 = vmatpush.msrb.mxu2 %v6076_v43  ;;  %5540 = vmatpush.msra.mxu3 %v6242_v4  ;;  %v7431_v43 = vld [vmem:[#allocation24_spill] sm:$0xff] }
0x187f   :  { %5384 = vmatmul.f32.vlgmr.msra.gmra.mxu0 %v5039_v21  ;;  %5601 = vmatpush.msrb.mxu1 %v7402_v25 }
0x1880   :  { %5317 = vmatpush.msrb.mxu2 %v7421_v8  ;;  %5546 = vmatpush.msra.mxu3 %v7422_v5 }
0x1881   :  { %5410 = vmatmul.f32.vlgmr.msra.gmra.mxu1 %v5039_v21  ;;  %5575 = vmatpush.msrb.mxu0 %v7423_v9 }
0x1882   :  { %5552 = vmatpush.msra.mxu3 %v7424_v17  ;;  %5603 = vmatpush.msrb.mxu1 %v7425_v24 }
0x1883   :  { %5578 = vmatpush.msrb.mxu0 %v7426_v29  ;;  %5501 = vmatpush.msra.mxu2 %v7402_v25 }
0x1884   :  { %5605 = vmatpush.msrb.mxu1 %v7427_v32  ;;  %5661 = vmatpush.msrb.mxu3 %v7402_v25 }
0x1885   :  { %5320 = vmatmul.f32.vlgmr.msrb.gmra.mxu2 %v5040_v15  ;;  %5581 = vmatpush.msrb.mxu0 %v7428_v33 }
0x1886   :  { %5503 = vmatpush.msra.mxu2 %v7425_v24  ;;  %5607 = vmatpush.msrb.mxu1 %v7429_v36 }
0x1887   :  { %5663 = vmatpush.msrb.mxu3 %v7425_v24 }
0x1888   :  { %5505 = vmatpush.msra.mxu2 %v7427_v32 }
0x1889   :  { %5665 = vmatpush.msrb.mxu3 %v7427_v32 }
0x188a   :  { %5507 = vmatpush.msra.mxu2 %v7429_v36 }
0x188b   :  { %5667 = vmatpush.msrb.mxu3 %v7429_v36 }
0x188c   :  { %5630 = vmatpush.msrb.mxu2 %v7430_v38 }
0x188e   :  { %5634 = vmatpush.msrb.mxu2 %v7431_v43 }
0x1890   :  { %5638 = vmatpush.msrb.mxu2 %v7432_v47 }
0x1892   :  { %5642 = vmatpush.msrb.mxu2 %v7433_v56 }
0x18ec   :  { %v5123_v55 = vpop.f32.mrf.mxu0 }
0x18ee   :  { %v5151_v4 = vpop.f32.mrf.mxu1 }
0x18f0   :  { %v5091_v60 = vpop.f32.mrf.mxu3 }
0x18f4   :  { %v5243_v14 = vpop.f32.mrf.mxu0 }
0x18f6   :  { %v5289_v12 = vpop.f32.mrf.mxu1 }
0x18f7   :  { %v5290_v13 = vadd.f32 %v5289_v12, %v5243_v14 }
0x18f8   :  { %v5045_v3 = vpop.f32.mrf.mxu2  ;;  %v5213_v25 = vpop.f32.mrf.mxu3 }
0x18f9   :  { %v5092_v50 = vadd.f32 %v5091_v60, %v5045_v3 }
0x18fb   :  { %v5124_v19 = vadd.f32 %v5123_v55, %v5092_v50 }
0x18fc   :  { %v5385_v34 = vpop.f32.mrf.mxu0 }
0x18fd   :  { %v5152_v30 = vadd.f32 %v5151_v4, %v5124_v19 }
0x18fe   :  { %v5411_v48 = vpop.f32.mrf.mxu1 }
0x1900   :  { %v5187_v2 = vpop.f32.mrf.mxu2  ;;  %v5349_v23 = vpop.f32.mrf.mxu3 }
0x1901   :  { %v5188_v53 = vadd.f32 %v5187_v2, %v5152_v30 }
0x1903   :  { %v5214_v35 = vadd.f32 %v5213_v25, %v5188_v53 }
0x1908   :  { %v5321_v20 = vpop.f32.mrf.mxu2 }
0x1909   :  { %v5322_v22 = vadd.f32 %v5321_v20, %v5290_v13 }
0x190b   :  { %v5350_v31 = vadd.f32 %v5349_v23, %v5322_v22 }
0x190d   :  { %v5386_v59 = vadd.f32 %v5385_v34, %v5350_v31 }
0x190f   :  { %v5412_v27 = vadd.f32 %v5411_v48, %v5386_v59 }
0x1911   :  { %v5416_v41 = vrot.slane %v5412_v27, 6 }
0x1913   :  { %v5417_v1 = vsel %vm67_vm0, %v5214_v35, %v5416_v41 }
0x1914   :  { %v5419_v61 = vadd.f32 %v5779_v42, %v5417_v1 }
0x1916   :  { %5879 = vtanh.f32 %v5419_v61  ;;  %v5780_v28 = vmul.f32 -1.442695, %v5419_v61 }
0x1918   :  { %5881 = vpow2.f32 %v5780_v28 }
0x191c   :  { %v5880_v26 = vpop.eup %5879 }
0x191d   :  { %5441 = vst [vmem:[#allocation1] ss:$4 sm:$0xff] %v5880_v26 }
0x191e   :  { %v5882_v7 = vpop.eup %5881 }
0x191f   :  { %v5424_v40 = vadd.f32 1.0, %v5882_v7 }
0x1921   :  { %5883 = vrcp.f32 %v5424_v40  ;;  %v5436_v52 = vand.u32 2147483648, %v5424_v40  ;;  %v5434_v11 = vand.u32 2147483647, %v5424_v40  ;;  %vm5430_vm8 = vweird.f32 %v5424_v40 }
0x1923   :  { %v5437_v44 = vor.u32 1.1754944e-38, %v5436_v52  ;;  %vm5435_vm0 = vcmp.eq.f32.partialorder %v5434_v11, 8.507059e+37 }
0x1924   :  { %v5442_v10 = vld.sshfl [vmem:[#allocation1] sm:$0xff pattern:$0x73625140] }
0x1927   :  { %v5884_v63 = vpop.eup %5883 }
0x1928   :  { %v5426_v51 = vmul.f32 %v5884_v63, %v5424_v40  ;;  %vm5431_vm2 = vweird.f32 %v5884_v63 }
0x1929   :  { %vm5432_vm9 = vmor %vm5430_vm8, %vm5431_vm2 }
0x192a   :  { %v5427_v62 = vsub.f32 1.0, %v5426_v51 }
0x192c   :  { %v5428_v37 = vmul.f32 %v5884_v63, %v5427_v62 }
0x192e   :  { %v5429_v57 = vadd.f32 %v5884_v63, %v5428_v37 }
0x1930   :  { %v5433_v16 = vsel %vm5432_vm9, %v5884_v63, %v5429_v57 }
0x1931   :  { %v5438_v45 = vsel %vm5435_vm0, %v5437_v44, %v5433_v16 }
0x1932   :  { %5445 = vst [vmem:[#allocation1] ss:$4 sm:$0xff] %v5438_v45 }
0x1939   :  { %v5446_v54 = vld.sshfl [vmem:[#allocation1] sm:$0xff pattern:$0x73625140] }
0x193a   :  { %v5448_v39 = vsel %vm6193_vm10, %v5442_v10, %v5446_v54  ;;  %5478 = vst [vmem:[#allocation1] ss:$4 sm:$0xff] %v5419_v61 }
0x193b   :  { %5455 = vrot.lane.b32.xlu2 %v5448_v39, %s5896_s19  ;;  %v5453_v46 = vmul.f32 %v5451_v0, %v5448_v39 }
0x1941   :  { %v5479_v61 = vld.sshfl [vmem:[#allocation1 + $0x8] sm:$0xff pattern:$0x73625140] }
0x1995   :  { %v5456_v21 = vpop.permute.xlu2 %5455 }
0x1996   :  { %v5458_v15 = vmul.f32 %v5456_v21, %v5448_v39 }
0x1998   :  { %5460 = vrot.lane.b32.xlu1 %v5458_v15, %s5894_s2 }
0x19a0   :  { %5474 = vperm.xlu1 %5793, %v5781_v49  }
0x1a0a   :  { %v5461_v8 = vpop.permute.xlu1 %5460 }
0x1a0b   :  { %v5463_v5 = vadd.f32 %v5461_v8, %v5453_v46 }
0x1a0d   :  { %5885 = vtanh.f32 %v5463_v5 }
0x1a12   :  { %v5475_v1 = vpop.permute.xlu1 %5474 }
0x1a13   :  { %v5886_v9 = vpop.eup %5885  ;;  %v5481_v28 = vmul.f32 %v5479_v61, %v5475_v1 }
0x1a14   :  { %5466 = vrot.lane.b32.xlu2 %v5886_v9, %s5896_s19 }
0x1a15   :  { %v5482_v7 = vadd.f32 %v5481_v28, %v7127_v58 }
0x1a1c   :  { %5713 = vrot.lane.b32.xlu2 %v5463_v5, %s5898_s13 }
0x1a6e   :  { %v5467_v6 = vpop.permute.xlu2 %5466 }
0x1a6f   :  { %v5469_v17 = vmul.f32 %v5467_v6, %v5448_v39 }
0x1a71   :  { %5708 = vrot.lane.b32.xlu1 %v5469_v17, %s5897_s25  ;;  %5484 = vrot.lane.b32.xlu0 %v5469_v17, %s5894_s2 }
0x1a76   :  { %v5714_v24 = vpop.permute.xlu2 %5713 }
0x1a77   :  { %5716 = vst.msk [vmem:[#allocation3] sm:$0x3] %vm38_vm3, %v5714_v24 }
0x1a7e   :  { %v5717_v29 = vld [vmem:[#allocation3] sm:$0x3] }
0x1a7f   :  { %5718 = vst.msk [vmem:[%s7223_s10] sm:$0x3] %vm38_vm3, %v5717_v29 }
0x1ae3   :  { %v5485_v32 = vpop.permute.xlu0 %5484  ;;  %v5709_v52 = vpop.permute.xlu1 %5708 }
0x1ae4   :  { %v5486_v33 = vsel %vm544_vm11, %v5485_v32, 0  ;;  %5784 = vst.msk [vmem:[%s7219_s8 + $0xe] sm:$0x3] %vm38_vm3, %v5485_v32 }
0x1ae5   :  { %v5508_v36 = vand.u32 4294901760, %v5486_v33 }
0x1ae7   :  { %v5509_v38 = vsub.f32 %v5486_v33, %v5508_v36  ;;  %5554 = vmatmul.f32.vlgmr.msra.gmra.mxu3 %v5508_v36 }
0x1ae9   :  { %v5510_v43 = vand.u32 4294901760, %v5509_v38  ;;  %5584 = vmatmul.f32.vlgmr.msrb.gmra.mxu0 %v5509_v38 }
0x1aeb   :  { %v5511_v47 = vsub.f32 %v5509_v38, %v5510_v43  ;;  %5611 = vmatmul.f32.vlgmr.msrb.gmra.mxu1 %v5510_v43 }
0x1aed   :  { %v5512_v56 = vand.u32 4294901760, %v5511_v47 }
0x1aef   :  { %5513 = vmatmul.f32.vlgmr.msra.gmra.mxu2 %v5512_v56  ;;  %5669 = vmatmul.f32.vlgmr.msrb.gmra.mxu3 %v5508_v36 }
0x1af7   :  { %5644 = vmatmul.f32.vlgmr.msrb.gmra.mxu2 %v5508_v36 }
0x1b66   :  { %v5585_v25 = vpop.f32.mrf.mxu0 }
0x1b68   :  { %v5612_v14 = vpop.f32.mrf.mxu1 }
0x1b6a   :  { %v5555_v60 = vpop.f32.mrf.mxu3 }
0x1b72   :  { %v5514_v55 = vpop.f32.mrf.mxu2  ;;  %v5670_v19 = vpop.f32.mrf.mxu3 }
0x1b73   :  { %v5515_v3 = vadd.f32 %v7111_v18, %v5514_v55 }
0x1b75   :  { %v5556_v4 = vadd.f32 %v5555_v60, %v5515_v3 }
0x1b77   :  { %v5586_v2 = vadd.f32 %v5585_v25, %v5556_v4 }
0x1b79   :  { %v5613_v50 = vadd.f32 %v5612_v14, %v5586_v2 }
0x1b7a   :  { %v5645_v12 = vpop.f32.mrf.mxu2 }
0x1b7b   :  { %v5646_v13 = vadd.f32 %v5645_v12, %v5613_v50 }
0x1b7d   :  { %v5671_v20 = vadd.f32 %v5670_v19, %v5646_v13 }
0x1b7f   :  { %v5782_v22 = vmul.f32 -1.442695, %v5671_v20  ;;  %5695 = vrot.lane.b32.xlu0 %v5671_v20, %s5893_s17 }
0x1b81   :  { %5887 = vpow2.f32 %v5782_v22 }
0x1b87   :  { %v5888_v23 = vpop.eup %5887 }
0x1b88   :  { %v5676_v30 = vadd.f32 1.0, %v5888_v23 }
0x1b8a   :  { %5889 = vrcp.f32 %v5676_v30  ;;  %v5688_v18 = vand.u32 2147483648, %v5676_v30  ;;  %v5686_v48 = vand.u32 2147483647, %v5676_v30  ;;  %vm5682_vm10 = vweird.f32 %v5676_v30 }
0x1b8c   :  { %v5689_v35 = vor.u32 1.1754944e-38, %v5688_v18  ;;  %vm5687_vm12 = vcmp.eq.f32.partialorder %v5686_v48, 8.507059e+37 }
0x1b90   :  { %v5890_v31 = vpop.eup %5889 }
0x1b91   :  { %v5678_v34 = vmul.f32 %v5890_v31, %v5676_v30  ;;  %vm5683_vm3 = vweird.f32 %v5890_v31 }
0x1b92   :  { %vm5684_vm11 = vmor %vm5682_vm10, %vm5683_vm3 }
0x1b93   :  { %v5679_v53 = vsub.f32 1.0, %v5678_v34 }
0x1b95   :  { %v5680_v59 = vmul.f32 %v5890_v31, %v5679_v53 }
0x1b97   :  { %v5681_v27 = vadd.f32 %v5890_v31, %v5680_v59 }
0x1b99   :  { %v5685_v42 = vsel %vm5684_vm11, %v5890_v31, %v5681_v27 }
0x1b9a   :  { %v5690_v41 = vsel %vm5687_vm12, %v5689_v35, %v5685_v42 }
0x1b9b   :  { %5785 = vst.msk [vmem:[%s7221_s9 + $0xe] sm:$0x3] %vm759_vm14, %v5690_v41  ;;  %v5692_v26 = vsub.f32 1.0, %v5690_v41 }
0x1b9d   :  { %v5693_v63 = vmul.f32 %v5692_v26, %v5482_v7 }
0x1bf1   :  { %v5696_v40 = vpop.permute.xlu0 %5695 }
0x1bf2   :  { %v5698_v51 = vmul.f32 %v5696_v40, %v5690_v41 }
0x1bf4   :  { %v5699_v62 = vadd.f32 %v5698_v51, %v5693_v63 }
0x1bf6   :  { %5783 = vst.msk [vmem:[%s7222_s7 + $0xe] sm:$0x3] %vm759_vm14, %v5699_v62 }
0x1bf7   :  { %5707 = vst.msk [vmem:[#allocation2] sm:$0x3] %vm759_vm14, %v5699_v62 }
0x1bf8   :  { %5711 = vst.msk [vmem:[#allocation2] sm:$0x3] %vm768_vm4, %v5709_v52 }

</bundles_post_ra>
